<compile_context>
chip_gen: v6e
topology: v6e:2x2x1
jax: 0.10.0
libtpu: 0.0.40
codegen_flags: <defaults>
</compile_context>

<pallas_src>
import math

import jax
import jax.numpy as jnp
from jax.experimental import pallas as pl
from jax.experimental.pallas import tpu as pltpu


def _round_up(x, m):
    return ((x + m - 1) // m) * m


def _conv_bn_silu_kernel(x_ref, w_ref, scale_ref, shift_ref, o_ref):
    # x_ref:     (1, Hp, Wp, C1)   bf16  full zero-padded image, resident across (c2, h)
    # w_ref:     (K, K, C1, TC2)   bf16  HWIO weight slice, resident across h
    # scale_ref: (1, TC2)          f32   folded BN scale = gamma / sqrt(var + eps)
    # shift_ref: (1, TC2)          f32   folded BN shift = beta - mean * scale
    # o_ref:     (1, TH, W, C2o)   bf16  output tile (C2o = TC2, or C2 when C2 % 128 != 0)
    K = w_ref.shape[0]
    C1 = x_ref.shape[3]
    TH, W = o_ref.shape[1], o_ref.shape[2]
    TC2 = w_ref.shape[3]

    h = pl.program_id(2)
    row0 = h * TH                       # top row of this output tile in padded coords

    # Direct convolution: K*K shifted (TH*W, C1) x (C1, TC2) MXU matmuls, accumulated in
    # a single traced f32 value (no scratch RMW; partials can stay in regs / MRB).
    acc = None
    for kh in range(K):                 # Python ints -> fully unrolled, static tap offsets
        for kw in range(K):
            patch = x_ref[0, pl.ds(row0 + kh, TH), pl.ds(kw, W), :]   # (TH, W, C1) bf16
            patch = patch.reshape(TH * W, C1)
            d = jnp.dot(patch, w_ref[kh, kw], preferred_element_type=jnp.float32)
            acc = d if acc is None else acc + d

    # Fused BatchNorm (eval, running stats) + SiLU epilogue; sigmoid runs on the EUP.
    y = acc * scale_ref[...] + shift_ref[...]
    y = y * jax.nn.sigmoid(y)
    y = y.reshape(1, TH, W, TC2)[..., : o_ref.shape[3]]   # drop lane padding (if any)
    o_ref[...] = y.astype(o_ref.dtype)


def _choose_h_tile(H, W, max_rows=512):
    """Largest divisor TH of H with TH*W <= max_rows output rows per tile.

    Keeps the f32 accumulator near the vreg budget while still feeding a few hundred
    rows into the MXU M dimension and amortizing the per-grid-step overhead.
    """
    best = 1
    for d in range(1, H + 1):
        if H % d == 0 and d * W <= max_rows:
            best = d
    return best


def _vmem_limit_bytes(Hp, Wp, C1, K, TC2, TH, W, c2_blk):
    """Estimate the VMEM working set (lane dim padded to 128, sublane to 16 for bf16)."""
    bx = Hp * _round_up(Wp, 16) * _round_up(C1, 128) * 2          # resident input block
    bw = K * K * _round_up(C1, 16) * _round_up(TC2, 128) * 2      # weight block
    bo = TH * _round_up(W, 16) * _round_up(c2_blk, 128) * 2       # output block
    bs = 2 * 8 * _round_up(TC2, 128) * 4                          # BN scale/shift
    acc = TH * W * _round_up(TC2, 128) * 4                        # traced accumulator
    need = 2 * (bx + bw + bo + bs) + acc                          # double-buffered blocks
    # Headroom for compiler-internal scratch; clamp to v7x physical VMEM per TensorCore.
    return int(min(max(2 * need, 32 * 1024 * 1024), 64 * 1024 * 1024))


def conv_bn_silu_nhwc(x_nhwc, weight_oihw, bn_gamma, bn_beta, bn_mean, bn_var,
                      *, eps=1e-5):
    """Core NHWC path: x (N, H, W, C1) -> bf16 (N, H, W, C2)."""
    N, H, W, C1 = x_nhwc.shape
    C2, C1w, K, Kw = weight_oihw.shape
    assert C1 == C1w and K == Kw, "groups=1, square kernel only"
    assert K % 2 == 1, "odd kernel size only (PyTorch same-size autopad)"
    pad = K // 2
    Hp, Wp = H + 2 * pad, W + 2 * pad

    # Input: bf16 cast + spatial zero-pad, fused by XLA into a single pass.
    x_pad = jnp.pad(x_nhwc.astype(jnp.bfloat16),
                    ((0, 0), (pad, pad), (pad, pad), (0, 0)))

    # Output-channel tiling.  When C2 is not a multiple of 128, compute one lane-padded
    # tile on the MXU but store only the valid C2 lanes -> no padded HBM writes.
    if C2 % 128 == 0:
        C2p = C2
        TC2 = 256 if C2 % 256 == 0 else 128   # TODO(synk): prefer TC2=128 on v5e
        c2_blk = TC2
    else:
        C2p = _round_up(C2, 128)
        TC2 = C2p                             # single c2 tile, masked store of C2 lanes
        c2_blk = C2
    n_c2 = C2p // TC2

    # Weights OIHW -> HWIO, bf16, lane-padded output channels.
    w_hwio = jnp.transpose(weight_oihw, (2, 3, 1, 0)).astype(jnp.bfloat16)
    if C2p != C2:
        w_hwio = jnp.pad(w_hwio, ((0, 0), (0, 0), (0, 0), (0, C2p - C2)))

    # Fold BatchNorm (eval mode, running stats) into per-channel scale/shift (f32).
    scale = bn_gamma.astype(jnp.float32) / jnp.sqrt(bn_var.astype(jnp.float32) + eps)
    shift = bn_beta.astype(jnp.float32) - bn_mean.astype(jnp.float32) * scale
    if C2p != C2:
        scale = jnp.pad(scale, (0, C2p - C2), constant_values=1.0)
        shift = jnp.pad(shift, (0, C2p - C2))
    scale = scale.reshape(1, C2p)
    shift = shift.reshape(1, C2p)

    TH = _choose_h_tile(H, W)
    n_h = H // TH

    # h innermost: the x image block and the (w, scale, shift) blocks stay VMEM-resident
    # across it, so only the output tile moves through HBM per step.
    grid = (N, n_c2, n_h)
    # TODO(synk): for very large feature maps (resident image block too big for VMEM),
    # add an H-tiled input window path instead of the full-image resident block.

    vmem_limit = _vmem_limit_bytes(Hp, Wp, C1, K, TC2, TH, W, c2_blk)

    out = pl.pallas_call(
        _conv_bn_silu_kernel,
        out_shape=jax.ShapeDtypeStruct((N, H, W, C2), jnp.bfloat16),
        grid_spec=pltpu.PrefetchScalarGridSpec(
            num_scalar_prefetch=0,
            grid=grid,
            in_specs=[
                pl.BlockSpec((1, Hp, Wp, C1), lambda n, c, h: (n, 0, 0, 0)),
                pl.BlockSpec((K, K, C1, TC2), lambda n, c, h: (0, 0, 0, c)),
                pl.BlockSpec((1, TC2), lambda n, c, h: (0, c)),
                pl.BlockSpec((1, TC2), lambda n, c, h: (0, c)),
            ],
            out_specs=pl.BlockSpec((1, TH, W, c2_blk), lambda n, c, h: (n, h, 0, c)),
        ),
        compiler_params=pltpu.CompilerParams(
            dimension_semantics=("parallel", "parallel", "parallel"),
            vmem_limit_bytes=vmem_limit,
        ),
    )(x_pad, w_hwio, scale, shift)
    return out


def conv_bn_silu(x_nchw, weight_oihw, bn_gamma, bn_beta, bn_mean, bn_var, *, eps=1e-5):
    """Drop-in PyTorch-convention wrapper: x (N, C1, H, W) f32 -> (N, C2, H, W) f32.

    In an NHWC/bf16 model pipeline, call conv_bn_silu_nhwc directly and skip both
    transposes and the f32 upcast (the kernel's native output is bf16 NHWC)."""
    x_nhwc = jnp.transpose(x_nchw, (0, 2, 3, 1))
    out_nhwc = conv_bn_silu_nhwc(x_nhwc, weight_oihw, bn_gamma, bn_beta, bn_mean, bn_var,
                                 eps=eps)
    return jnp.transpose(out_nhwc, (0, 3, 1, 2)).astype(jnp.float32)


def _reference(x_nchw, weight_oihw, bn_gamma, bn_beta, bn_mean, bn_var, eps=1e-5):
    """Pure-JAX reference with the same bf16 matmul inputs / f32 accumulation."""
    pad = weight_oihw.shape[-1] // 2
    y = jax.lax.conv_general_dilated(
        x_nchw.astype(jnp.bfloat16), weight_oihw.astype(jnp.bfloat16),
        window_strides=(1, 1), padding=((pad, pad), (pad, pad)),
        dimension_numbers=("NCHW", "OIHW", "NCHW"),
        preferred_element_type=jnp.float32)
    scale = bn_gamma / jnp.sqrt(bn_var + eps)
    shift = bn_beta - bn_mean * scale
    y = y * scale[None, :, None, None] + shift[None, :, None, None]
    return y * jax.nn.sigmoid(y)


if __name__ == "__main__":
    # Small shapes: Conv(c1=4, c2=8, k=3, s=1) on a (2, 4, 16, 16) NCHW input.
    # H=16 -> one 16-row tile; C2=8 is lane-padded to 128 on the MXU but only 8 valid
    # channels are written to HBM (bf16).
    N, C1, H, W = 2, 4, 16, 16
    C2, K = 8, 3

    key = jax.random.PRNGKey(0)
    kx, kw, kg, kb, km, kv = jax.random.split(key, 6)

    x = jax.random.normal(kx, (N, C1, H, W), dtype=jnp.float32)
    fan_in = C1 * K * K
    weight = jax.random.normal(kw, (C2, C1, K, K), dtype=jnp.float32) / math.sqrt(fan_in)
    bn_gamma = 1.0 + 0.1 * jax.random.normal(kg, (C2,), dtype=jnp.float32)
    bn_beta = 0.1 * jax.random.normal(kb, (C2,), dtype=jnp.float32)
    bn_mean = 0.05 * jax.random.normal(km, (C2,), dtype=jnp.float32)
    bn_var = jnp.abs(1.0 + 0.1 * jax.random.normal(kv, (C2,), dtype=jnp.float32))

    out = conv_bn_silu(x, weight, bn_gamma, bn_beta, bn_mean, bn_var)
    out = jax.block_until_ready(out)

    ref = _reference(x, weight, bn_gamma, bn_beta, bn_mean, bn_var)
    assert out.shape == (N, C2, H, W)
    # Tolerance covers the bf16 rounding of the kernel's output vs. the f32 reference.
    assert jnp.max(jnp.abs(out - ref)) < 2e-2, "mismatch vs reference"

    print("KERNEL_OK")
</pallas_src>

<mosaic_0001>
module attributes {stable_mosaic.version = 11 : i64} {
  func.func @_conv_bn_silu_kernel(%arg0: i32, %arg1: i32, %arg2: i32, %arg3: memref<1x18x18x4xbf16, #tpu.memory_space<vmem>>, %arg4: memref<3x3x4x128xbf16, #tpu.memory_space<vmem>>, %arg5: memref<1x128xf32, #tpu.memory_space<vmem>>, %arg6: memref<1x128xf32, #tpu.memory_space<vmem>>, %arg7: memref<1x16x16x8xbf16, #tpu.memory_space<vmem>>) attributes {dimension_semantics = [#tpu.dimension_semantics<parallel>, #tpu.dimension_semantics<parallel>, #tpu.dimension_semantics<parallel>], iteration_bounds = array<i64: 2, 1, 1>, scalar_prefetch = 0 : i64, scratch_operands = 0 : i64, tpu.core_type = #tpu.core_type<tc>, window_params = [{transform_indices = @transform_0, window_bounds = array<i64: 1, 18, 18, 4>}, {transform_indices = @transform_1, window_bounds = array<i64: 3, 3, 4, 128>}, {transform_indices = @transform_2, window_bounds = array<i64: 1, 128>}, {transform_indices = @transform_3, window_bounds = array<i64: 1, 128>}, {transform_indices = @transform_4, window_bounds = array<i64: 1, 16, 16, 8>}]} {
    %c16_i32 = arith.constant 16 : i32
    %0 = arith.muli %arg2, %c16_i32 : i32
    %c0_i32 = arith.constant 0 : i32
    %1 = arith.addi %0, %c0_i32 : i32
    %c0 = arith.constant 0 : index
    %2 = arith.index_cast %1 : i32 to index
    %c0_0 = arith.constant 0 : index
    %c0_1 = arith.constant 0 : index
    %3 = vector.load %arg3[%c0, %2, %c0_0, %c0_1] : memref<1x18x18x4xbf16, #tpu.memory_space<vmem>>, vector<1x16x16x4xbf16>
    %4 = vector.shape_cast %3 : vector<1x16x16x4xbf16> to vector<16x16x4xbf16>
    %5 = vector.shape_cast %4 : vector<16x16x4xbf16> to vector<256x4xbf16>
    %c0_2 = arith.constant 0 : index
    %c0_3 = arith.constant 0 : index
    %c0_4 = arith.constant 0 : index
    %c0_5 = arith.constant 0 : index
    %6 = vector.load %arg4[%c0_2, %c0_3, %c0_4, %c0_5] : memref<3x3x4x128xbf16, #tpu.memory_space<vmem>>, vector<1x1x4x128xbf16>
    %7 = vector.shape_cast %6 : vector<1x1x4x128xbf16> to vector<4x128xbf16>
    %cst = arith.constant dense<0.000000e+00> : vector<256x128xf32>
    %8 = tpu.matmul %5, %7, %cst {dimension_numbers = #tpu.dot_dimension_numbers<[1], [0], [0], [1], [0, 0, 1, 1], [], []>} : vector<256x4xbf16>, vector<4x128xbf16>, vector<256x128xf32> -> vector<256x128xf32>
    %c0_i32_6 = arith.constant 0 : i32
    %9 = arith.addi %0, %c0_i32_6 : i32
    %c0_7 = arith.constant 0 : index
    %10 = arith.index_cast %9 : i32 to index
    %c1 = arith.constant 1 : index
    %c0_8 = arith.constant 0 : index
    %11 = vector.load %arg3[%c0_7, %10, %c1, %c0_8] : memref<1x18x18x4xbf16, #tpu.memory_space<vmem>>, vector<1x16x16x4xbf16>
    %12 = vector.shape_cast %11 : vector<1x16x16x4xbf16> to vector<16x16x4xbf16>
    %13 = vector.shape_cast %12 : vector<16x16x4xbf16> to vector<256x4xbf16>
    %c0_9 = arith.constant 0 : index
    %c1_10 = arith.constant 1 : index
    %c0_11 = arith.constant 0 : index
    %c0_12 = arith.constant 0 : index
    %14 = vector.load %arg4[%c0_9, %c1_10, %c0_11, %c0_12] : memref<3x3x4x128xbf16, #tpu.memory_space<vmem>>, vector<1x1x4x128xbf16>
    %15 = vector.shape_cast %14 : vector<1x1x4x128xbf16> to vector<4x128xbf16>
    %cst_13 = arith.constant dense<0.000000e+00> : vector<256x128xf32>
    %16 = tpu.matmul %13, %15, %cst_13 {dimension_numbers = #tpu.dot_dimension_numbers<[1], [0], [0], [1], [0, 0, 1, 1], [], []>} : vector<256x4xbf16>, vector<4x128xbf16>, vector<256x128xf32> -> vector<256x128xf32>
    %17 = arith.addf %8, %16 : vector<256x128xf32>
    %c0_i32_14 = arith.constant 0 : i32
    %18 = arith.addi %0, %c0_i32_14 : i32
    %c0_15 = arith.constant 0 : index
    %19 = arith.index_cast %18 : i32 to index
    %c2 = arith.constant 2 : index
    %c0_16 = arith.constant 0 : index
    %20 = vector.load %arg3[%c0_15, %19, %c2, %c0_16] : memref<1x18x18x4xbf16, #tpu.memory_space<vmem>>, vector<1x16x16x4xbf16>
    %21 = vector.shape_cast %20 : vector<1x16x16x4xbf16> to vector<16x16x4xbf16>
    %22 = vector.shape_cast %21 : vector<16x16x4xbf16> to vector<256x4xbf16>
    %c0_17 = arith.constant 0 : index
    %c2_18 = arith.constant 2 : index
    %c0_19 = arith.constant 0 : index
    %c0_20 = arith.constant 0 : index
    %23 = vector.load %arg4[%c0_17, %c2_18, %c0_19, %c0_20] : memref<3x3x4x128xbf16, #tpu.memory_space<vmem>>, vector<1x1x4x128xbf16>
    %24 = vector.shape_cast %23 : vector<1x1x4x128xbf16> to vector<4x128xbf16>
    %cst_21 = arith.constant dense<0.000000e+00> : vector<256x128xf32>
    %25 = tpu.matmul %22, %24, %cst_21 {dimension_numbers = #tpu.dot_dimension_numbers<[1], [0], [0], [1], [0, 0, 1, 1], [], []>} : vector<256x4xbf16>, vector<4x128xbf16>, vector<256x128xf32> -> vector<256x128xf32>
    %26 = arith.addf %17, %25 : vector<256x128xf32>
    %c1_i32 = arith.constant 1 : i32
    %27 = arith.addi %0, %c1_i32 : i32
    %c0_22 = arith.constant 0 : index
    %28 = arith.index_cast %27 : i32 to index
    %c0_23 = arith.constant 0 : index
    %c0_24 = arith.constant 0 : index
    %29 = vector.load %arg3[%c0_22, %28, %c0_23, %c0_24] : memref<1x18x18x4xbf16, #tpu.memory_space<vmem>>, vector<1x16x16x4xbf16>
    %30 = vector.shape_cast %29 : vector<1x16x16x4xbf16> to vector<16x16x4xbf16>
    %31 = vector.shape_cast %30 : vector<16x16x4xbf16> to vector<256x4xbf16>
    %c1_25 = arith.constant 1 : index
    %c0_26 = arith.constant 0 : index
    %c0_27 = arith.constant 0 : index
    %c0_28 = arith.constant 0 : index
    %32 = vector.load %arg4[%c1_25, %c0_26, %c0_27, %c0_28] : memref<3x3x4x128xbf16, #tpu.memory_space<vmem>>, vector<1x1x4x128xbf16>
    %33 = vector.shape_cast %32 : vector<1x1x4x128xbf16> to vector<4x128xbf16>
    %cst_29 = arith.constant dense<0.000000e+00> : vector<256x128xf32>
    %34 = tpu.matmul %31, %33, %cst_29 {dimension_numbers = #tpu.dot_dimension_numbers<[1], [0], [0], [1], [0, 0, 1, 1], [], []>} : vector<256x4xbf16>, vector<4x128xbf16>, vector<256x128xf32> -> vector<256x128xf32>
    %35 = arith.addf %26, %34 : vector<256x128xf32>
    %c1_i32_30 = arith.constant 1 : i32
    %36 = arith.addi %0, %c1_i32_30 : i32
    %c0_31 = arith.constant 0 : index
    %37 = arith.index_cast %36 : i32 to index
    %c1_32 = arith.constant 1 : index
    %c0_33 = arith.constant 0 : index
    %38 = vector.load %arg3[%c0_31, %37, %c1_32, %c0_33] : memref<1x18x18x4xbf16, #tpu.memory_space<vmem>>, vector<1x16x16x4xbf16>
    %39 = vector.shape_cast %38 : vector<1x16x16x4xbf16> to vector<16x16x4xbf16>
    %40 = vector.shape_cast %39 : vector<16x16x4xbf16> to vector<256x4xbf16>
    %c1_34 = arith.constant 1 : index
    %c1_35 = arith.constant 1 : index
    %c0_36 = arith.constant 0 : index
    %c0_37 = arith.constant 0 : index
    %41 = vector.load %arg4[%c1_34, %c1_35, %c0_36, %c0_37] : memref<3x3x4x128xbf16, #tpu.memory_space<vmem>>, vector<1x1x4x128xbf16>
    %42 = vector.shape_cast %41 : vector<1x1x4x128xbf16> to vector<4x128xbf16>
    %cst_38 = arith.constant dense<0.000000e+00> : vector<256x128xf32>
    %43 = tpu.matmul %40, %42, %cst_38 {dimension_numbers = #tpu.dot_dimension_numbers<[1], [0], [0], [1], [0, 0, 1, 1], [], []>} : vector<256x4xbf16>, vector<4x128xbf16>, vector<256x128xf32> -> vector<256x128xf32>
    %44 = arith.addf %35, %43 : vector<256x128xf32>
    %c1_i32_39 = arith.constant 1 : i32
    %45 = arith.addi %0, %c1_i32_39 : i32
    %c0_40 = arith.constant 0 : index
    %46 = arith.index_cast %45 : i32 to index
    %c2_41 = arith.constant 2 : index
    %c0_42 = arith.constant 0 : index
    %47 = vector.load %arg3[%c0_40, %46, %c2_41, %c0_42] : memref<1x18x18x4xbf16, #tpu.memory_space<vmem>>, vector<1x16x16x4xbf16>
    %48 = vector.shape_cast %47 : vector<1x16x16x4xbf16> to vector<16x16x4xbf16>
    %49 = vector.shape_cast %48 : vector<16x16x4xbf16> to vector<256x4xbf16>
    %c1_43 = arith.constant 1 : index
    %c2_44 = arith.constant 2 : index
    %c0_45 = arith.constant 0 : index
    %c0_46 = arith.constant 0 : index
    %50 = vector.load %arg4[%c1_43, %c2_44, %c0_45, %c0_46] : memref<3x3x4x128xbf16, #tpu.memory_space<vmem>>, vector<1x1x4x128xbf16>
    %51 = vector.shape_cast %50 : vector<1x1x4x128xbf16> to vector<4x128xbf16>
    %cst_47 = arith.constant dense<0.000000e+00> : vector<256x128xf32>
    %52 = tpu.matmul %49, %51, %cst_47 {dimension_numbers = #tpu.dot_dimension_numbers<[1], [0], [0], [1], [0, 0, 1, 1], [], []>} : vector<256x4xbf16>, vector<4x128xbf16>, vector<256x128xf32> -> vector<256x128xf32>
    %53 = arith.addf %44, %52 : vector<256x128xf32>
    %c2_i32 = arith.constant 2 : i32
    %54 = arith.addi %0, %c2_i32 : i32
    %c0_48 = arith.constant 0 : index
    %55 = arith.index_cast %54 : i32 to index
    %c0_49 = arith.constant 0 : index
    %c0_50 = arith.constant 0 : index
    %56 = vector.load %arg3[%c0_48, %55, %c0_49, %c0_50] : memref<1x18x18x4xbf16, #tpu.memory_space<vmem>>, vector<1x16x16x4xbf16>
    %57 = vector.shape_cast %56 : vector<1x16x16x4xbf16> to vector<16x16x4xbf16>
    %58 = vector.shape_cast %57 : vector<16x16x4xbf16> to vector<256x4xbf16>
    %c2_51 = arith.constant 2 : index
    %c0_52 = arith.constant 0 : index
    %c0_53 = arith.constant 0 : index
    %c0_54 = arith.constant 0 : index
    %59 = vector.load %arg4[%c2_51, %c0_52, %c0_53, %c0_54] : memref<3x3x4x128xbf16, #tpu.memory_space<vmem>>, vector<1x1x4x128xbf16>
    %60 = vector.shape_cast %59 : vector<1x1x4x128xbf16> to vector<4x128xbf16>
    %cst_55 = arith.constant dense<0.000000e+00> : vector<256x128xf32>
    %61 = tpu.matmul %58, %60, %cst_55 {dimension_numbers = #tpu.dot_dimension_numbers<[1], [0], [0], [1], [0, 0, 1, 1], [], []>} : vector<256x4xbf16>, vector<4x128xbf16>, vector<256x128xf32> -> vector<256x128xf32>
    %62 = arith.addf %53, %61 : vector<256x128xf32>
    %c2_i32_56 = arith.constant 2 : i32
    %63 = arith.addi %0, %c2_i32_56 : i32
    %c0_57 = arith.constant 0 : index
    %64 = arith.index_cast %63 : i32 to index
    %c1_58 = arith.constant 1 : index
    %c0_59 = arith.constant 0 : index
    %65 = vector.load %arg3[%c0_57, %64, %c1_58, %c0_59] : memref<1x18x18x4xbf16, #tpu.memory_space<vmem>>, vector<1x16x16x4xbf16>
    %66 = vector.shape_cast %65 : vector<1x16x16x4xbf16> to vector<16x16x4xbf16>
    %67 = vector.shape_cast %66 : vector<16x16x4xbf16> to vector<256x4xbf16>
    %c2_60 = arith.constant 2 : index
    %c1_61 = arith.constant 1 : index
    %c0_62 = arith.constant 0 : index
    %c0_63 = arith.constant 0 : index
    %68 = vector.load %arg4[%c2_60, %c1_61, %c0_62, %c0_63] : memref<3x3x4x128xbf16, #tpu.memory_space<vmem>>, vector<1x1x4x128xbf16>
    %69 = vector.shape_cast %68 : vector<1x1x4x128xbf16> to vector<4x128xbf16>
    %cst_64 = arith.constant dense<0.000000e+00> : vector<256x128xf32>
    %70 = tpu.matmul %67, %69, %cst_64 {dimension_numbers = #tpu.dot_dimension_numbers<[1], [0], [0], [1], [0, 0, 1, 1], [], []>} : vector<256x4xbf16>, vector<4x128xbf16>, vector<256x128xf32> -> vector<256x128xf32>
    %71 = arith.addf %62, %70 : vector<256x128xf32>
    %c2_i32_65 = arith.constant 2 : i32
    %72 = arith.addi %0, %c2_i32_65 : i32
    %c0_66 = arith.constant 0 : index
    %73 = arith.index_cast %72 : i32 to index
    %c2_67 = arith.constant 2 : index
    %c0_68 = arith.constant 0 : index
    %74 = vector.load %arg3[%c0_66, %73, %c2_67, %c0_68] : memref<1x18x18x4xbf16, #tpu.memory_space<vmem>>, vector<1x16x16x4xbf16>
    %75 = vector.shape_cast %74 : vector<1x16x16x4xbf16> to vector<16x16x4xbf16>
    %76 = vector.shape_cast %75 : vector<16x16x4xbf16> to vector<256x4xbf16>
    %c2_69 = arith.constant 2 : index
    %c2_70 = arith.constant 2 : index
    %c0_71 = arith.constant 0 : index
    %c0_72 = arith.constant 0 : index
    %77 = vector.load %arg4[%c2_69, %c2_70, %c0_71, %c0_72] : memref<3x3x4x128xbf16, #tpu.memory_space<vmem>>, vector<1x1x4x128xbf16>
    %78 = vector.shape_cast %77 : vector<1x1x4x128xbf16> to vector<4x128xbf16>
    %cst_73 = arith.constant dense<0.000000e+00> : vector<256x128xf32>
    %79 = tpu.matmul %76, %78, %cst_73 {dimension_numbers = #tpu.dot_dimension_numbers<[1], [0], [0], [1], [0, 0, 1, 1], [], []>} : vector<256x4xbf16>, vector<4x128xbf16>, vector<256x128xf32> -> vector<256x128xf32>
    %80 = arith.addf %71, %79 : vector<256x128xf32>
    %c0_74 = arith.constant 0 : index
    %c0_75 = arith.constant 0 : index
    %81 = vector.load %arg5[%c0_74, %c0_75] : memref<1x128xf32, #tpu.memory_space<vmem>>, vector<1x128xf32>
    %82 = vector.broadcast %81 : vector<1x128xf32> to vector<256x128xf32>
    %83 = arith.mulf %80, %82 : vector<256x128xf32>
    %c0_76 = arith.constant 0 : index
    %c0_77 = arith.constant 0 : index
    %84 = vector.load %arg6[%c0_76, %c0_77] : memref<1x128xf32, #tpu.memory_space<vmem>>, vector<1x128xf32>
    %85 = vector.broadcast %84 : vector<1x128xf32> to vector<256x128xf32>
    %86 = arith.addf %83, %85 : vector<256x128xf32>
    %87 = arith.negf %86 : vector<256x128xf32>
    %88 = math.exp %87 : vector<256x128xf32>
    %cst_78 = arith.constant 1.000000e+00 : f32
    %89 = vector.broadcast %cst_78 : f32 to vector<256x128xf32>
    %90 = arith.addf %89, %88 : vector<256x128xf32>
    %91 = arith.divf %89, %90 : vector<256x128xf32>
    %92 = arith.mulf %86, %91 : vector<256x128xf32>
    %93 = vector.shape_cast %92 : vector<256x128xf32> to vector<1x16x16x128xf32>
    %94 = vector.extract_strided_slice %93 {offsets = [0, 0, 0, 0], sizes = [1, 16, 16, 8], strides = [1, 1, 1, 1]} : vector<1x16x16x128xf32> to vector<1x16x16x8xf32>
    %95 = arith.truncf %94 : vector<1x16x16x8xf32> to vector<1x16x16x8xbf16>
    %c0_79 = arith.constant 0 : index
    %c0_80 = arith.constant 0 : index
    %c0_81 = arith.constant 0 : index
    %c0_82 = arith.constant 0 : index
    %96 = vector.load %arg7[%c0_79, %c0_80, %c0_81, %c0_82] : memref<1x16x16x8xbf16, #tpu.memory_space<vmem>>, vector<1x16x16x8xbf16>
    tpu.vector_store %arg7[%c0_79, %c0_80, %c0_81, %c0_82], %95 {strides = array<i32>} : memref<1x16x16x8xbf16, #tpu.memory_space<vmem>>, vector<1x16x16x8xbf16>,
    return
  }
  func.func @transform_0(%arg0: i32, %arg1: i32, %arg2: i32) -> (i32, i32, i32, i32) {
    %c0_i32 = arith.constant 0 : i32
    %c0_i32_0 = arith.constant 0 : i32
    %c0_i32_1 = arith.constant 0 : i32
    %c0_i32_2 = arith.constant 0 : i32
    return %arg0, %c0_i32, %c0_i32_0, %c0_i32_1 : i32, i32, i32, i32
  }
  func.func @transform_1(%arg0: i32, %arg1: i32, %arg2: i32) -> (i32, i32, i32, i32) {
    %c0_i32 = arith.constant 0 : i32
    %c0_i32_0 = arith.constant 0 : i32
    %c0_i32_1 = arith.constant 0 : i32
    %c0_i32_2 = arith.constant 0 : i32
    return %c0_i32, %c0_i32_0, %c0_i32_1, %arg1 : i32, i32, i32, i32
  }
  func.func @transform_2(%arg0: i32, %arg1: i32, %arg2: i32) -> (i32, i32) {
    %c0_i32 = arith.constant 0 : i32
    %c0_i32_0 = arith.constant 0 : i32
    return %c0_i32, %arg1 : i32, i32
  }
  func.func @transform_3(%arg0: i32, %arg1: i32, %arg2: i32) -> (i32, i32) {
    %c0_i32 = arith.constant 0 : i32
    %c0_i32_0 = arith.constant 0 : i32
    return %c0_i32, %arg1 : i32, i32
  }
  func.func @transform_4(%arg0: i32, %arg1: i32, %arg2: i32) -> (i32, i32, i32, i32) {
    %c0_i32 = arith.constant 0 : i32
    %c0_i32_0 = arith.constant 0 : i32
    return %arg0, %arg2, %c0_i32, %arg1 : i32, i32, i32, i32
  }
}

</mosaic_0001>

<bundles_post_ra>
// kernel: tpu_custom_call.1
= control target key start
LH: loop header
LB: loop body
LE: loop exit
PB: predicated region body
PF: predicated region fallthrough
CT: control target
= control target key end

     0   :  { %s6836_s15 = smov 0   ;;  %s6838_s16 = smov 0   ;;  %s9703_s0 = inlined_call_operand.vmem [shape: bf16[2,18,18,4], index: 0, kind: input, shape index: {}]   ;;  %s9704_s1 = inlined_call_operand.vmem [shape: bf16[3,3,4,128], index: 1, kind: input, shape index: {}]   ;;  %s9705_s2 = inlined_call_operand.vmem [shape: f32[1,128], index: 2, kind: input, shape index: {}]   ;;  %s9706_s3 = inlined_call_operand.vmem [shape: f32[1,128], index: 3, kind: input, shape index: {}]   ;;  %s9707_s4 = inlined_call_operand.vmem [shape: bf16[2,16,16,8], index: 4, kind: output, shape index: {}]  }
   0x1   :  { %s6840_s17 = smov 0  }
   0x2 LB: > { %s33_s18 = sadd.s32 1, %s6805_s16  ;;  %p5472_p0 = scmp.ge.s32.totalorder %s6809_s17, 1  ;;  %s6809_s17 = sphi %s6840_s17, %s14_s17   ;;  %s6805_s16 = sphi %s6838_s16, %s9949_s16   ;;  %s6801_s15 = sphi %s6836_s15, %s9948_s15  }
   0x3   : > { %p35_p1 = scmp.ge.s32.totalorder %s33_s18, 2  ;;  %p210_p2 = scmp.lt.s32.totalorder %s6809_s17, 3 }
   0x5   : > { %s9951_s18 = smov (%p35_p1, %s33_s18), 0  ;;  %p211_p3 = pnand %p5472_p0, %p210_p2 }
   0x7   : > { %214 = sbr.rel (%p211_p3) target bundleno = 605 (0x25d), region = 36 }
   0xc   : > { %v5476_v0 = vld [vmem:[%s9704_s1 + $0x2] sm:$0x3]  ;;  %vm823_vm0 = vcmask 1041408   ;;  %p254_p4 = scmp.lt.s32.totalorder %s6801_s15, 1  ;;  %v320_v2 = vld [vmem:[%s9704_s1] sm:$0x3] }
   0xd   : > { %6575 = vmatprep.subr.msk.bf16.mxu1 %vm823_vm0, %v5476_v0  ;;  %6574 = vmatprep.subr.msk.bf16.mxu0 %vm823_vm0, %v5476_v0  ;;  %v825_v1 = vsel %vm823_vm0, %v5476_v0, 0  ;;  %v5557_v3 = vld [vmem:[%s9704_s1 + $0x4] sm:$0x3]  ;;  %vm337_vm1 = vsmask.f32 3328  ;;  %v6877_v4 = vsel %vm823_vm0, %v320_v2, 0 }
   0xe   : > { %6573 = vmatpush3.bf16.msra.mxu1 %v825_v1  ;;  %6267 = vmatpush3.bf16.msra.mxu0 %v825_v1  ;;  %s9953_s15 = smov (!%p254_p4, %s6801_s15), 1  ;;  %vm338_vm2 = vsmask.f32 7440  ;;  %vm774_vm3 = vcmask 31744   ;;  %v6903_v16 = vsel %vm823_vm0, %v5557_v3, 0  ;;  %vm1328_vm5 = vcmask 1042432  }
   0xf   : > { %6576 = vmatprep.subr.msk.bf16.mxu1 %vm823_vm0, %v320_v2  ;;  %6577 = vmatprep.subr.msk.bf16.mxu0 %vm823_vm0, %v5557_v3  ;;  %s6584_s25 = smul.u32 216, %s9953_s15  ;;  %vm6918_vm4 = vmor %vm337_vm1, %vm338_vm2  ;;  %vm1329_vm6 = vcmask 1046532   ;;  %vm5283_vm8 = vcmask 60416   ;;  %s6080_s23 = sshll.u32 %s9953_s15, 7 }
  0x10   : > { %vm7204_vm7 = vmor %vm1328_vm5, %vm1329_vm6 }
  0x11   : > { %s6874_s28 = scalar_lea.vmem %s9703_s0, %s6584_s25  ;;  %s9494_s25 = scalar_lea.vmem %s9707_s4, %s6080_s23 }
  0x12   : > { %v6880_v5 = vld [vmem:[%s6874_s28] sm:$0xf]  ;;  %v6883_v6 = vld [vmem:[%s6874_s28 + $0x4] sm:$0xf]  ;;  %v6886_v7 = vld [vmem:[%s6874_s28 + $0x8] sm:$0x1] }
  0x13   : > { %v341_v8 = vshrl.u32 %v6880_v5, 16  ;;  %v344_v9 = vshll.u32 %v6880_v5, 16  ;;  %v350_v10 = vshll.u32 %v6883_v6, 16  ;;  %v354_v11 = vshrl.u32 %v6883_v6, 16  ;;  %v6893_v12 = vld [vmem:[%s6874_s28 + $0x60] sm:$0xf] }
  0x14   : > { %v360_v13 = vshll.u32 %v6886_v7, 16  ;;  %v6897_v14 = vld [vmem:[%s6874_s28 + $0x64] sm:$0xf]  ;;  %v6900_v15 = vld [vmem:[%s6874_s28 + $0x68] sm:$0x1]  ;;  %v533_v22 = vshrl.u32 %v6893_v12, 16 }
  0x15   : > { %v343_v17 = vrot.slane %v341_v8, 4  ;;  %v346_v18 = vrot.slane %v344_v9, 5  ;;  %v352_v19 = vrot.slane %v350_v10, 5  ;;  %v356_v20 = vrot.slane %v354_v11, 4  ;;  %v6911_v29 = vld [vmem:[%s6874_s28 + $0xc] sm:$0xf] }
  0x16   : > { %v362_v21 = vrot.slane %v360_v13, 5  ;;  %v536_v23 = vshll.u32 %v6893_v12, 16  ;;  %v542_v24 = vshll.u32 %v6897_v14, 16  ;;  %v546_v27 = vshrl.u32 %v6897_v14, 16  ;;  %v6914_v30 = vld [vmem:[%s6874_s28 + $0x10] sm:$0xf] }
  0x17   : > { %v347_v25 = vor.u32 %v346_v18, %v343_v17  ;;  %v357_v26 = vor.u32 %v356_v20, %v352_v19  ;;  %v552_v28 = vshll.u32 %v6900_v15, 16  ;;  %v535_v33 = vrot.slane %v533_v22, 4  ;;  %v6924_v41 = vld [vmem:[%s6874_s28 + $0x14] sm:$0x1]  ;;  %v6935_v53 = vld [vmem:[%s6874_s28 + $0x6c] sm:$0xf] }
  0x18   : > { %v538_v34 = vrot.slane %v536_v23, 5  ;;  %v544_v35 = vrot.slane %v542_v24, 5  ;;  %v548_v38 = vrot.slane %v546_v27, 4  ;;  %v365_v42 = vshrl.u32 %v6911_v29, 16  ;;  %v6939_v58 = vld [vmem:[%s6874_s28 + $0x70] sm:$0xf] }
  0x19   : > { %v348_v36 = vrot.slane %v347_v25, 4  ;;  %v358_v37 = vrot.slane %v357_v26, 4  ;;  %v554_v39 = vrot.slane %v552_v28, 5  ;;  %v368_v43 = vshll.u32 %v6911_v29, 16  ;;  %v6947_v63 = vld [vmem:[%s6874_s28 + $0x74] sm:$0x1] }
  0x1a   : > { %v539_v40 = vor.u32 %v538_v34, %v535_v33  ;;  %v374_v44 = vshll.u32 %v6914_v30, 16  ;;  %v549_v47 = vor.u32 %v548_v38, %v544_v35  ;;  %v378_v48 = vshrl.u32 %v6914_v30, 16  ;;  %v6953_v8 = vld [vmem:[%s6874_s28 + $0x18] sm:$0xf]  ;;  %v6966_v25 = vld [vmem:[%s6874_s28 + $0x20] sm:$0x1] }
  0x1b   : > { %v353_v45 = vsel %vm6918_vm4, %v348_v36, %v352_v19  ;;  %v363_v46 = vsel %vm6918_vm4, %v358_v37, %v362_v21  ;;  %v367_v51 = vrot.slane %v365_v42, 4  ;;  %v370_v52 = vrot.slane %v368_v43, 5  ;;  %v6960_v21 = vld [vmem:[%s6874_s28 + $0x1c] sm:$0xf] }
  0x1c   : > { %v5477_v49 = vcombine.low %v353_v45, %v363_v46  ;;  %v540_v50 = vrot.slane %v539_v40, 4  ;;  %v550_v54 = vrot.slane %v549_v47, 4  ;;  %v376_v55 = vrot.slane %v374_v44, 5  ;;  %v6979_v40 = vld [vmem:[%s9704_s1 + $0x8] sm:$0x3] }
  0x1d   : > { %v380_v56 = vrot.slane %v378_v48, 4  ;;  %v384_v57 = vshll.u32 %v6924_v41, 16  ;;  %v371_v60 = vor.u32 %v370_v52, %v367_v51  ;;  %v557_v3 = vshrl.u32 %v6935_v53, 16  ;;  %v6984_v46 = vld [vmem:[%s6874_s28 + $0x7c] sm:$0xf] }
  0x1e   : > { %6268 = vmatprep.mubr.msk.bf16.mxu0 %vm774_vm3, %v5477_v49  ;;  %v545_v59 = vsel %vm6918_vm4, %v540_v50, %v544_v35  ;;  %v555_v0 = vsel %vm6918_vm4, %v550_v54, %v554_v39  ;;  %v560_v11 = vshll.u32 %v6935_v53, 16  ;;  %v566_v13 = vshll.u32 %v6939_v58, 16  ;;  %v6973_v35 = vld [vmem:[%s6874_s28 + $0x78] sm:$0xf] }
  0x1f   : > { %v381_v1 = vor.u32 %v380_v56, %v376_v55  ;;  %v386_v2 = vrot.slane %v384_v57, 5  ;;  %v5485_v9 = vcombine.low %v545_v59, %v555_v0  ;;  %v372_v10 = vrot.slane %v371_v60, 4  ;;  %v6991_v56 = vld [vmem:[%s6874_s28 + $0x80] sm:$0x1] }
  0x20   : > { %v559_v18 = vrot.slane %v557_v3, 4  ;;  %v570_v19 = vshrl.u32 %v6939_v58, 16  ;;  %v576_v20 = vshll.u32 %v6947_v63, 16  ;;  %v562_v23 = vrot.slane %v560_v11, 5  ;;  %9743 = vst [vmem:[#allocation2_spill] sm:$0xff] %v6991_v56 }
  0x21   : > { %v382_v17 = vrot.slane %v381_v1, 4  ;;  %6284 = vmatprep.mubr.msk.bf16.mxu1 %vm774_vm3, %v5485_v9  ;;  %v377_v22 = vsel %vm6918_vm4, %v372_v10, %v376_v55  ;;  %v568_v24 = vrot.slane %v566_v13, 5  ;;  %v389_v26 = vshrl.u32 %v6953_v8, 16  ;;  %v6997_v1 = vld [vmem:[%s6874_s28 + $0x24] sm:$0xf] }
  0x22   : > { %v572_v28 = vrot.slane %v570_v19, 4  ;;  %v578_v33 = vrot.slane %v576_v20, 5  ;;  %v392_v34 = vshll.u32 %v6953_v8, 16  ;;  %v563_v37 = vor.u32 %v562_v23, %v559_v18  ;;  %v7005_v10 = vld [vmem:[%s6874_s28 + $0x28] sm:$0xf] }
  0x23   : > { %v387_v27 = vsel %vm6918_vm4, %v382_v17, %v386_v2  ;;  %v391_v38 = vrot.slane %v389_v26, 4  ;;  %v398_v39 = vshll.u32 %v6960_v21, 16  ;;  %v402_v44 = vshrl.u32 %v6960_v21, 16  ;;  %v7011_v19 = vld [vmem:[%s9704_s1 + $0x6] sm:$0x3] }
  0x24   : > { %v5478_v36 = vcombine.low %v377_v22, %v387_v27  ;;  %v573_v42 = vor.u32 %v572_v28, %v568_v24  ;;  %v394_v43 = vrot.slane %v392_v34, 5  ;;  %v408_v45 = vshll.u32 %v6966_v25, 16 }
  0x25   : > { %v564_v47 = vrot.slane %v563_v37, 4  ;;  %v400_v48 = vrot.slane %v398_v39, 5  ;;  %v581_v49 = vshrl.u32 %v6973_v35, 16  ;;  %v584_v50 = vshll.u32 %v6973_v35, 16 }
  0x26   : > { %6269 = vmatmul.mubr.msk.bf16.vlgmr.msra.gmra.mxu0 %vm774_vm3, %v5478_v36  ;;  %v574_v51 = vrot.slane %v573_v42, 4  ;;  %v395_v52 = vor.u32 %v394_v43, %v391_v38  ;;  %v404_v54 = vrot.slane %v402_v44, 4  ;;  %v410_v55 = vrot.slane %v408_v45, 5  ;;  %v7023_v36 = vld [vmem:[%s6874_s28 + $0x84] sm:$0xf] }
  0x27   : > { %6335 = vmatpush3.bf16.msra.mxu0 %v6903_v16  ;;  %v569_v57 = vsel %vm6918_vm4, %v564_v47, %v568_v24  ;;  %v583_v59 = vrot.slane %v581_v49, 4  ;;  %v586_v60 = vrot.slane %v584_v50, 5  ;;  %v590_v0 = vshll.u32 %v6984_v46, 16  ;;  %v7016_v24 = vld [vmem:[%s6874_s28 + $0x2c] sm:$0x1] }
  0x28   : > { %6579 = vmatprep.subr.msk.bf16.mxu0 %vm823_vm0, %v6979_v40  ;;  %v579_v16 = vsel %vm6918_vm4, %v574_v51, %v578_v33  ;;  %v396_v2 = vrot.slane %v395_v52, 4  ;;  %v405_v3 = vor.u32 %v404_v54, %v400_v48  ;;  %v594_v9 = vshrl.u32 %v6984_v46, 16  ;;  %v7030_v43 = vld [vmem:[%s6874_s28 + $0x88] sm:$0xf]  ;;  %v7038_v51 = vld [vmem:[%s6874_s28 + $0x8c] sm:$0x1] }
  0x29   : > { %v5486_v11 = vcombine.low %v569_v57, %v579_v16  ;;  %v587_v13 = vor.u32 %v586_v60, %v583_v59  ;;  %v592_v17 = vrot.slane %v590_v0, 5  ;;  %v600_v18 = vshll.u32 %v6991_v56, 16  ;;  %9744 = vst [vmem:[#allocation3_spill] sm:$0xff] %v7038_v51  ;;  %v7046_v60 = vld [vmem:[%s6874_s28 + $0x30] sm:$0xf] }
  0x2a   : > { %v401_v20 = vsel %vm6918_vm4, %v396_v2, %v400_v48  ;;  %v406_v22 = vrot.slane %v405_v3, 4  ;;  %v596_v23 = vrot.slane %v594_v9, 4  ;;  %v413_v26 = vshrl.u32 %v6997_v1, 16  ;;  %v7051_v9 = vld [vmem:[%s6874_s28 + $0x34] sm:$0xf] }
  0x2b   : > { %6285 = vmatmul.mubr.msk.bf16.vlgmr.msra.gmra.mxu1 %vm774_vm3, %v5486_v11  ;;  %v588_v27 = vrot.slane %v587_v13, 4  ;;  %v602_v28 = vrot.slane %v600_v18, 5  ;;  %v416_v33 = vshll.u32 %v6997_v1, 16  ;;  %v422_v34 = vshll.u32 %v7005_v10, 16 }
  0x2c   : > { %6301 = vmatpush3.bf16.msra.mxu1 %v6877_v4  ;;  %v411_v37 = vsel %vm6918_vm4, %v406_v22, %v410_v55  ;;  %v597_v38 = vor.u32 %v596_v23, %v592_v17  ;;  %v415_v39 = vrot.slane %v413_v26, 4  ;;  %v426_v42 = vshrl.u32 %v7005_v10, 16 }
  0x2d   : > { %v5479_v44 = vcombine.low %v401_v20, %v411_v37  ;;  %v593_v45 = vsel %vm6918_vm4, %v588_v27, %v592_v17  ;;  %v418_v47 = vrot.slane %v416_v33, 5  ;;  %v424_v48 = vrot.slane %v422_v34, 5  ;;  %6578 = vmatprep.subr.msk.bf16.mxu1 %vm823_vm0, %v7011_v19  ;;  %v7059_v33 = vld [vmem:[%s6874_s28 + $0x38] sm:$0x1] }
  0x2e   : > { %v598_v4 = vrot.slane %v597_v38, 4  ;;  %v428_v49 = vrot.slane %v426_v42, 4  ;;  %v432_v50 = vshll.u32 %v7016_v24, 16  ;;  %v605_v52 = vshrl.u32 %v7023_v36, 16  ;;  %v7064_v38 = vld [vmem:[%s6874_s28 + $0x90] sm:$0xf] }
  0x2f   : > { %6272 = vmatprep.mubr.msk.bf16.mxu0 %vm774_vm3, %v5479_v44  ;;  %v419_v54 = vor.u32 %v418_v47, %v415_v39  ;;  %v608_v55 = vshll.u32 %v7023_v36, 16  ;;  %v614_v57 = vshll.u32 %v7030_v43, 16  ;;  %v618_v59 = vshrl.u32 %v7030_v43, 16  ;;  %9745 = vst [vmem:[#allocation4_spill] sm:$0xff] %v7064_v38  ;;  %v7069_v47 = vld [vmem:[%s6874_s28 + $0x94] sm:$0xf] }
  0x30   : > { %v603_v0 = vsel %vm6918_vm4, %v598_v4, %v602_v28  ;;  %v429_v16 = vor.u32 %v428_v49, %v424_v48  ;;  %v434_v2 = vrot.slane %v432_v50, 5  ;;  %v607_v3 = vrot.slane %v605_v52, 4  ;;  %9746 = vst [vmem:[#allocation5_spill] sm:$0xff] %v7069_v47 }
  0x31   : > { %v5487_v11 = vcombine.low %v593_v45, %v603_v0  ;;  %v420_v13 = vrot.slane %v419_v54, 4  ;;  %v610_v17 = vrot.slane %v608_v55, 5  ;;  %v616_v18 = vrot.slane %v614_v57, 5 }
  0x32   : > { %v430_v20 = vrot.slane %v429_v16, 4  ;;  %v620_v22 = vrot.slane %v618_v59, 4  ;;  %v624_v23 = vshll.u32 %v7038_v51, 16  ;;  %v437_v26 = vshrl.u32 %v7046_v60, 16  ;;  %v7078_v16 = vld [vmem:[%s6874_s28 + $0x98] sm:$0x1] }
  0x33   : > { %6288 = vmatprep.mubr.msk.bf16.mxu1 %vm774_vm3, %v5487_v11  ;;  %v425_v27 = vsel %vm6918_vm4, %v420_v13, %v424_v48  ;;  %v611_v28 = vor.u32 %v610_v17, %v607_v3  ;;  %v440_v34 = vshll.u32 %v7046_v60, 16  ;;  %v446_v37 = vshll.u32 %v7051_v9, 16  ;;  %9747 = vst [vmem:[#allocation6_spill] sm:$0xff] %v7078_v16  ;;  %v7083_v11 = vld [vmem:[%s6874_s28 + $0x3c] sm:$0xf] }
  0x34   : > { %v435_v39 = vsel %vm6918_vm4, %v430_v20, %v434_v2  ;;  %v621_v42 = vor.u32 %v620_v22, %v616_v18  ;;  %v626_v44 = vrot.slane %v624_v23, 5  ;;  %v439_v45 = vrot.slane %v437_v26, 4  ;;  %v7088_v23 = vld [vmem:[%s6874_s28 + $0x40] sm:$0xf]  ;;  %v1281_v51 = vld [vmem:[%s6874_s28 + $0xc] sm:$0xe] }
  0x35   : > { %v5480_v48 = vcombine.low %v425_v27, %v435_v39  ;;  %v612_v4 = vrot.slane %v611_v28, 4  ;;  %v442_v49 = vrot.slane %v440_v34, 5  ;;  %v448_v50 = vrot.slane %v446_v37, 5 }
  0x36   : > { %v622_v52 = vrot.slane %v621_v42, 4  ;;  %v450_v54 = vshrl.u32 %v7051_v9, 16  ;;  %v456_v55 = vshll.u32 %v7059_v33, 16  ;;  %v629_v57 = vshrl.u32 %v7064_v38, 16 }
  0x37   : > { %6273 = vmatmul.mubr.msk.bf16.gmra.mxu0 %vm774_vm3, %v5480_v48  ;;  %v617_v59 = vsel %vm6918_vm4, %v612_v4, %v616_v18  ;;  %v443_v0 = vor.u32 %v442_v49, %v439_v45  ;;  %v632_v2 = vshll.u32 %v7064_v38, 16  ;;  %v638_v3 = vshll.u32 %v7069_v47, 16  ;;  %v7097_v48 = vld [vmem:[%s6874_s28 + $0x44] sm:$0x1] }
  0x38   : > { %v627_v13 = vsel %vm6918_vm4, %v622_v52, %v626_v44  ;;  %v452_v17 = vrot.slane %v450_v54, 4  ;;  %v458_v20 = vrot.slane %v456_v55, 5  ;;  %v631_v22 = vrot.slane %v629_v57, 4  ;;  %v7102_v52 = vld [vmem:[%s6874_s28 + $0x9c] sm:$0xf] }
  0x39   : > { %v5488_v18 = vcombine.low %v617_v59, %v627_v13  ;;  %v444_v26 = vrot.slane %v443_v0, 4  ;;  %v634_v27 = vrot.slane %v632_v2, 5  ;;  %v640_v28 = vrot.slane %v638_v3, 5  ;;  %9748 = vst [vmem:[#allocation7_spill] sm:$0xff] %v7102_v52  ;;  %v7106_v13 = vld [vmem:[%s6874_s28 + $0xa0] sm:$0xf] }
  0x3a   : > { %v453_v34 = vor.u32 %v452_v17, %v448_v50  ;;  %v642_v37 = vshrl.u32 %v7069_v47, 16  ;;  %v648_v39 = vshll.u32 %v7078_v16, 16  ;;  %v461_v42 = vshrl.u32 %v7083_v11, 16  ;;  %9749 = vst [vmem:[#allocation8_spill] sm:$0xff] %v7106_v13 }
  0x3b   : > { %6289 = vmatmul.mubr.msk.bf16.gmra.mxu1 %vm774_vm3, %v5488_v18  ;;  %v449_v44 = vsel %vm6918_vm4, %v444_v26, %v448_v50  ;;  %v635_v45 = vor.u32 %v634_v27, %v631_v22  ;;  %v464_v4 = vshll.u32 %v7083_v11, 16  ;;  %v470_v49 = vshll.u32 %v7088_v23, 16  ;;  %v7112_v26 = vld [vmem:[%s6874_s28 + $0xa4] sm:$0x1] }
  0x3c   : > { %v454_v54 = vrot.slane %v453_v34, 4  ;;  %v644_v55 = vrot.slane %v642_v37, 4  ;;  %v650_v57 = vrot.slane %v648_v39, 5  ;;  %v463_v59 = vrot.slane %v461_v42, 4  ;;  %9750 = vst [vmem:[#allocation9_spill] sm:$0xff] %v7112_v26 }
  0x3d   : > { %v636_v0 = vrot.slane %v635_v45, 4  ;;  %v466_v2 = vrot.slane %v464_v4, 5  ;;  %v472_v3 = vrot.slane %v470_v49, 5  ;;  %v474_v50 = vshrl.u32 %v7088_v23, 16  ;;  %v7116_v34 = vld [vmem:[%s6874_s28 + $0x48] sm:$0xf] }
  0x3e   : > { %v459_v17 = vsel %vm6918_vm4, %v454_v54, %v458_v20  ;;  %v645_v22 = vor.u32 %v644_v55, %v640_v28  ;;  %v480_v18 = vshll.u32 %v7097_v48, 16  ;;  %v653_v27 = vshrl.u32 %v7102_v52, 16 }
  0x3f   : > { %v5481_v37 = vcombine.low %v449_v44, %v459_v17  ;;  %v641_v39 = vsel %vm6918_vm4, %v636_v0, %v640_v28  ;;  %v467_v42 = vor.u32 %v466_v2, %v463_v59  ;;  %v476_v45 = vrot.slane %v474_v50, 4  ;;  %v7125_v17 = vld [vmem:[%s6874_s28 + $0x4c] sm:$0xf]  ;;  %v7131_v2 = vld [vmem:[%s6874_s28 + $0x50] sm:$0x1] }
  0x40   : > { %v646_v4 = vrot.slane %v645_v22, 4  ;;  %v482_v49 = vrot.slane %v480_v18, 5  ;;  %v655_v20 = vrot.slane %v653_v27, 4  ;;  %v656_v54 = vshll.u32 %v7102_v52, 16 }
  0x41   : > { %6276 = vmatprep.mubr.msk.bf16.mxu0 %vm774_vm3, %v5481_v37  ;;  %v468_v55 = vrot.slane %v467_v42, 4  ;;  %v477_v62 = vor.u32 %v476_v45, %v472_v3  ;;  %v662_v32 = vshll.u32 %v7106_v13, 16  ;;  %v666_v44 = vshrl.u32 %v7106_v13, 16  ;;  %v7137_v42 = vld [vmem:[%s6874_s28 + $0xa8] sm:$0xf] }
  0x42   : > { %v651_v28 = vsel %vm6918_vm4, %v646_v4, %v650_v57  ;;  %v658_v59 = vrot.slane %v656_v54, 5  ;;  %v672_v0 = vshll.u32 %v7112_v26, 16  ;;  %v485_v50 = vshrl.u32 %v7116_v34, 16  ;;  %9751 = vst [vmem:[#allocation10_spill] sm:$0xff] %v7137_v42 }
  0x43   : > { %v5489_v22 = vcombine.low %v641_v39, %v651_v28  ;;  %v473_v18 = vsel %vm6918_vm4, %v468_v55, %v472_v3  ;;  %v478_v27 = vrot.slane %v477_v62, 4  ;;  %v664_v37 = vrot.slane %v662_v32, 5 }
  0x44   : > { %v659_v45 = vor.u32 %v658_v59, %v655_v20  ;;  %v668_v61 = vrot.slane %v666_v44, 4  ;;  %v674_v57 = vrot.slane %v672_v0, 5  ;;  %v487_v4 = vrot.slane %v485_v50, 4  ;;  %v7147_v44 = vld [vmem:[%s6874_s28 + $0xac] sm:$0xf] }
  0x45   : > { %6292 = vmatprep.mubr.msk.bf16.mxu1 %vm774_vm3, %v5489_v22  ;;  %v483_v54 = vsel %vm6918_vm4, %v478_v27, %v482_v49  ;;  %v488_v39 = vshll.u32 %v7116_v34, 16  ;;  %v494_v28 = vshll.u32 %v7125_v17, 16  ;;  %v498_v62 = vshrl.u32 %v7125_v17, 16  ;;  %9752 = vst [vmem:[#allocation11_spill] sm:$0xff] %v7147_v44  ;;  %v7150_v22 = vld [vmem:[%s6874_s28 + $0xb0] sm:$0x1] }
  0x46   : > { %v5482_v3 = vcombine.low %v473_v18, %v483_v54  ;;  %v660_v32 = vrot.slane %v659_v45, 4  ;;  %v669_v55 = vor.u32 %v668_v61, %v664_v37  ;;  %v504_v20 = vshll.u32 %v7131_v2, 16  ;;  %9753 = vst [vmem:[#allocation12_spill] sm:$0xff] %v7150_v22 }
  0x47   : > { %v490_v59 = vrot.slane %v488_v39, 5  ;;  %v496_v0 = vrot.slane %v494_v28, 5  ;;  %v500_v50 = vrot.slane %v498_v62, 4  ;;  %v677_v49 = vshrl.u32 %v7137_v42, 16  ;;  %v7159_v62 = vld [vmem:[%s6874_s28 + $0x54] sm:$0xf] }
  0x48   : > { %6277 = vmatmul.mubr.msk.bf16.gmra.mxu0 %vm774_vm3, %v5482_v3  ;;  %v665_v18 = vsel %vm6918_vm4, %v660_v32, %v664_v37  ;;  %v670_v27 = vrot.slane %v669_v55, 4  ;;  %v506_v61 = vrot.slane %v504_v20, 5  ;;  %v680_v45 = vshll.u32 %v7137_v42, 16  ;;  %v7166_v55 = vld [vmem:[%s6874_s28 + $0x58] sm:$0xf] }
  0x49   : > { %v491_v54 = vor.u32 %v490_v59, %v487_v4  ;;  %v501_v56 = vor.u32 %v500_v50, %v496_v0  ;;  %v679_v39 = vrot.slane %v677_v49, 4  ;;  %v686_v28 = vshll.u32 %v7147_v44, 16  ;;  %v7169_v49 = vld [vmem:[%s6874_s28 + $0x5c] sm:$0x1] }
  0x4a   : > { %v675_v3 = vsel %vm6918_vm4, %v670_v27, %v674_v57  ;;  %v682_v26 = vrot.slane %v680_v45, 5  ;;  %v690_v37 = vshrl.u32 %v7147_v44, 16  ;;  %v696_v32 = vshll.u32 %v7150_v22, 16  ;;  %v1280_v22 = vld [vmem:[%s6874_s28] sm:$0xe] }
  0x4b   : > { %v5490_v4 = vcombine.low %v665_v18, %v675_v3  ;;  %v492_v20 = vrot.slane %v491_v54, 4  ;;  %v502_v59 = vrot.slane %v501_v56, 4  ;;  %v688_v50 = vrot.slane %v686_v28, 5  ;;  %v7180_v54 = vld [vmem:[%s6874_s28 + $0xb4] sm:$0xf] }
  0x4c   : > { %v683_v42 = vor.u32 %v682_v26, %v679_v39  ;;  %v692_v52 = vrot.slane %v690_v37, 4  ;;  %v698_v13 = vrot.slane %v696_v32, 5  ;;  %v509_v57 = vshrl.u32 %v7159_v62, 16  ;;  %9754 = vst [vmem:[#allocation13_spill] sm:$0xff] %v7180_v54  ;;  %v7183_v37 = vld [vmem:[%s6874_s28 + $0xb8] sm:$0xf] }
  0x4d   : > { %6293 = vmatmul.mubr.msk.bf16.gmra.mxu1 %vm774_vm3, %v5490_v4  ;;  %v497_v27 = vsel %vm6918_vm4, %v492_v20, %v496_v0  ;;  %v507_v18 = vsel %vm6918_vm4, %v502_v59, %v506_v61  ;;  %v512_v56 = vshll.u32 %v7159_v62, 16  ;;  %v518_v45 = vshll.u32 %v7166_v55, 16  ;;  %v7188_v61 = vld [vmem:[%s6874_s28 + $0xbc] sm:$0x1] }
  0x4e   : > { %v5483_v26 = vcombine.low %v497_v27, %v507_v18  ;;  %v684_v39 = vrot.slane %v683_v42, 4  ;;  %v693_v28 = vor.u32 %v692_v52, %v688_v50  ;;  %v511_v3 = vrot.slane %v509_v57, 4 }
  0x4f   : > { %v514_v32 = vrot.slane %v512_v56, 5  ;;  %v520_v4 = vrot.slane %v518_v45, 5  ;;  %v522_v0 = vshrl.u32 %v7166_v55, 16  ;;  %v528_v20 = vshll.u32 %v7169_v49, 16 }
  0x50   : > { %6280 = vmatprep.mubr.msk.bf16.mxu0 %vm774_vm3, %v5483_v26  ;;  %v689_v59 = vsel %vm6918_vm4, %v684_v39, %v688_v50  ;;  %v694_v27 = vrot.slane %v693_v28, 4  ;;  %v701_v52 = vshrl.u32 %v7180_v54, 16  ;;  %v704_v42 = vshll.u32 %v7180_v54, 16 }
  0x51   : > { %v515_v57 = vor.u32 %v514_v32, %v511_v3  ;;  %v524_v18 = vrot.slane %v522_v0, 4  ;;  %v530_v56 = vrot.slane %v528_v20, 5  ;;  %v710_v45 = vshll.u32 %v7183_v37, 16 }
  0x52   : > { %v699_v44 = vsel %vm6918_vm4, %v694_v27, %v698_v13  ;;  %v703_v16 = vrot.slane %v701_v52, 4  ;;  %v706_v26 = vrot.slane %v704_v42, 5  ;;  %v714_v38 = vshrl.u32 %v7183_v37, 16 }
  0x53   : > { %v5491_v50 = vcombine.low %v689_v59, %v699_v44  ;;  %v516_v39 = vrot.slane %v515_v57, 4  ;;  %v525_v28 = vor.u32 %v524_v18, %v520_v4  ;;  %v712_v47 = vrot.slane %v710_v45, 5  ;;  %v1282_v57 = vld [vmem:[%s6874_s28 + $0x18] sm:$0xe] }
  0x54   : > { %v707_v54 = vor.u32 %v706_v26, %v703_v16  ;;  %v716_v3 = vrot.slane %v714_v38, 4  ;;  %v720_v32 = vshll.u32 %v7188_v61, 16  ;;  %v5541_v13 = vrot.slane %v1280_v22, 9 }
  0x55   : > { %6296 = vmatprep.mubr.msk.bf16.mxu1 %vm774_vm3, %v5491_v50  ;;  %v521_v44 = vsel %vm6918_vm4, %v516_v39, %v520_v4  ;;  %v526_v20 = vrot.slane %v525_v28, 4  ;;  %v1333_v59 = vrot.slane %v6883_v6, 5  ;;  %v5510_v38 = vcombine.low %v6911_v29, %v6914_v30 }
  0x56   : > { %v708_v16 = vrot.slane %v707_v54, 4  ;;  %v717_v27 = vor.u32 %v716_v3, %v712_v47  ;;  %v722_v52 = vrot.slane %v720_v32, 5  ;;  %v5542_v42 = vrot.slane %v1281_v51, 9 }
  0x57   : > { %v531_v18 = vsel %vm6918_vm4, %v526_v20, %v530_v56  ;;  %v1334_v22 = vsel %vm7204_vm7, %v5541_v13, %v1333_v59  ;;  %v1335_v45 = vrot.slane %v1333_v59, 4  ;;  %v9757_v4 = vrot.slane %v6914_v30, 5 }
  0x58   : > { %v5484_v50 = vcombine.low %v521_v44, %v531_v18  ;;  %v713_v54 = vsel %vm6918_vm4, %v708_v16, %v712_v47  ;;  %v718_v39 = vrot.slane %v717_v27, 4  ;;  %v5509_v51 = vcombine.low %v6880_v5, %v6883_v6  ;;  %v1283_v27 = vld [vmem:[%s6874_s28 + $0x24] sm:$0xe] }
  0x59   : > { %v1342_v26 = vrot.slane %v9757_v4, 4  ;;  %v9758_v28 = vrot.slane %v6886_v7, 5  ;;  %v9759_v3 = vmov %v9757_v4  ;;  %v5511_v13 = vcombine.low %v6953_v8, %v6960_v21  ;;  %v1285_v4 = vld [vmem:[%s6874_s28 + $0x3c] sm:$0xe] }
  0x5a   : > { %v1341_v32 = vsel %vm7204_vm7, %v5542_v42, %v9759_v3  ;;  %v5543_v44 = vrot.slane %v1282_v57, 9  ;;  %6281 = vmatmul.mubr.msk.bf16.gmra.mxu0 %vm774_vm3, %v5484_v50  ;;  %v723_v47 = vsel %vm6918_vm4, %v718_v39, %v722_v52  ;;  %v9760_v6 = vrot.slane %v6924_v41, 5  ;;  %v1284_v42 = vld [vmem:[%s6874_s28 + $0x30] sm:$0xe]  ;;  %v1286_v39 = vld [vmem:[%s6874_s28 + $0x48] sm:$0xe] }
  0x5b   : > { %v1337_v56 = vsel %vm7204_vm7, %v1335_v45, %v9758_v28  ;;  %v1347_v20 = vrot.slane %v6960_v21, 5  ;;  %v5492_v59 = vcombine.low %v713_v54, %v723_v47  ;;  %v1350_v16 = vrot.slane %v6966_v25, 5  ;;  %v1287_v47 = vld [vmem:[%s6874_s28 + $0x54] sm:$0xe]  ;;  %v7499_v21 = vld [vmem:[%s6874_s28 + $0x2c] sm:$0x1] }
  0x5c   : > { %v5558_v5 = vcombine.low %v1334_v22, %v1337_v56  ;;  %v1344_v7 = vsel %vm7204_vm7, %v1342_v26, %v9760_v6  ;;  %v1904_v52 = vsel %vm823_vm0, %v7011_v19, 0  ;;  %v1354_v18 = vrot.slane %v7005_v10, 5 }
  0x5d   : > { %v1348_v41 = vsel %vm7204_vm7, %v5543_v44, %v1347_v20  ;;  %v1349_v57 = vrot.slane %v1347_v20, 4  ;;  %6297 = vmatmul.mubr.msk.bf16.gmra.mxu1 %vm774_vm3, %v5492_v59  ;;  %v5559_v22 = vcombine.low %v1341_v32, %v1344_v7  ;;  %v2630_v25 = vsel %vm823_vm0, %v6979_v40, 0 }
  0x5e   : > { %6336 = vmatprep.mubr.msk.bf16.mxu0 %vm774_vm3, %v5558_v5  ;;  %v1361_v45 = vrot.slane %v7051_v9, 5  ;;  %6302 = vmatprep.mubr.msk.bf16.mxu1 %vm774_vm3, %v5509_v51  ;;  %v5544_v26 = vrot.slane %v1283_v27, 9  ;;  %v1357_v50 = vrot.slane %v7016_v24, 5  ;;  %v5545_v54 = vrot.slane %v1284_v42, 9  ;;  %v7271_v24 = vld [vmem:[%s9704_s1 + $0xc] sm:$0x3] }
  0x5f   : > { %v1351_v19 = vsel %vm7204_vm7, %v1349_v57, %v1350_v16  ;;  %v1356_v56 = vrot.slane %v1354_v18, 4  ;;  %v1364_v32 = vrot.slane %v7059_v33, 5  ;;  %v5546_v44 = vrot.slane %v1285_v4, 9 }
  0x60   : > { %v5560_v28 = vcombine.low %v1348_v41, %v1351_v19  ;;  %v1363_v3 = vrot.slane %v1361_v45, 4  ;;  %v1368_v40 = vrot.slane %v7088_v23, 5  ;;  %v1392_v5 = vrot.slane %v6900_v15, 5 }
  0x61   : > { %v1371_v51 = vrot.slane %v7097_v48, 5  ;;  %v5547_v6 = vrot.slane %v1286_v39, 9  ;;  %v1375_v7 = vrot.slane %v7125_v17, 5  ;;  %v5512_v33 = vcombine.low %v6997_v1, %v7005_v10  ;;  %v1288_v1 = vld [vmem:[%s6874_s28 + $0x60] sm:$0xe] }
  0x62   : > { %6337 = vmatmul.mubr.msk.bf16.vlgmr.msra.gmra.mxu0 %vm774_vm3, %v5559_v22  ;;  %v1355_v20 = vsel %vm7204_vm7, %v5544_v26, %v1354_v18  ;;  %v1370_v59 = vrot.slane %v1368_v40, 4  ;;  %v1378_v16 = vrot.slane %v7131_v2, 5  ;;  %v1358_v48 = vsel %vm7204_vm7, %v1356_v56, %v1357_v50  ;;  %v7299_v22 = vld [vmem:[%s9704_s1 + $0xa] sm:$0x3]  ;;  %v7324_v50 = vld [vmem:[%s6874_s28 + $0x6c] sm:$0xe] }
  0x63   : > { %6403 = vmatpush3.bf16.msra.mxu0 %v2630_v25  ;;  %6340 = vmatprep.mubr.msk.bf16.mxu0 %vm774_vm3, %v5560_v28  ;;  %v1362_v27 = vsel %vm7204_vm7, %v5545_v54, %v1361_v45  ;;  %v1365_v42 = vsel %vm7204_vm7, %v1363_v3, %v1364_v32  ;;  %v1377_v41 = vrot.slane %v1375_v7, 4  ;;  %v7289_v10 = vsel %vm7204_vm7, %v5546_v44, %v1368_v40  ;;  %v1291_v39 = vld [vmem:[%s6874_s28 + $0x84] sm:$0xe]  ;;  %v7353_v44 = vld [vmem:[%s6874_s28 + $0x78] sm:$0xe] }
  0x64   : > { %v7293_v2 = vsel %vm7204_vm7, %v5547_v6, %v1375_v7  ;;  %v5548_v57 = vrot.slane %v1287_v47, 9  ;;  %v1382_v18 = vrot.slane %v7166_v55, 5  ;;  %6581 = vmatprep.subr.msk.bf16.mxu0 %vm823_vm0, %v7271_v24  ;;  %v7309_v25 = vsel %vm7204_vm7, %v1370_v59, %v1371_v51  ;;  %v1292_v40 = vld [vmem:[%s6874_s28 + $0x90] sm:$0xe] }
  0x65   : > { %6303 = vmatmul.mubr.msk.bf16.vlgmr.msra.gmra.mxu1 %vm774_vm3, %v5510_v38  ;;  %v7313_v45 = vsel %vm7204_vm7, %v1377_v41, %v1378_v16  ;;  %v1385_v4 = vrot.slane %v7169_v49, 5  ;;  %v1389_v19 = vrot.slane %v6897_v14, 5  ;;  %v5561_v29 = vcombine.low %v1355_v20, %v1358_v48  ;;  %v9761_v48 = vld [vmem:[#allocation3_spill] sm:$0xff] }
  0x66   : > { %6369 = vmatpush3.bf16.msra.mxu1 %v1904_v52  ;;  %6306 = vmatprep.mubr.msk.bf16.mxu1 %vm774_vm3, %v5511_v13  ;;  %v5513_v30 = vcombine.low %v7046_v60, %v7051_v9  ;;  %v1384_v38 = vrot.slane %v1382_v18, 4  ;;  %v5549_v26 = vrot.slane %v1288_v1, 9  ;;  %v5562_v49 = vcombine.low %v1362_v27, %v1365_v42  ;;  %v1293_v42 = vld [vmem:[%s6874_s28 + $0x9c] sm:$0xe] }
  0x67   : > { %v5514_v52 = vcombine.low %v7083_v11, %v7088_v23  ;;  %v5515_v8 = vcombine.low %v7116_v34, %v7125_v17  ;;  %6580 = vmatprep.subr.msk.bf16.mxu1 %vm823_vm0, %v7299_v22  ;;  %v5563_v60 = vcombine.low %v7289_v10, %v7309_v25  ;;  %v5564_v9 = vcombine.low %v7293_v2, %v7313_v45  ;;  %v9762_v10 = vld [vmem:[#allocation5_spill] sm:$0xff]  ;;  %v9763_v2 = vld [vmem:[#allocation4_spill] sm:$0xff] }
  0x68   : > { %v1391_v54 = vrot.slane %v1389_v19, 4  ;;  %v7343_v28 = vsel %vm7204_vm7, %v5548_v57, %v1382_v18  ;;  %v7347_v56 = vsel %vm7204_vm7, %v1384_v38, %v1385_v4  ;;  %v5550_v32 = vrot.slane %v7324_v50, 9  ;;  %v1294_v18 = vld [vmem:[%s6874_s28 + $0xa8] sm:$0xe]  ;;  %v9765_v38 = vld [vmem:[#allocation8_spill] sm:$0xff] }
  0x69   : > { %v7359_v47 = vsel %vm7204_vm7, %v5549_v26, %v1389_v19  ;;  %v1396_v51 = vrot.slane %v6939_v58, 5  ;;  %v1399_v6 = vrot.slane %v6947_v63, 5  ;;  %v5552_v59 = vrot.slane %v1291_v39, 9  ;;  %v9764_v19 = vld [vmem:[#allocation6_spill] sm:$0xff]  ;;  %v9766_v26 = vld [vmem:[#allocation7_spill] sm:$0xff] }
  0x6a   : > { %6341 = vmatmul.mubr.msk.bf16.gmra.mxu0 %vm774_vm3, %v5561_v29  ;;  %v1410_v16 = vrot.slane %v7030_v43, 5  ;;  %v1413_v27 = vrot.slane %v9761_v48, 5  ;;  %v5565_v41 = vcombine.low %v7343_v28, %v7347_v56  ;;  %v7377_v63 = vsel %vm7204_vm7, %v1391_v54, %v1392_v5  ;;  %v9768_v48 = vld [vmem:[#allocation11_spill] sm:$0xff] }
  0x6b   : > { %6344 = vmatprep.mubr.msk.bf16.mxu0 %vm774_vm3, %v5562_v49  ;;  %v5551_v1 = vrot.slane %v7353_v44, 9  ;;  %v5553_v4 = vrot.slane %v1292_v40, 9  ;;  %v1417_v15 = vrot.slane %v9762_v10, 5  ;;  %v1398_v5 = vrot.slane %v1396_v51, 4  ;;  %v5655_v57 = vld [vmem:[%s6874_s28 + $0xc] sm:$0xf] }
  0x6c   : > { %v7386_v25 = vsel %vm7204_vm7, %v5552_v59, %v1410_v16  ;;  %v1412_v45 = vrot.slane %v1410_v16, 4  ;;  %v1420_v29 = vrot.slane %v9764_v19, 5  ;;  %v5554_v49 = vrot.slane %v1293_v42, 9  ;;  %v9767_v59 = vld [vmem:[#allocation9_spill] sm:$0xff]  ;;  %v9769_v42 = vld [vmem:[#allocation10_spill] sm:$0xff] }
  0x6d   : > { %6307 = vmatmul.mubr.msk.bf16.gmra.mxu1 %vm774_vm3, %v5512_v33  ;;  %v1403_v33 = vrot.slane %v6984_v46, 5  ;;  %v7400_v39 = vsel %vm7204_vm7, %v5553_v4, %v1417_v15  ;;  %v1419_v44 = vrot.slane %v1417_v15, 4  ;;  %v1424_v40 = vrot.slane %v9765_v38, 5  ;;  %v9770_v15 = vld [vmem:[#allocation12_spill] sm:$0xff] }
  0x6e   : > { %6310 = vmatprep.mubr.msk.bf16.mxu1 %vm774_vm3, %v5513_v30  ;;  %v7396_v54 = vsel %vm7204_vm7, %v1412_v45, %v1413_v27  ;;  %v1427_v16 = vrot.slane %v9767_v59, 5  ;;  %v5555_v45 = vrot.slane %v1294_v18, 9  ;;  %v1431_v4 = vrot.slane %v9768_v48, 5 }
  0x6f   : > { %v7410_v27 = vsel %vm7204_vm7, %v1419_v44, %v1420_v29  ;;  %v1434_v50 = vrot.slane %v9770_v15, 5  ;;  %v7420_v19 = vsel %vm7204_vm7, %v5554_v49, %v1424_v40  ;;  %v1426_v7 = vrot.slane %v1424_v40, 4  ;;  %v9771_v29 = vld [vmem:[#allocation13_spill] sm:$0xff]  ;;  %v9772_v15 = vld [vmem:[#allocation2_spill] sm:$0xff]  ;;  %v7435_v49 = vld [vmem:[%s6874_s28 + $0x10] sm:$0xf] }
  0x70   : > { %v7427_v18 = vsel %vm7204_vm7, %v5550_v32, %v1396_v51  ;;  %v7432_v59 = vsel %vm7204_vm7, %v5555_v45, %v1431_v4  ;;  %v1433_v30 = vrot.slane %v1431_v4, 4  ;;  %v5658_v40 = vld [vmem:[%s6874_s28 + $0x18] sm:$0xf]  ;;  %v1405_v20 = vrot.slane %v1403_v33, 4 }
  0x71   : > { %v2148_v44 = vshrl.u32 %v5655_v57, 16  ;;  %v2151_v32 = vshll.u32 %v5655_v57, 16  ;;  %v5566_v51 = vcombine.low %v7359_v47, %v7377_v63  ;;  %v7450_v45 = vsel %vm7204_vm7, %v1398_v5, %v1399_v6  ;;  %v1295_v57 = vld [vmem:[%s6874_s28 + $0xb4] sm:$0xe]  ;;  %v7471_v47 = vld [vmem:[%s6874_s28 + $0x14] sm:$0x1] }
  0x72   : > { %6345 = vmatmul.mubr.msk.bf16.gmra.mxu0 %vm774_vm3, %v5563_v60  ;;  %v1406_v60 = vrot.slane %v9772_v15, 5  ;;  %v7465_v11 = vsel %vm7204_vm7, %v5551_v1, %v1403_v33  ;;  %v2157_v6 = vshll.u32 %v7435_v49, 16  ;;  %v5659_v63 = vld [vmem:[%s6874_s28 + $0x1c] sm:$0xf]  ;;  %v2161_v17 = vshrl.u32 %v7435_v49, 16 }
  0x73   : > { %6348 = vmatprep.mubr.msk.bf16.mxu0 %vm774_vm3, %v5564_v9  ;;  %v7440_v9 = vsel %vm7204_vm7, %v1426_v7, %v1427_v16  ;;  %v7456_v7 = vsel %vm7204_vm7, %v1433_v30, %v1434_v50  ;;  %v2150_v5 = vrot.slane %v2148_v44, 4  ;;  %v2153_v34 = vrot.slane %v2151_v32, 5  ;;  %v5661_v15 = vld [vmem:[%s6874_s28 + $0x24] sm:$0xf]  ;;  %v7484_v44 = vld [vmem:[%s6874_s28 + $0x28] sm:$0xf] }
  0x74   : > { %v2172_v50 = vshrl.u32 %v5658_v40, 16  ;;  %v1407_v1 = vsel %vm7204_vm7, %v1405_v20, %v1406_v60  ;;  %v5556_v33 = vrot.slane %v1295_v57, 9  ;;  %v7479_v30 = vrot.slane %v2157_v6, 5 }
  0x75   : > { %6311 = vmatmul.mubr.msk.bf16.gmra.mxu1 %vm774_vm3, %v5514_v52  ;;  %v1438_v52 = vrot.slane %v7183_v37, 5  ;;  %v2175_v16 = vshll.u32 %v5658_v40, 16  ;;  %v1441_v23 = vrot.slane %v7188_v61, 5  ;;  %v2163_v4 = vrot.slane %v2161_v17, 4 }
  0x76   : > { %6314 = vmatprep.mubr.msk.bf16.mxu1 %vm774_vm3, %v5515_v8  ;;  %v5660_v8 = vld [vmem:[%s6874_s28 + $0x20] sm:$0x1]  ;;  %v2174_v3 = vrot.slane %v2172_v50, 4  ;;  %v2181_v13 = vshll.u32 %v5659_v63, 16  ;;  %v2167_v20 = vshll.u32 %v7471_v47, 16  ;;  %v2185_v57 = vshrl.u32 %v5659_v63, 16 }
  0x77   : > { %v1440_v32 = vrot.slane %v1438_v52, 4  ;;  %v2177_v60 = vrot.slane %v2175_v16, 5  ;;  %v5567_v61 = vcombine.low %v7427_v18, %v7450_v45  ;;  %v5568_v40 = vcombine.low %v7465_v11, %v1407_v1 }
  0x78   : > { %v2154_v6 = vor.u32 %v2153_v34, %v2150_v5  ;;  %v7495_v17 = vrot.slane %v2181_v13, 5  ;;  %v2164_v28 = vor.u32 %v2163_v4, %v7479_v30  ;;  %v2191_v50 = vshll.u32 %v5660_v8, 16  ;;  %v7522_v5 = vld [vmem:[%s6874_s28 + $0x34] sm:$0xf] }
  0x79   : > { %v2178_v56 = vor.u32 %v2177_v60, %v2174_v3  ;;  %v7507_v18 = vsel %vm7204_vm7, %v5556_v33, %v1438_v52  ;;  %v2196_v13 = vshrl.u32 %v5661_v15, 16  ;;  %v2199_v45 = vshll.u32 %v5661_v15, 16  ;;  %v5664_v52 = vld [vmem:[%s6874_s28 + $0x30] sm:$0xf] }
  0x7a   : > { %6349 = vmatmul.mubr.msk.bf16.gmra.mxu0 %vm774_vm3, %v5565_v41  ;;  %v2187_v41 = vrot.slane %v2185_v57, 4  ;;  %v2205_v11 = vshll.u32 %v7484_v44, 16  ;;  %v9774_v3 = vcombine.low %v6893_v12, %v6897_v14  ;;  %v7516_v4 = vsel %vm7204_vm7, %v1440_v32, %v1441_v23 }
  0x7b   : > { %6352 = vmatprep.mubr.msk.bf16.mxu0 %vm774_vm3, %v5566_v51  ;;  %v9773_v51 = vcombine.low %v7159_v62, %v7166_v55  ;;  %v2169_v62 = vrot.slane %v2167_v20, 5  ;;  %v2209_v63 = vshrl.u32 %v7484_v44, 16  ;;  %v2155_v34 = vrot.slane %v2154_v6, 4 }
  0x7c   : > { %v2188_v55 = vor.u32 %v2187_v41, %v7495_v17  ;;  %v2198_v8 = vrot.slane %v2196_v13, 4  ;;  %v2201_v1 = vrot.slane %v2199_v45, 5  ;;  %v7524_v33 = vrot.slane %v2205_v11, 5  ;;  %v7530_v41 = vld [vmem:[%s6874_s28 + $0x38] sm:$0x1] }
  0x7d   : > { %6315 = vmatmul.mubr.msk.bf16.gmra.mxu1 %vm774_vm3, %v9773_v51  ;;  %v2165_v12 = vrot.slane %v2164_v28, 4  ;;  %v2179_v14 = vrot.slane %v2178_v56, 4  ;;  %v2193_v16 = vrot.slane %v2191_v50, 5  ;;  %v2211_v23 = vrot.slane %v2209_v63, 4  ;;  %v5667_v13 = vld [vmem:[%s6874_s28 + $0x3c] sm:$0xf] }
  0x7e   : > { %6318 = vmatprep.mubr.msk.bf16.mxu1 %vm774_vm3, %v9774_v3  ;;  %v2189_v15 = vrot.slane %v2188_v55, 4  ;;  %v2215_v32 = vshll.u32 %v7499_v21, 16  ;;  %v2220_v20 = vshrl.u32 %v5664_v52, 16  ;;  %v2223_v60 = vshll.u32 %v5664_v52, 16 }
  0x7f   : > { %v2202_v57 = vor.u32 %v2201_v1, %v2198_v8  ;;  %v2212_v6 = vor.u32 %v2211_v23, %v7524_v33  ;;  %v2229_v28 = vshll.u32 %v7522_v5, 16  ;;  %v2233_v56 = vshrl.u32 %v7522_v5, 16  ;;  %v5670_v8 = vld [vmem:[%s6874_s28 + $0x48] sm:$0xf]  ;;  %v7557_v1 = vld [vmem:[%s6874_s28 + $0x4c] sm:$0xf] }
  0x80   : > { %v2222_v50 = vrot.slane %v2220_v20, 4  ;;  %v2225_v51 = vrot.slane %v2223_v60, 5  ;;  %v9775_v3 = vcombine.low %v6935_v53, %v6939_v58  ;;  %v5573_v55 = vcombine.low %v7507_v18, %v7516_v4 }
  0x81   : > { %v7536_v45 = vrot.slane %v2229_v28, 5  ;;  %v2235_v11 = vrot.slane %v2233_v56, 4  ;;  %v2170_v63 = vsel %vm6918_vm4, %v2165_v12, %v2169_v62  ;;  %v2184_v52 = vsel %vm6918_vm4, %v2179_v14, %v7495_v17 }
  0x82   : > { %6353 = vmatmul.mubr.msk.bf16.gmra.mxu0 %vm774_vm3, %v5567_v61  ;;  %v7539_v61 = vld [vmem:[%s6874_s28 + $0x40] sm:$0xf]  ;;  %v9776_v53 = vcombine.low %v6973_v35, %v6984_v46  ;;  %v2194_v58 = vsel %vm6918_vm4, %v2189_v15, %v2193_v16  ;;  %v2203_v23 = vrot.slane %v2202_v57, 4  ;;  %v2226_v20 = vor.u32 %v2225_v51, %v2222_v50  ;;  %v7591_v50 = vld [vmem:[%s6874_s28 + $0x44] sm:$0x1] }
  0x83   : > { %6356 = vmatprep.mubr.msk.bf16.mxu0 %vm774_vm3, %v5568_v40  ;;  %v2160_v40 = vsel %vm6918_vm4, %v2155_v34, %v7479_v30  ;;  %v2213_v30 = vrot.slane %v2212_v6, 4  ;;  %v2217_v34 = vrot.slane %v2215_v32, 5  ;;  %v2239_v62 = vshll.u32 %v7530_v41, 16  ;;  %v5673_v51 = vld [vmem:[%s6874_s28 + $0x54] sm:$0xf] }
  0x84   : > { %v2244_v12 = vshrl.u32 %v5667_v13, 16  ;;  %v2247_v17 = vshll.u32 %v5667_v13, 16  ;;  %v7568_v14 = vsel %vm823_vm0, %v7299_v22, 0  ;;  %v2236_v35 = vor.u32 %v2235_v11, %v7536_v45 }
  0x85   : > { %6319 = vmatmul.mubr.msk.bf16.gmra.mxu1 %vm774_vm3, %v9775_v3  ;;  %v2253_v46 = vshll.u32 %v7539_v61, 16  ;;  %v2257_v16 = vshrl.u32 %v7539_v61, 16  ;;  %v7573_v15 = vcombine.low %v2160_v40, %v2170_v63  ;;  %v7577_v32 = vsel %vm823_vm0, %v7271_v24, 0  ;;  %v7600_v40 = vld [vmem:[%s6874_s28 + $0x58] sm:$0xf] }
  0x86   : > { %6322 = vmatprep.mubr.msk.bf16.mxu1 %vm774_vm3, %v9776_v53  ;;  %v2268_v60 = vshrl.u32 %v5670_v8, 16  ;;  %v2271_v57 = vshll.u32 %v5670_v8, 16  ;;  %v9777_v6 = vcombine.low %v7386_v25, %v7396_v54  ;;  %v7583_v22 = vcombine.low %v2184_v52, %v2194_v58  ;;  %v7605_v8 = vld [vmem:[%s6874_s28 + $0x50] sm:$0x1] }
  0x87   : > { %v2208_v28 = vsel %vm6918_vm4, %v2203_v23, %v7524_v33  ;;  %v2218_v56 = vsel %vm6918_vm4, %v2213_v30, %v2217_v34  ;;  %v2277_v24 = vshll.u32 %v7557_v1, 16  ;;  %v9778_v25 = vcombine.low %v7400_v39, %v7410_v27  ;;  %v5676_v34 = vld [vmem:[%s6874_s28 + $0x60] sm:$0xf] }
  0x88   : > { %v2227_v54 = vrot.slane %v2226_v20, 4  ;;  %v2241_v13 = vrot.slane %v2239_v62, 5  ;;  %v2246_v11 = vrot.slane %v2244_v12, 4  ;;  %v2249_v3 = vrot.slane %v2247_v17, 5 }
  0x89   : > { %v2237_v33 = vrot.slane %v2236_v35, 4  ;;  %v7602_v63 = vrot.slane %v2253_v46, 5  ;;  %v2259_v52 = vrot.slane %v2257_v16, 4  ;;  %v2281_v53 = vshrl.u32 %v7557_v1, 16  ;;  %v7622_v35 = vld [vmem:[%s6874_s28 + $0x5c] sm:$0x1] }
  0x8a   : > { %6357 = vmatmul.mubr.msk.bf16.gmra.mxu0 %vm774_vm3, %v9777_v6  ;;  %v9779_v39 = vcombine.low %v7023_v36, %v7030_v43  ;;  %v2270_v27 = vrot.slane %v2268_v60, 4  ;;  %v2273_v58 = vrot.slane %v2271_v57, 5  ;;  %v2292_v23 = vshrl.u32 %v5673_v51, 16 }
  0x8b   : > { %6360 = vmatprep.mubr.msk.bf16.mxu0 %vm774_vm3, %v9778_v25  ;;  %v2295_v30 = vshll.u32 %v5673_v51, 16  ;;  %v9780_v20 = vcombine.low %v9763_v2, %v9762_v10  ;;  %v7617_v62 = vcombine.low %v2208_v28, %v2218_v56  ;;  %v7619_v12 = vrot.slane %v2277_v24, 5  ;;  %v7635_v28 = vld [vmem:[%s6874_s28 + $0x64] sm:$0xf] }
  0x8c   : > { %v2283_v17 = vrot.slane %v2281_v53, 4  ;;  %v2301_v36 = vshll.u32 %v7600_v40, 16  ;;  %v2263_v43 = vshll.u32 %v7591_v50, 16  ;;  %v2294_v46 = vrot.slane %v2292_v23, 4 }
  0x8d   : > { %6323 = vmatmul.mubr.msk.bf16.gmra.mxu1 %vm774_vm3, %v9779_v39  ;;  %v2297_v16 = vrot.slane %v2295_v30, 5  ;;  %v2305_v60 = vshrl.u32 %v7600_v40, 16  ;;  %v2232_v10 = vsel %vm6918_vm4, %v2227_v54, %v7536_v45  ;;  %v2242_v2 = vsel %vm6918_vm4, %v2237_v33, %v2241_v13  ;;  %v7657_v30 = vld [vmem:[%s6874_s28 + $0x68] sm:$0x1] }
  0x8e   : > { %6326 = vmatprep.mubr.msk.bf16.mxu1 %vm774_vm3, %v9780_v20  ;;  %v2250_v57 = vor.u32 %v2249_v3, %v2246_v11  ;;  %v7632_v6 = vrot.slane %v2301_v36, 5  ;;  %v2260_v56 = vor.u32 %v2259_v52, %v7602_v63  ;;  %v2274_v24 = vor.u32 %v2273_v58, %v2270_v27  ;;  %v5679_v3 = vld [vmem:[%s6874_s28 + $0x6c] sm:$0xf]  ;;  %v7654_v27 = vld [vmem:[%s6874_s28 + $0x70] sm:$0xf] }
  0x8f   : > { %v2287_v51 = vshll.u32 %v7605_v8, 16  ;;  %v2307_v25 = vrot.slane %v2305_v60, 4  ;;  %v9781_v53 = vcombine.low %v7420_v19, %v7440_v9  ;;  %v2284_v45 = vor.u32 %v2283_v17, %v7619_v12 }
  0x90   : > { %v2298_v54 = vor.u32 %v2297_v16, %v2294_v46  ;;  %v2316_v13 = vshrl.u32 %v5676_v34, 16  ;;  %v2319_v11 = vshll.u32 %v5676_v34, 16  ;;  %v9782_v33 = vcombine.low %v7432_v59, %v7456_v7  ;;  %v5682_v16 = vld [vmem:[%s6874_s28 + $0x78] sm:$0xf] }
  0x91   : > { %v2308_v52 = vor.u32 %v2307_v25, %v7632_v6  ;;  %v2311_v39 = vshll.u32 %v7622_v35, 16  ;;  %v2325_v19 = vshll.u32 %v7635_v28, 16  ;;  %v2329_v9 = vshrl.u32 %v7635_v28, 16 }
  0x92   : > { %6361 = vmatmul.mubr.msk.bf16.gmra.mxu0 %vm774_vm3, %v9781_v53  ;;  %v2251_v58 = vrot.slane %v2250_v57, 4  ;;  %v2265_v23 = vrot.slane %v2263_v43, 5  ;;  %v2318_v34 = vrot.slane %v2316_v13, 4  ;;  %v2321_v20 = vrot.slane %v2319_v11, 5 }
  0x93   : > { %6364 = vmatprep.mubr.msk.bf16.mxu0 %vm774_vm3, %v9782_v33  ;;  %v9783_v59 = vcombine.low %v9766_v26, %v9765_v38  ;;  %v7663_v7 = vcombine.low %v2232_v10, %v2242_v2  ;;  %v2261_v17 = vrot.slane %v2260_v56, 4  ;;  %v2275_v36 = vrot.slane %v2274_v24, 4  ;;  %v7673_v2 = vld [vmem:[%s6874_s28 + $0x7c] sm:$0xf] }
  0x94   : > { %v7665_v46 = vrot.slane %v2325_v19, 5  ;;  %v9784_v43 = vcombine.low %v9769_v42, %v9768_v48  ;;  %v2285_v60 = vrot.slane %v2284_v45, 4  ;;  %v2289_v57 = vrot.slane %v2287_v51, 5  ;;  %9785 = vst [vmem:[#allocation3_spill] sm:$0xff] %v7673_v2  ;;  %v5685_v19 = vld [vmem:[%s6874_s28 + $0x84] sm:$0xf] }
  0x95   : > { %6327 = vmatmul.mubr.msk.bf16.gmra.mxu1 %vm774_vm3, %v9783_v59  ;;  %v2299_v25 = vrot.slane %v2298_v54, 4  ;;  %v2331_v38 = vrot.slane %v2329_v9, 4  ;;  %v2309_v26 = vrot.slane %v2308_v52, 4  ;;  %v2313_v53 = vrot.slane %v2311_v39, 5 }
  0x96   : > { %6330 = vmatprep.mubr.msk.bf16.mxu1 %vm774_vm3, %v9784_v43  ;;  %v2322_v13 = vor.u32 %v2321_v20, %v2318_v34  ;;  %v2340_v10 = vshrl.u32 %v5679_v3, 16  ;;  %v2256_v56 = vsel %vm6918_vm4, %v2251_v58, %v7602_v63  ;;  %v2343_v24 = vshll.u32 %v5679_v3, 16  ;;  %v6625_v63 = vld [vmem:[%s6874_s28 + $0xc] sm:$0xff]   ;;  %v7707_v34 = vld [vmem:[%s6874_s28 + $0x88] sm:$0xf] }
  0x97   : > { %v2349_v48 = vshll.u32 %v7654_v27, 16  ;;  %v2353_v42 = vshrl.u32 %v7654_v27, 16  ;;  %v2266_v51 = vsel %vm6918_vm4, %v2261_v17, %v2265_v23  ;;  %v2280_v45 = vsel %vm6918_vm4, %v2275_v36, %v7619_v12  ;;  %9786 = vst [vmem:[#allocation5_spill] sm:$0xff] %v7707_v34  ;;  %v7716_v36 = vld [vmem:[%s6874_s28 + $0x74] sm:$0x1] }
  0x98   : > { %v2332_v54 = vor.u32 %v2331_v38, %v7665_v46  ;;  %v2335_v11 = vshll.u32 %v7657_v30, 16  ;;  %v2290_v3 = vsel %vm6918_vm4, %v2285_v60, %v2289_v57  ;;  %v2304_v33 = vsel %vm6918_vm4, %v2299_v25, %v7632_v6  ;;  %9788 = vst [vmem:[#allocation4_spill] sm:$0xff] %v7716_v36  ;;  %v7726_v38 = vld [vmem:[%s6874_s28 + $0x80] sm:$0x1] }
  0x99   : > { %v2364_v52 = vshrl.u32 %v5682_v16, 16  ;;  %v2367_v12 = vshll.u32 %v5682_v16, 16  ;;  %v2314_v18 = vsel %vm6918_vm4, %v2309_v26, %v2313_v53  ;;  %v2323_v4 = vrot.slane %v2322_v13, 4  ;;  %9789 = vst [vmem:[#allocation6_spill] sm:$0xff] %v7726_v38  ;;  %v7729_v26 = vld [vmem:[%s6874_s28 + $0x8c] sm:$0x1] }
  0x9a   : > { %6365 = vmatmul.mubr.msk.bf16.gmra.mxu0 %vm774_vm3, %v5573_v55  ;;  %v2342_v55 = vrot.slane %v2340_v10, 4  ;;  %v2373_v39 = vshll.u32 %v7673_v2, 16  ;;  %v2345_v9 = vrot.slane %v2343_v24, 5  ;;  %v7703_v58 = vrot.slane %v2349_v48, 5  ;;  %9790 = vst [vmem:[#allocation8_spill] sm:$0xff] %v7729_v26  ;;  %v6626_v10 = vld [vmem:[%s6874_s28 + $0x18] sm:$0xff]  }
  0x9b   : > { %6404 = vmatprep.mubr.msk.bf16.mxu0 %vm774_vm3, %v7573_v15  ;;  %v2355_v23 = vrot.slane %v2353_v42, 4  ;;  %v2377_v6 = vshrl.u32 %v7673_v2, 16  ;;  %v9787_v15 = vcombine.low %v9771_v29, %v7183_v37  ;;  %v7713_v20 = vcombine.low %v2256_v56, %v2266_v51  ;;  %v5688_v51 = vld [vmem:[%s6874_s28 + $0x90] sm:$0xf] }
  0x9c   : > { %v2333_v59 = vrot.slane %v2332_v54, 4  ;;  %v2337_v17 = vrot.slane %v2335_v11, 5  ;;  %v2366_v16 = vrot.slane %v2364_v52, 4  ;;  %v2369_v43 = vrot.slane %v2367_v12, 5 }
  0x9d   : > { %6331 = vmatmul.mubr.msk.bf16.gmra.mxu1 %vm774_vm3, %v9787_v15  ;;  %v7719_v60 = vrot.slane %v2373_v39, 5  ;;  %v2379_v57 = vrot.slane %v2377_v6, 4  ;;  %v2388_v25 = vshrl.u32 %v5685_v19, 16  ;;  %v7721_v37 = vcombine.low %v2280_v45, %v2290_v3  ;;  %v7740_v45 = vld [vmem:[%s6874_s28 + $0x94] sm:$0xf] }
  0x9e   : > { %6370 = vmatprep.mubr.msk.bf16.mxu1 %vm774_vm3, %v6625_v63  ;;  %v7723_v29 = vcombine.low %v2304_v33, %v2314_v18  ;;  %v2391_v53 = vshll.u32 %v5685_v19, 16  ;;  %v2397_v13 = vshll.u32 %v7707_v34, 16  ;;  %v2328_v56 = vsel %vm6918_vm4, %v2323_v4, %v7665_v46  ;;  %9791 = vst [vmem:[#allocation7_spill] sm:$0xff] %v7740_v45  ;;  %v7748_v33 = vld [vmem:[%s9704_s1 + $0x10] sm:$0x3]  ;;  %v6627_v46 = vld [vmem:[%s6874_s28 + $0x24] sm:$0xff]  }
  0x9f   : > { %v2346_v24 = vor.u32 %v2345_v9, %v2342_v55  ;;  %v2356_v48 = vor.u32 %v2355_v23, %v7703_v58  ;;  %v2359_v42 = vshll.u32 %v7716_v36, 16  ;;  %v2390_v54 = vrot.slane %v2388_v25, 4  ;;  %9792 = vst [vmem:[#allocation9_spill] sm:$0xff] %v7748_v33 }
  0xa0   : > { %v2393_v11 = vrot.slane %v2391_v53, 5  ;;  %v7742_v63 = vrot.slane %v2397_v13, 5  ;;  %v2401_v3 = vshrl.u32 %v7707_v34, 16  ;;  %v2338_v52 = vsel %vm6918_vm4, %v2333_v59, %v2337_v17 }
  0xa1   : > { %v2370_v12 = vor.u32 %v2369_v43, %v2366_v16  ;;  %v2380_v18 = vor.u32 %v2379_v57, %v7719_v60  ;;  %v2383_v4 = vshll.u32 %v7726_v38, 16  ;;  %v2412_v19 = vshrl.u32 %v5688_v51, 16  ;;  %v7782_v57 = vld [vmem:[%s6874_s28 + $0xa0] sm:$0xf] }
  0xa2   : > { %6405 = vmatmul.mubr.msk.bf16.vlgmr.msra.gmra.mxu0 %vm774_vm3, %v7583_v22  ;;  %v2394_v55 = vor.u32 %v2393_v11, %v2390_v54  ;;  %v2403_v39 = vrot.slane %v2401_v3, 4  ;;  %v2415_v9 = vshll.u32 %v5688_v51, 16  ;;  %v5691_v22 = vld [vmem:[%s6874_s28 + $0x9c] sm:$0xf]  ;;  %v7761_v23 = vrot.slane %v2346_v24, 4  ;;  %9794 = vst [vmem:[#allocation10_spill] sm:$0xff] %v7782_v57 }
  0xa3   : > { %6471 = vmatpush3.bf16.msra.mxu0 %v7577_v32  ;;  %6408 = vmatprep.mubr.msk.bf16.mxu0 %vm774_vm3, %v7617_v62  ;;  %v7763_v6 = vrot.slane %v2359_v42, 5  ;;  %v2407_v15 = vshll.u32 %v7729_v26, 16  ;;  %v2421_v59 = vshll.u32 %v7740_v45, 16  ;;  %v7770_v32 = vld [vmem:[%s9704_s1 + $0xe] sm:$0x3]  ;;  %v7775_v62 = vcombine.low %v2328_v56, %v2338_v52 }
  0xa4   : > { %9793 = vst [vmem:[#allocation11_spill] sm:$0xff] %v7770_v32  ;;  %6583 = vmatprep.subr.msk.bf16.mxu0 %vm823_vm0, %v7748_v33  ;;  %v7777_v17 = vrot.slane %v2356_v48, 4  ;;  %v2404_v16 = vor.u32 %v2403_v39, %v7742_v63  ;;  %v2425_v43 = vshrl.u32 %v7740_v45, 16  ;;  %v7786_v25 = vrot.slane %v2370_v12, 4  ;;  %v7795_v56 = vld [vmem:[%s6874_s28 + $0x98] sm:$0x1] }
  0xa5   : > { %6371 = vmatmul.mubr.msk.bf16.vlgmr.msra.gmra.mxu1 %vm774_vm3, %v6626_v10  ;;  %v7788_v53 = vrot.slane %v2380_v18, 4  ;;  %v7790_v13 = vrot.slane %v2383_v4, 5  ;;  %v7792_v10 = vrot.slane %v2394_v55, 4  ;;  %9795 = vst [vmem:[#allocation12_spill] sm:$0xff] %v7795_v56  ;;  %v2414_v24 = vrot.slane %v2412_v19, 4  ;;  %v6629_v19 = vld [vmem:[%s6874_s28 + $0x3c] sm:$0xff]  }
  0xa6   : > { %6437 = vmatpush3.bf16.msra.mxu1 %v7568_v14  ;;  %6374 = vmatprep.mubr.msk.bf16.mxu1 %vm774_vm3, %v6627_v46  ;;  %v2417_v48 = vrot.slane %v2415_v9, 5  ;;  %v2436_v42 = vshrl.u32 %v5691_v22, 16  ;;  %v2439_v51 = vshll.u32 %v5691_v22, 16  ;;  %v6628_v14 = vld [vmem:[%s6874_s28 + $0x30] sm:$0xff]   ;;  %v7804_v11 = vrot.slane %v2407_v15, 5 }
  0xa7   : > { %6582 = vmatprep.subr.msk.bf16.mxu1 %vm823_vm0, %v7770_v32  ;;  %v7806_v3 = vrot.slane %v2421_v59, 5  ;;  %v2445_v46 = vshll.u32 %v7782_v57, 16  ;;  %v5694_v52 = vld [vmem:[%s6874_s28 + $0xa8] sm:$0xf]  ;;  %v7810_v12 = vrot.slane %v2404_v16, 4  ;;  %v2427_v18 = vrot.slane %v2425_v43, 4 }
  0xa8   : > { %v2431_v4 = vshll.u32 %v7795_v56, 16  ;;  %v2449_v55 = vshrl.u32 %v7782_v57, 16  ;;  %v7815_v39 = vld [vmem:[%s6874_s28 + $0xac] sm:$0xf]  ;;  %v2418_v59 = vor.u32 %v2417_v48, %v2414_v24  ;;  %v7839_v16 = vld [vmem:[%s6874_s28 + $0xa4] sm:$0x1] }
  0xa9   : > { %9796 = vst [vmem:[#allocation13_spill] sm:$0xff] %v7815_v39  ;;  %9797 = vst [vmem:[#allocation2_spill] sm:$0xff] %v7839_v16  ;;  %v2438_v43 = vrot.slane %v2436_v42, 4  ;;  %v2441_v22 = vrot.slane %v2439_v51, 5  ;;  %v2460_v54 = vshrl.u32 %v5694_v52, 16  ;;  %v7841_v9 = vrot.slane %v2445_v46, 5 }
  0xaa   : > { %6409 = vmatmul.mubr.msk.bf16.gmra.mxu0 %vm774_vm3, %v7663_v7  ;;  %v2451_v32 = vrot.slane %v2449_v55, 4  ;;  %v2463_v15 = vshll.u32 %v5694_v52, 16  ;;  %v2469_v33 = vshll.u32 %v7815_v39, 16  ;;  %v5697_v57 = vld [vmem:[%s6874_s28 + $0xb4] sm:$0xf]  ;;  %v2428_v24 = vor.u32 %v2427_v18, %v7806_v3 }
  0xab   : > { %6412 = vmatprep.mubr.msk.bf16.mxu0 %vm774_vm3, %v7713_v20  ;;  %v2410_v20 = vsel %vm6918_vm4, %v7810_v12, %v7804_v11  ;;  %v7851_v48 = vrot.slane %v2431_v4, 5  ;;  %v7854_v42 = vld [vmem:[%s6874_s28 + $0xb0] sm:$0x1]  ;;  %v2462_v51 = vrot.slane %v2460_v54, 4  ;;  %v7857_v46 = vld [vmem:[%s6874_s28 + $0xb8] sm:$0xf]  ;;  %v2442_v18 = vor.u32 %v2441_v22, %v2438_v43 }
  0xac   : > { %9798 = vst [vmem:[#allocation14_spill] sm:$0xff] %v7854_v42  ;;  %9799 = vst [vmem:[#allocation15_spill] sm:$0xff] %v7857_v46  ;;  %v2465_v52 = vrot.slane %v2463_v15, 5  ;;  %v7861_v55 = vrot.slane %v2469_v33, 5  ;;  %v2473_v11 = vshrl.u32 %v7815_v39, 16  ;;  %v7864_v12 = vrot.slane %v2418_v59, 4 }
  0xad   : > { %6375 = vmatmul.mubr.msk.bf16.gmra.mxu1 %vm774_vm3, %v6628_v14  ;;  %v2455_v14 = vshll.u32 %v7839_v16, 16  ;;  %v7867_v4 = vld [vmem:[%s6874_s28 + $0xbc] sm:$0x1]  ;;  %v2484_v54 = vshrl.u32 %v5697_v57, 16  ;;  %v2487_v7 = vshll.u32 %v5697_v57, 16  ;;  %v2452_v56 = vor.u32 %v2451_v32, %v7841_v9  ;;  %v6630_v16 = vld [vmem:[%s6874_s28 + $0x48] sm:$0xff]  }
  0xae   : > { %6378 = vmatprep.mubr.msk.bf16.mxu1 %vm774_vm3, %v6629_v19  ;;  %v2475_v45 = vrot.slane %v2473_v11, 4  ;;  %v2479_v19 = vshll.u32 %v7854_v42, 16  ;;  %v2493_v15 = vshll.u32 %v7857_v46, 16  ;;  %v5700_v33 = vld [vmem:[%s6874_s28 + $0xc0] sm:$0xf]  ;;  %v2466_v26 = vor.u32 %v2465_v52, %v2462_v51  ;;  %v6631_v57 = vld [vmem:[%s6874_s28 + $0x54] sm:$0xff]  }
  0xaf   : > { %v2486_v39 = vrot.slane %v2484_v54, 4  ;;  %v2489_v34 = vrot.slane %v2487_v7, 5  ;;  %v2497_v59 = vshrl.u32 %v7857_v46, 16  ;;  %v7876_v22 = vld [vmem:[%s6874_s28 + $0xc4] sm:$0xf]  ;;  %v2429_v43 = vrot.slane %v2428_v24, 4 }
  0xb0   : > { %v2457_v32 = vrot.slane %v2455_v14, 5  ;;  %v2476_v11 = vor.u32 %v2475_v45, %v7861_v55  ;;  %v2495_v42 = vrot.slane %v2493_v15, 5  ;;  %v2503_v7 = vshll.u32 %v7867_v4, 16  ;;  %v7888_v45 = vld [vmem:[%s6874_s28 + $0xc8] sm:$0x1] }
  0xb1   : > { %v2490_v51 = vor.u32 %v2489_v34, %v2486_v39  ;;  %v2499_v52 = vrot.slane %v2497_v59, 4  ;;  %v2508_v54 = vshrl.u32 %v5700_v33, 16  ;;  %v2443_v46 = vrot.slane %v2442_v18, 4 }
  0xb2   : > { %6413 = vmatmul.mubr.msk.bf16.gmra.mxu0 %vm774_vm3, %v7721_v37  ;;  %v2453_v38 = vrot.slane %v2452_v56, 4  ;;  %v2511_v2 = vshll.u32 %v5700_v33, 16  ;;  %v2517_v37 = vshll.u32 %v7876_v22, 16  ;;  %v2467_v24 = vrot.slane %v2466_v26, 4 }
  0xb3   : > { %6416 = vmatprep.mubr.msk.bf16.mxu0 %vm774_vm3, %v7723_v29  ;;  %v2481_v14 = vrot.slane %v2479_v19, 5  ;;  %v2500_v36 = vor.u32 %v2499_v52, %v2495_v42  ;;  %v2510_v15 = vrot.slane %v2508_v54, 4  ;;  %v2477_v34 = vrot.slane %v2476_v11, 4 }
  0xb4   : > { %v2513_v29 = vrot.slane %v2511_v2, 5  ;;  %v7891_v39 = vrot.slane %v2517_v37, 5  ;;  %v2521_v56 = vshrl.u32 %v7876_v22, 16  ;;  %v9800_v26 = vsel %vm6918_vm4, %v7777_v17, %v7763_v6 }
  0xb5   : > { %6379 = vmatmul.mubr.msk.bf16.gmra.mxu1 %vm774_vm3, %v6630_v16  ;;  %v9801_v16 = vsel %vm6918_vm4, %v7761_v23, %v7703_v58  ;;  %v2491_v19 = vrot.slane %v2490_v51, 4  ;;  %v2501_v33 = vrot.slane %v2500_v36, 4  ;;  %v2505_v2 = vrot.slane %v2503_v7, 5  ;;  %v6632_v23 = vld [vmem:[%s6874_s28 + $0x60] sm:$0xff]  }
  0xb6   : > { %6382 = vmatprep.mubr.msk.bf16.mxu1 %vm774_vm3, %v6631_v57  ;;  %v5712_v18 = vcombine.low %v9801_v16, %v9800_v26  ;;  %v9802_v59 = vsel %vm6918_vm4, %v7788_v53, %v7790_v13  ;;  %v9803_v6 = vsel %vm6918_vm4, %v7786_v25, %v7719_v60  ;;  %v2514_v57 = vor.u32 %v2513_v29, %v2510_v15  ;;  %v5738_v13 = vld [vmem:[%s6874_s28 + $0x24] sm:$0xe]  ;;  %v5741_v26 = vld [vmem:[%s6874_s28 + $0x48] sm:$0xe] }
  0xb7   : > { %v5713_v17 = vcombine.low %v9803_v6, %v9802_v59  ;;  %v2523_v11 = vrot.slane %v2521_v56, 4  ;;  %v2527_v58 = vshll.u32 %v7888_v45, 16  ;;  %v9804_v36 = vsel %vm6918_vm4, %v7792_v10, %v7742_v63  ;;  %v6633_v63 = vld [vmem:[%s6874_s28 + $0x6c] sm:$0xff]   ;;  %v5742_v6 = vld [vmem:[%s6874_s28 + $0x54] sm:$0xe] }
  0xb8   : > { %v5714_v51 = vcombine.low %v9804_v36, %v2410_v20  ;;  %v2424_v53 = vsel %vm6918_vm4, %v7864_v12, %v7806_v3  ;;  %v2434_v60 = vsel %vm6918_vm4, %v2429_v43, %v7851_v48  ;;  %v2448_v25 = vsel %vm6918_vm4, %v2443_v46, %v7841_v9  ;;  %v7944_v12 = vld [vmem:[%s6874_s28 + $0xc] sm:$0xe] }
  0xb9   : > { %v2458_v10 = vsel %vm6918_vm4, %v2453_v38, %v2457_v32  ;;  %v2472_v3 = vsel %vm6918_vm4, %v2467_v24, %v7861_v55  ;;  %v2482_v20 = vsel %vm6918_vm4, %v2477_v34, %v2481_v14  ;;  %v2524_v48 = vor.u32 %v2523_v11, %v7891_v39  ;;  %v5739_v55 = vld [vmem:[%s6874_s28 + $0x30] sm:$0xe]  ;;  %v5740_v14 = vld [vmem:[%s6874_s28 + $0x3c] sm:$0xe] }
  0xba   : > { %6417 = vmatmul.mubr.msk.bf16.gmra.mxu0 %vm774_vm3, %v7775_v62  ;;  %v2496_v62 = vsel %vm6918_vm4, %v2491_v19, %v2495_v42  ;;  %v2506_v38 = vsel %vm6918_vm4, %v2501_v33, %v2505_v2  ;;  %v7951_v9 = vrot.slane %v2514_v57, 4  ;;  %v2891_v46 = vrot.slane %v7435_v49, 5  ;;  %v6634_v57 = vld [vmem:[%s6874_s28 + $0x78] sm:$0xff]  }
  0xbb   : > { %6420 = vmatprep.mubr.msk.bf16.mxu0 %vm774_vm3, %v5712_v18  ;;  %v7955_v43 = vcombine.low %v2424_v53, %v2434_v60  ;;  %v7957_v32 = vrot.slane %v2524_v48, 4  ;;  %v7959_v52 = vrot.slane %v2527_v58, 5  ;;  %v5754_v7 = vrot.slane %v5738_v13, 9  ;;  %v6635_v53 = vld [vmem:[%s6874_s28 + $0x84] sm:$0xff]   ;;  %v5743_v13 = vld [vmem:[%s6874_s28 + $0x60] sm:$0xe] }
  0xbc   : > { %v7962_v54 = vcombine.low %v2448_v25, %v2458_v10  ;;  %v7964_v42 = vcombine.low %v2472_v3, %v2482_v20  ;;  %v5752_v37 = vrot.slane %v7944_v12, 9  ;;  %v2905_v24 = vrot.slane %v7484_v44, 5  ;;  %v6641_v49 = vld [vmem:[%s6874_s28 + $0x18] sm:$0xff]  }
  0xbd   : > { %6383 = vmatmul.mubr.msk.bf16.gmra.mxu1 %vm774_vm3, %v6632_v23  ;;  %v7970_v15 = vcombine.low %v2496_v62, %v2506_v38  ;;  %v2894_v34 = vrot.slane %v7471_v47, 5  ;;  %v2908_v29 = vrot.slane %v7499_v21, 5  ;;  %v5755_v56 = vrot.slane %v5739_v55, 9  ;;  %v5745_v55 = vld [vmem:[%s6874_s28 + $0x78] sm:$0xe] }
  0xbe   : > { %6386 = vmatprep.mubr.msk.bf16.mxu1 %vm774_vm3, %v6633_v63  ;;  %v2520_v16 = vsel %vm6918_vm4, %v7951_v9, %v7891_v39  ;;  %v7981_v44 = vrot.slane %v2891_v46, 4  ;;  %v7985_v18 = vsel %vm7204_vm7, %v5754_v7, %v2905_v24  ;;  %v2907_v19 = vrot.slane %v2905_v24, 4 }
  0xbf   : > { %v2530_v21 = vsel %vm6918_vm4, %v7957_v32, %v7959_v52  ;;  %v2912_v33 = vrot.slane %v7522_v5, 5  ;;  %v2915_v2 = vrot.slane %v7530_v41, 5  ;;  %v5756_v59 = vrot.slane %v5740_v14, 9  ;;  %v6640_v52 = vld [vmem:[%s6874_s28 + $0xc0] sm:$0xff]  }
  0xc0   : > { %v7997_v11 = vsel %vm7204_vm7, %v2907_v19, %v2908_v29  ;;  %v2919_v58 = vrot.slane %v7539_v61, 5  ;;  %v2922_v23 = vrot.slane %v7591_v50, 5  ;;  %v5757_v36 = vrot.slane %v5741_v26, 9  ;;  %v5746_v19 = vld [vmem:[%s6874_s28 + $0x84] sm:$0xe] }
  0xc1   : > { %v5771_v5 = vcombine.low %v7985_v18, %v7997_v11  ;;  %v8007_v41 = vsel %vm7204_vm7, %v5755_v56, %v2912_v33  ;;  %v2914_v60 = vrot.slane %v2912_v33, 4  ;;  %v2926_v25 = vrot.slane %v7557_v1, 5 }
  0xc2   : > { %6421 = vmatmul.mubr.msk.bf16.gmra.mxu0 %vm774_vm3, %v5713_v17  ;;  %v8014_v61 = vsel %vm7204_vm7, %v5756_v59, %v2919_v58  ;;  %v2921_v50 = vrot.slane %v2919_v58, 4  ;;  %v2929_v17 = vrot.slane %v7605_v8, 5  ;;  %v5758_v63 = vrot.slane %v5742_v6, 9  ;;  %v9805_v59 = vld [vmem:[#allocation4_spill] sm:$0xff] }
  0xc3   : > { %6424 = vmatprep.mubr.msk.bf16.mxu0 %vm774_vm3, %v5714_v51  ;;  %v8019_v10 = vsel %vm7204_vm7, %v2914_v60, %v2915_v2  ;;  %v8023_v3 = vsel %vm7204_vm7, %v5757_v36, %v2926_v25  ;;  %v2928_v1 = vrot.slane %v2926_v25, 4  ;;  %v2933_v20 = vrot.slane %v7600_v40, 5  ;;  %v5744_v51 = vld [vmem:[%s6874_s28 + $0x6c] sm:$0xe]  ;;  %v6636_v58 = vld [vmem:[%s6874_s28 + $0x90] sm:$0xff]  }
  0xc4   : > { %v5772_v48 = vcombine.low %v8007_v41, %v8019_v10  ;;  %v8032_v8 = vsel %vm7204_vm7, %v2921_v50, %v2922_v23  ;;  %v2936_v62 = vrot.slane %v7622_v35, 5  ;;  %v5759_v38 = vrot.slane %v5743_v13, 9  ;;  %v9806_v36 = vld [vmem:[#allocation3_spill] sm:$0xff]  ;;  %v5747_v60 = vld [vmem:[%s6874_s28 + $0x90] sm:$0xe]  ;;  %v9807_v50 = vld [vmem:[#allocation6_spill] sm:$0xff] }
  0xc5   : > { %6387 = vmatmul.mubr.msk.bf16.gmra.mxu1 %vm774_vm3, %v6634_v57  ;;  %v5773_v40 = vcombine.low %v8014_v61, %v8032_v8  ;;  %v8041_v7 = vsel %vm7204_vm7, %v2928_v1, %v2929_v17  ;;  %v8045_v24 = vsel %vm7204_vm7, %v5758_v63, %v2933_v20  ;;  %v2935_v14 = vrot.slane %v2933_v20, 4 }
  0xc6   : > { %6390 = vmatprep.mubr.msk.bf16.mxu1 %vm774_vm3, %v6635_v53  ;;  %v5774_v35 = vcombine.low %v8023_v3, %v8041_v7  ;;  %v2940_v29 = vrot.slane %v7635_v28, 5  ;;  %v2943_v56 = vrot.slane %v7657_v30, 5  ;;  %v5760_v26 = vrot.slane %v5744_v51, 9  ;;  %v9808_v51 = vld [vmem:[#allocation5_spill] sm:$0xff]  ;;  %v5878_v3 = vld [vmem:[%s6874_s28 + $0x48] sm:$0xf] }
  0xc7   : > { %v8054_v33 = vsel %vm7204_vm7, %v2935_v14, %v2936_v62  ;;  %v2947_v2 = vrot.slane %v7654_v27, 5  ;;  %v2950_v6 = vrot.slane %v9805_v59, 5  ;;  %v5761_v57 = vrot.slane %v5745_v55, 9  ;;  %v6637_v27 = vld [vmem:[%s6874_s28 + $0x9c] sm:$0xff]   ;;  %v9816_v55 = vld [vmem:[#allocation15_spill] sm:$0xff] }
  0xc8   : > { %v5775_v23 = vcombine.low %v8045_v24, %v8054_v33  ;;  %v8063_v28 = vsel %vm7204_vm7, %v5759_v38, %v2940_v29  ;;  %v2942_v30 = vrot.slane %v2940_v29, 4  ;;  %v2954_v53 = vrot.slane %v9806_v36, 5  ;;  %v5748_v38 = vld [vmem:[%s6874_s28 + $0x9c] sm:$0xe]  ;;  %v9811_v36 = vld [vmem:[#allocation12_spill] sm:$0xff] }
  0xc9   : > { %v8072_v25 = vsel %vm7204_vm7, %v5760_v26, %v2947_v2  ;;  %v2949_v13 = vrot.slane %v2947_v2, 4  ;;  %v2957_v17 = vrot.slane %v9807_v50, 5  ;;  %v5762_v63 = vrot.slane %v5746_v19, 9  ;;  %v5749_v26 = vld [vmem:[%s6874_s28 + $0xa8] sm:$0xe] }
  0xca   : > { %6425 = vmatmul.mubr.msk.bf16.gmra.mxu0 %vm774_vm3, %v7955_v43  ;;  %v8079_v1 = vsel %vm7204_vm7, %v2942_v30, %v2943_v56  ;;  %v8083_v43 = vsel %vm7204_vm7, %v5761_v57, %v2954_v53  ;;  %v2956_v20 = vrot.slane %v2954_v53, 4  ;;  %v2961_v62 = vrot.slane %v9808_v51, 5  ;;  %v5751_v57 = vld [vmem:[%s6874_s28 + $0xc0] sm:$0xe]  ;;  %v6638_v19 = vld [vmem:[%s6874_s28 + $0xa8] sm:$0xff]  }
  0xcb   : > { %6428 = vmatprep.mubr.msk.bf16.mxu0 %vm774_vm3, %v7962_v54  ;;  %v8091_v14 = vsel %vm7204_vm7, %v2949_v13, %v2950_v6  ;;  %v9809_v54 = vld [vmem:[#allocation8_spill] sm:$0xff]  ;;  %v5763_v56 = vrot.slane %v5747_v60, 9  ;;  %v2971_v53 = vrot.slane %v9811_v36, 5  ;;  %v5764_v60 = vrot.slane %v5748_v38, 9  ;;  %v9814_v38 = vld [vmem:[#allocation13_spill] sm:$0xff] }
  0xcc   : > { %v2964_v29 = vrot.slane %v9809_v54, 5  ;;  %v8100_v2 = vsel %vm7204_vm7, %v2956_v20, %v2957_v17  ;;  %v8104_v59 = vsel %vm7204_vm7, %v5762_v63, %v2961_v62  ;;  %v2963_v6 = vrot.slane %v2961_v62, 4  ;;  %v5750_v13 = vld [vmem:[%s6874_s28 + $0xb4] sm:$0xe]  ;;  %v9812_v17 = vld [vmem:[#allocation10_spill] sm:$0xff] }
  0xcd   : > { %6391 = vmatmul.mubr.msk.bf16.gmra.mxu1 %vm774_vm3, %v6636_v58  ;;  %v9810_v58 = vld [vmem:[#allocation7_spill] sm:$0xff]  ;;  %v2975_v63 = vrot.slane %v9812_v17, 5  ;;  %v9813_v20 = vld [vmem:[#allocation2_spill] sm:$0xff]  ;;  %v5765_v62 = vrot.slane %v5749_v26, 9  ;;  %v2982_v36 = vrot.slane %v9814_v38, 5  ;;  %v5766_v26 = vrot.slane %v5750_v13, 9 }
  0xce   : > { %6394 = vmatprep.mubr.msk.bf16.mxu1 %vm774_vm3, %v6637_v27  ;;  %v2968_v30 = vrot.slane %v9810_v58, 5  ;;  %v8114_v50 = vsel %vm7204_vm7, %v2963_v6, %v2964_v29  ;;  %v2978_v51 = vrot.slane %v9813_v20, 5  ;;  %v9815_v17 = vld [vmem:[#allocation14_spill] sm:$0xff]  ;;  %v6639_v27 = vld [vmem:[%s6874_s28 + $0xb4] sm:$0xff]   ;;  %v2895_v39 = vsel %vm7204_vm7, %v7981_v44, %v2894_v34  ;;  %v8331_v7 = vld [vmem:[%s6874_s28 + $0x4c] sm:$0xf] }
  0xcf   : > { %v8129_v29 = vsel %vm7204_vm7, %v5764_v60, %v2975_v63  ;;  %v2977_v6 = vrot.slane %v2975_v63, 4  ;;  %v2985_v20 = vrot.slane %v9815_v17, 5  ;;  %v2984_v38 = vrot.slane %v2982_v36, 4  ;;  %v6786_v44 = vld [vmem:[%s6874_s28 + $0x20] sm:$0x1] }
  0xd0   : > { %v8122_v54 = vsel %vm7204_vm7, %v5763_v56, %v2968_v30  ;;  %v2970_v58 = vrot.slane %v2968_v30, 4  ;;  %v8141_v30 = vsel %vm7204_vm7, %v5765_v62, %v2982_v36  ;;  %v2989_v60 = vrot.slane %v9816_v55, 5 }
  0xd1   : > { %v5767_v63 = vrot.slane %v5751_v57, 9  ;;  %v8157_v55 = vsel %vm7204_vm7, %v2984_v38, %v2985_v20  ;;  %v2996_v57 = vrot.slane %v7876_v22, 5  ;;  %v2892_v22 = vsel %vm7204_vm7, %v5752_v37, %v2891_v46  ;;  %v6643_v38 = vld [vmem:[%s6874_s28 + $0x30] sm:$0xff]  }
  0xd2   : > { %6429 = vmatmul.mubr.msk.bf16.gmra.mxu0 %vm774_vm3, %v7964_v42  ;;  %v8137_v56 = vsel %vm7204_vm7, %v2970_v58, %v2971_v53  ;;  %v8150_v42 = vsel %vm7204_vm7, %v2977_v6, %v2978_v51  ;;  %v2992_v53 = vrot.slane %v7867_v4, 5  ;;  %v2991_v58 = vrot.slane %v2989_v60, 4 }
  0xd3   : > { %6432 = vmatprep.mubr.msk.bf16.mxu0 %vm774_vm3, %v7970_v15  ;;  %v8161_v15 = vsel %vm7204_vm7, %v5766_v26, %v2989_v60  ;;  %v2999_v51 = vrot.slane %v7888_v45, 5  ;;  %v5737_v45 = vld [vmem:[%s6874_s28 + $0x18] sm:$0xe]  ;;  %v8201_v9 = vsel %vm7204_vm7, %v5767_v63, %v2996_v57  ;;  %v2998_v46 = vrot.slane %v2996_v57, 4  ;;  %v6642_v26 = vld [vmem:[%s6874_s28 + $0x24] sm:$0xff]  }
  0xd4   : > { %v8189_v32 = vsel %vm7204_vm7, %v2991_v58, %v2992_v53  ;;  %v5753_v37 = vrot.slane %v5737_v45, 9  ;;  %v5769_v34 = vcombine.low %v2892_v22, %v2895_v39  ;;  %v9817_v60 = vld [vmem:[#allocation9_spill] sm:$0xff] }
  0xd5   : > { %6395 = vmatmul.mubr.msk.bf16.gmra.mxu1 %vm774_vm3, %v6638_v19  ;;  %v5719_v19 = vcombine.low %v2520_v16, %v2530_v21  ;;  %v8206_v47 = vsel %vm7204_vm7, %v2998_v46, %v2999_v51  ;;  %v2901_v21 = vrot.slane %v6786_v44, 5  ;;  %v4658_v53 = vsel %vm823_vm0, %v9817_v60, 0  ;;  %v5866_v63 = vld [vmem:[%s6874_s28 + $0x18] sm:$0xf]  ;;  %v5867_v57 = vld [vmem:[%s6874_s28 + $0x1c] sm:$0xf] }
  0xd6   : > { %6398 = vmatprep.mubr.msk.bf16.mxu1 %vm774_vm3, %v6639_v27  ;;  %v6785_v27 = vld [vmem:[%s6874_s28 + $0x1c] sm:$0xf]  ;;  %v5869_v51 = vld [vmem:[%s6874_s28 + $0x24] sm:$0xf]  ;;  %v3706_v45 = vshrl.u32 %v5866_v63, 16  ;;  %v3715_v39 = vshll.u32 %v5867_v57, 16 }
  0xd7   : > { %v2898_v36 = vrot.slane %v6785_v27, 5  ;;  %v3709_v27 = vshll.u32 %v5866_v63, 16  ;;  %v3730_v46 = vshrl.u32 %v5869_v51, 16  ;;  %v6645_v44 = vld [vmem:[%s6874_s28 + $0x48] sm:$0xff]   ;;  %v5947_v60 = vld [vmem:[%s6874_s28 + $0x18] sm:$0xe] }
  0xd8   : > { %v8247_v63 = vld [vmem:[%s6874_s28 + $0x2c] sm:$0x1] }
  0xd9   : > { %v2900_v16 = vrot.slane %v2898_v36, 4  ;;  %v2899_v17 = vsel %vm7204_vm7, %v5753_v37, %v2898_v36  ;;  %v8231_v36 = vld [vmem:[%s6874_s28 + $0x28] sm:$0xf]  ;;  %v6644_v37 = vld [vmem:[%s6874_s28 + $0x3c] sm:$0xff]   ;;  %v3732_v18 = vrot.slane %v3730_v46, 4 }
  0xda   : > { %6433 = vmatmul.mubr.msk.bf16.gmra.mxu0 %vm774_vm3, %v5719_v19  ;;  %v9818_v19 = vld [vmem:[#allocation11_spill] sm:$0xff] }
  0xdb   : > { %6472 = vmatprep.mubr.msk.bf16.mxu0 %vm774_vm3, %v6641_v49  ;;  %v2902_v20 = vsel %vm7204_vm7, %v2900_v16, %v2901_v21  ;;  %v4188_v22 = vsel %vm823_vm0, %v9818_v19, 0  ;;  %v3719_v49 = vshrl.u32 %v5867_v57, 16  ;;  %v3743_v16 = vshrl.u32 %v8231_v36, 16  ;;  %v5868_v21 = vld [vmem:[%s6874_s28 + $0x20] sm:$0x1] }
  0xdc   : > { %v5770_v58 = vcombine.low %v2899_v17, %v2902_v20  ;;  %v3708_v17 = vrot.slane %v3706_v45, 4  ;;  %v3711_v20 = vrot.slane %v3709_v27, 5  ;;  %v5872_v19 = vld [vmem:[%s6874_s28 + $0x30] sm:$0xf]  ;;  %v3725_v45 = vshll.u32 %v5868_v21, 16 }
  0xdd   : > { %6399 = vmatmul.mubr.msk.bf16.gmra.mxu1 %vm774_vm3, %v6640_v52  ;;  %v3733_v52 = vshll.u32 %v5869_v51, 16  ;;  %v3745_v51 = vrot.slane %v3743_v16, 4  ;;  %v5963_v27 = vrot.slane %v5947_v60, 9  ;;  %v4452_v46 = vrot.slane %v5868_v21, 5  ;;  %v5948_v16 = vld [vmem:[%s6874_s28 + $0x24] sm:$0xe] }
  0xde   : > { %6438 = vmatprep.mubr.msk.bf16.mxu1 %vm774_vm3, %v5769_v34  ;;  %v3739_v34 = vshll.u32 %v8231_v36, 16  ;;  %v6646_v21 = vld [vmem:[%s6874_s28 + $0x54] sm:$0xff]   ;;  %v3757_v10 = vshll.u32 %v5872_v19, 16  ;;  %v6647_v60 = vld [vmem:[%s6874_s28 + $0x60] sm:$0xff]  }
  0xdf   : > { %v3735_v11 = vrot.slane %v3733_v52, 5  ;;  %v3749_v52 = vshll.u32 %v8247_v63, 16 }
  0xe2   : > { %6473 = vmatmul.mubr.msk.bf16.vlgmr.msra.gmra.mxu0 %vm774_vm3, %v6642_v26  ;;  %v8243_v26 = vrot.slane %v3715_v39, 5 }
  0xe3   : > { %6539 = vmatpush3.bf16.msra.mxu0 %v4658_v53  ;;  %6476 = vmatprep.mubr.msk.bf16.mxu0 %vm774_vm3, %v6643_v38  ;;  %v3721_v38 = vrot.slane %v3719_v49, 4  ;;  %v4449_v53 = vrot.slane %v5867_v57, 5  ;;  %v8257_v57 = vld [vmem:[%s6874_s28 + $0x34] sm:$0xf] }
  0xe5   : > { %6439 = vmatmul.mubr.msk.bf16.vlgmr.msra.gmra.mxu1 %vm774_vm3, %v5770_v58  ;;  %v8252_v58 = vrot.slane %v3739_v34, 5  ;;  %v3722_v39 = vor.u32 %v3721_v38, %v8243_v26  ;;  %v4451_v49 = vrot.slane %v4449_v53, 4  ;;  %v3736_v34 = vor.u32 %v3735_v11, %v3732_v18 }
  0xe6   : > { %6505 = vmatpush3.bf16.msra.mxu1 %v4188_v22  ;;  %6442 = vmatprep.mubr.msk.bf16.mxu1 %vm774_vm3, %v5771_v5  ;;  %v8250_v5 = vpop.f32.mrf.mxu0  ;;  %v3712_v22 = vor.u32 %v3711_v20, %v3708_v17  ;;  %v3754_v17 = vshrl.u32 %v5872_v19, 16  ;;  %v3767_v38 = vshrl.u32 %v8257_v57, 16  ;;  %v8282_v61 = vsel %vm7204_vm7, %v5963_v27, %v4449_v53  ;;  %v5875_v19 = vld [vmem:[%s6874_s28 + $0x3c] sm:$0xf] }
  0xe7   : > { %v3746_v41 = vor.u32 %v3745_v51, %v8252_v58  ;;  %v3723_v8 = vrot.slane %v3722_v39, 4  ;;  %v3751_v11 = vrot.slane %v3749_v52, 5  ;;  %v5964_v51 = vrot.slane %v5948_v16, 9  ;;  %v8296_v39 = vld [vmem:[%s6874_s28 + $0x38] sm:$0x1] }
  0xe8   : > { %v8274_v20 = vpop.f32.mrf.mxu0  ;;  %v3713_v18 = vrot.slane %v3712_v22, 4  ;;  %v3737_v12 = vrot.slane %v3736_v34, 4  ;;  %v4459_v22 = vrot.slane %v8247_v63, 5  ;;  %v3769_v52 = vrot.slane %v3767_v38, 4 }
  0xe9   : > { %v3747_v27 = vrot.slane %v3746_v41, 4  ;;  %v3778_v34 = vshrl.u32 %v5875_v19, 16  ;;  %v3781_v16 = vshll.u32 %v5875_v19, 16  ;;  %v8309_v41 = vld [vmem:[%s6874_s28 + $0x40] sm:$0xf] }
  0xea   : > { %6477 = vmatmul.mubr.msk.bf16.gmra.mxu0 %vm774_vm3, %v6644_v37  ;;  %v8293_v53 = vpop.f32.mrf.mxu0  ;;  %v3718_v63 = vsel %vm6918_vm4, %v3713_v18, %v8243_v26  ;;  %v3742_v26 = vsel %vm6918_vm4, %v3737_v12, %v8252_v58  ;;  %v5949_v18 = vld [vmem:[%s6874_s28 + $0x30] sm:$0xe]  ;;  %v3787_v24 = vshll.u32 %v8309_v41, 16  ;;  %v3791_v33 = vshrl.u32 %v8309_v41, 16 }
  0xeb   : > { %6480 = vmatprep.mubr.msk.bf16.mxu0 %vm774_vm3, %v6645_v44  ;;  %v8265_v37 = vpop.f32.mrf.mxu1  ;;  %v4456_v44 = vrot.slane %v8231_v36, 5  ;;  %v3727_v36 = vrot.slane %v3725_v45, 5  ;;  %v3756_v45 = vrot.slane %v3754_v17, 4  ;;  %v3752_v58 = vsel %vm6918_vm4, %v3747_v27, %v3751_v11 }
  0xec   : > { %9819 = vst [vmem:[#allocation4_spill] sm:$0xff] %v8265_v37  ;;  %v8338_v12 = vpop.f32.mrf.mxu0  ;;  %v3783_v19 = vrot.slane %v3781_v16, 5  ;;  %v3815_v11 = vshrl.u32 %v8331_v7, 16 }
  0xed   : > { %6443 = vmatmul.mubr.msk.bf16.gmra.mxu1 %vm774_vm3, %v5772_v48  ;;  %v3763_v48 = vshll.u32 %v8257_v57, 16  ;;  %v8289_v6 = vpop.f32.mrf.mxu1  ;;  %v4458_v4 = vrot.slane %v4456_v44, 4  ;;  %v3728_v17 = vsel %vm6918_vm4, %v3723_v8, %v3727_v36  ;;  %v4463_v36 = vrot.slane %v8257_v57, 5  ;;  %v6649_v8 = vld [vmem:[%s6874_s28 + $0x78] sm:$0xff]  }
  0xee   : > { %6446 = vmatprep.mubr.msk.bf16.mxu1 %vm774_vm3, %v5773_v40  ;;  %v8286_v40 = vsel %vm7204_vm7, %v4451_v49, %v4452_v46  ;;  %9820 = vst [vmem:[#allocation3_spill] sm:$0xff] %v8289_v6  ;;  %v3759_v49 = vrot.slane %v3757_v10, 5  ;;  %v8352_v27 = vcombine.low %v3718_v63, %v3728_v17  ;;  %v8354_v57 = vcombine.low %v3742_v26, %v3752_v58  ;;  %v8368_v17 = vld [vmem:[%s6874_s28 + $0x58] sm:$0xf]  ;;  %v8374_v58 = vld [vmem:[%s6874_s28 + $0x44] sm:$0x1] }
  0xef   : > { %v8298_v46 = vrot.slane %v3763_v48, 5  ;;  %v8315_v10 = vpop.f32.mrf.mxu1  ;;  %v8322_v48 = vsel %vm7204_vm7, %v5964_v51, %v4456_v44  ;;  %v8326_v38 = vsel %vm7204_vm7, %v4458_v4, %v4459_v22  ;;  %v3780_v51 = vrot.slane %v3778_v34, 4  ;;  %v5881_v34 = vld [vmem:[%s6874_s28 + $0x54] sm:$0xf] }
  0xf0   : > { %9821 = vst [vmem:[#allocation6_spill] sm:$0xff] %v8315_v10  ;;  %v3760_v44 = vor.u32 %v3759_v49, %v3756_v45  ;;  %v3805_v22 = vshll.u32 %v5878_v3, 16  ;;  %v4465_v13 = vrot.slane %v4463_v36, 4  ;;  %v4466_v63 = vrot.slane %v8296_v39, 5  ;;  %v5950_v49 = vld [vmem:[%s6874_s28 + $0x3c] sm:$0xe] }
  0xf1   : > { %v3770_v4 = vor.u32 %v3769_v52, %v8298_v46  ;;  %v8350_v45 = vpop.f32.mrf.mxu1  ;;  %v5965_v52 = vrot.slane %v5949_v18, 9  ;;  %v3784_v18 = vor.u32 %v3783_v19, %v3780_v51  ;;  %v9824_v6 = vcombine.low %v8063_v28, %v8079_v1 }
  0xf2   : > { %6481 = vmatmul.mubr.msk.bf16.gmra.mxu0 %vm774_vm3, %v6646_v21  ;;  %v3811_v21 = vshll.u32 %v8331_v7, 16  ;;  %9822 = vst [vmem:[#allocation5_spill] sm:$0xff] %v8350_v45  ;;  %v3807_v45 = vrot.slane %v3805_v22, 5  ;;  %v3826_v51 = vshrl.u32 %v5881_v34, 16  ;;  %v3829_v19 = vshll.u32 %v5881_v34, 16 }
  0xf3   : > { %6484 = vmatprep.mubr.msk.bf16.mxu0 %vm774_vm3, %v6647_v60  ;;  %v3773_v60 = vshll.u32 %v8296_v39, 16  ;;  %v8371_v26 = vrot.slane %v3770_v4, 4  ;;  %v3817_v39 = vrot.slane %v3815_v11, 4  ;;  %v8409_v22 = vsel %vm7204_vm7, %v4465_v13, %v4466_v63 }
  0xf4   : > { %v8379_v10 = vrot.slane %v3811_v21, 5  ;;  %v9826_v21 = vcombine.low %v8072_v25, %v8091_v14  ;;  %v4470_v25 = vrot.slane %v8309_v41, 5  ;;  %v6651_v14 = vld [vmem:[%s6874_s28 + $0x90] sm:$0xff]   ;;  %v5966_v1 = vrot.slane %v5950_v49, 9  ;;  %v5884_v41 = vld [vmem:[%s6874_s28 + $0x60] sm:$0xf] }
  0xf5   : > { %6447 = vmatmul.mubr.msk.bf16.gmra.mxu1 %vm774_vm3, %v5774_v35  ;;  %v6648_v35 = vld [vmem:[%s6874_s28 + $0x6c] sm:$0xff]   ;;  %v8364_v62 = vrot.slane %v3773_v60, 5  ;;  %v3828_v37 = vrot.slane %v3826_v51, 4 }
  0xf6   : > { %6450 = vmatprep.mubr.msk.bf16.mxu1 %vm774_vm3, %v5775_v23  ;;  %v3802_v23 = vshrl.u32 %v5878_v3, 16  ;;  %v8362_v3 = vrot.slane %v3760_v44, 4  ;;  %v3793_v44 = vrot.slane %v3791_v33, 4  ;;  %v3839_v33 = vshrl.u32 %v8368_v17, 16 }
  0xf7   : > { %v8360_v16 = vpop.f32.mrf.mxu0  ;;  %v3818_v13 = vor.u32 %v3817_v39, %v8379_v10  ;;  %v4477_v39 = vrot.slane %v8331_v7, 5  ;;  %v9830_v7 = vcombine.low %v8083_v43, %v8100_v2  ;;  %v9832_v43 = vcombine.low %v8104_v59, %v8114_v50  ;;  %v6652_v2 = vld [vmem:[%s6874_s28 + $0x9c] sm:$0xff]  }
  0xf8   : > { %9823 = vst [vmem:[#allocation8_spill] sm:$0xff] %v8360_v16  ;;  %v3804_v60 = vrot.slane %v3802_v23, 4  ;;  %v6650_v23 = vld [vmem:[%s6874_s28 + $0x84] sm:$0xff]   ;;  %v8436_v16 = vld [vmem:[%s6874_s28 + $0x5c] sm:$0x1]  ;;  %v4484_v59 = vrot.slane %v8368_v17, 5 }
  0xf9   : > { %v8397_v28 = vpop.f32.mrf.mxu0 }
  0xfa   : > { %6485 = vmatmul.mubr.msk.bf16.gmra.mxu0 %vm774_vm3, %v6648_v35  ;;  %v8376_v35 = vrot.slane %v3787_v24, 5  ;;  %v3835_v24 = vshll.u32 %v8368_v17, 16  ;;  %9827 = vst [vmem:[#allocation12_spill] sm:$0xff] %v8397_v28  ;;  %v3831_v28 = vrot.slane %v3829_v19, 5 }
  0xfb   : > { %6488 = vmatprep.mubr.msk.bf16.mxu0 %vm774_vm3, %v6649_v8  ;;  %v8385_v4 = vpop.f32.mrf.mxu1  ;;  %v8388_v8 = vld [vmem:[%s6874_s28 + $0x50] sm:$0x1]  ;;  %v8429_v49 = vpop.f32.mrf.mxu0 }
  0xfc   : > { %9825 = vst [vmem:[#allocation7_spill] sm:$0xff] %v8385_v4  ;;  %v3794_v34 = vor.u32 %v3793_v44, %v8376_v35  ;;  %v8419_v4 = vrot.slane %v3784_v18, 4  ;;  %v8426_v11 = vrot.slane %v3835_v24, 5  ;;  %v3841_v44 = vrot.slane %v3839_v33, 4  ;;  %9829 = vst [vmem:[#allocation2_spill] sm:$0xff] %v8429_v49 }
  0xfd   : > { %6451 = vmatmul.mubr.msk.bf16.gmra.mxu1 %vm774_vm3, %v9824_v6  ;;  %v8405_v6 = vsel %vm7204_vm7, %v5965_v52, %v4463_v36  ;;  %v3808_v36 = vor.u32 %v3807_v45, %v3804_v60  ;;  %v3821_v52 = vshll.u32 %v8388_v8, 16  ;;  %v8424_v63 = vpop.f32.mrf.mxu1  ;;  %v4472_v18 = vrot.slane %v4470_v25, 4  ;;  %v5951_v24 = vld [vmem:[%s6874_s28 + $0x48] sm:$0xe] }
  0xfe   : > { %6454 = vmatprep.mubr.msk.bf16.mxu1 %vm774_vm3, %v9826_v21  ;;  %v3797_v21 = vshll.u32 %v8374_v58, 16  ;;  %9828 = vst [vmem:[#allocation10_spill] sm:$0xff] %v8424_v63  ;;  %v4473_v60 = vrot.slane %v8374_v58, 5  ;;  %v3795_v51 = vrot.slane %v3794_v34, 4  ;;  %v3850_v33 = vshrl.u32 %v5884_v41, 16 }
  0xff   : > { %v8442_v63 = vsel %vm7204_vm7, %v5966_v1, %v4470_v25  ;;  %v3809_v45 = vrot.slane %v3808_v36, 4  ;;  %v3819_v49 = vrot.slane %v3818_v13, 4  ;;  %v3823_v58 = vrot.slane %v3821_v52, 5  ;;  %v8457_v36 = vld [vmem:[%s6874_s28 + $0x64] sm:$0xf]  ;;  %v8464_v13 = vpop.f32.mrf.mxu0 }
 0x100   : > { %v3799_v19 = vrot.slane %v3797_v21, 5  ;;  %v3790_v34 = vsel %vm6918_vm4, %v8419_v4, %v8376_v35  ;;  %v3832_v21 = vor.u32 %v3831_v28, %v3828_v37  ;;  %v3842_v1 = vor.u32 %v3841_v44, %v8426_v11  ;;  %9833 = vst [vmem:[#allocation14_spill] sm:$0xff] %v8464_v13  ;;  %v5952_v28 = vld [vmem:[%s6874_s28 + $0x54] sm:$0xe]  ;;  %v6656_v13 = vld [vmem:[%s6874_s28 + $0xcc] sm:$0xff]  }
 0x101   : > { %v3845_v25 = vshll.u32 %v8436_v16, 16  ;;  %v8468_v52 = vsel %vm7204_vm7, %v4472_v18, %v4473_v60  ;;  %v5967_v35 = vrot.slane %v5951_v24, 9  ;;  %v4479_v37 = vrot.slane %v4477_v39, 4 }
 0x102   : > { %6489 = vmatmul.mubr.msk.bf16.gmra.mxu0 %vm774_vm3, %v6650_v23  ;;  %v3853_v23 = vshll.u32 %v5884_v41, 16  ;;  %v4480_v4 = vrot.slane %v8388_v8, 5  ;;  %v6653_v41 = vld [vmem:[%s6874_s28 + $0xa8] sm:$0xff]   ;;  %v3800_v44 = vsel %vm6918_vm4, %v3795_v51, %v3799_v19  ;;  %v3852_v50 = vrot.slane %v3850_v33, 4 }
 0x103   : > { %6492 = vmatprep.mubr.msk.bf16.mxu0 %vm774_vm3, %v6651_v14  ;;  %v8448_v14 = vpop.f32.mrf.mxu1  ;;  %v3824_v18 = vsel %vm6918_vm4, %v3819_v49, %v3823_v58  ;;  %v3859_v60 = vshll.u32 %v8457_v36, 16  ;;  %v3863_v8 = vshrl.u32 %v8457_v36, 16  ;;  %v3843_v51 = vrot.slane %v3842_v1, 4  ;;  %v8486_v33 = vld [vmem:[%s6874_s28 + $0x68] sm:$0x1] }
 0x104   : > { %9831 = vst [vmem:[#allocation13_spill] sm:$0xff] %v8448_v14  ;;  %v3833_v14 = vrot.slane %v3832_v21, 4  ;;  %v3847_v17 = vrot.slane %v3845_v25, 5  ;;  %v5968_v19 = vrot.slane %v5952_v28, 9  ;;  %v9836_v49 = vsel %vm6918_vm4, %v8371_v26, %v8364_v62  ;;  %v5887_v25 = vld [vmem:[%s6874_s28 + $0x6c] sm:$0xf] }
 0x105   : > { %6455 = vmatmul.mubr.msk.bf16.gmra.mxu1 %vm774_vm3, %v9830_v7  ;;  %v3855_v7 = vrot.slane %v3853_v23, 5  ;;  %v8483_v24 = vpop.f32.mrf.mxu1  ;;  %v8507_v21 = vsel %vm7204_vm7, %v5967_v35, %v4477_v39  ;;  %v8511_v1 = vsel %vm7204_vm7, %v4479_v37, %v4480_v4  ;;  %v8514_v62 = vcombine.low %v3790_v34, %v3800_v44  ;;  %v5953_v4 = vld [vmem:[%s6874_s28 + $0x60] sm:$0xe]  ;;  %v5893_v44 = vld [vmem:[%s6874_s28 + $0x84] sm:$0xf] }
 0x106   : > { %6458 = vmatprep.mubr.msk.bf16.mxu1 %vm774_vm3, %v9832_v43  ;;  %v3814_v43 = vsel %vm6918_vm4, %v3809_v45, %v8379_v10  ;;  %9834 = vst [vmem:[#allocation15_spill] sm:$0xff] %v8483_v24  ;;  %v9837_v45 = vsel %vm6918_vm4, %v8362_v3, %v8298_v46  ;;  %v4486_v46 = vrot.slane %v4484_v59, 4  ;;  %v4487_v3 = vrot.slane %v8436_v16, 5 }
 0x107   : > { %v8501_v23 = vcombine.low %v9837_v45, %v9836_v49  ;;  %9838 = vst [vmem:[#allocation11_spill] sm:$0xff] %v8514_v62  ;;  %v3856_v26 = vor.u32 %v3855_v7, %v3852_v50  ;;  %v8521_v28 = vcombine.low %v3814_v43, %v3824_v18  ;;  %v8523_v39 = vrot.slane %v3859_v60, 5 }
 0x108   : > { %v8489_v10 = vpop.f32.mrf.mxu0  ;;  %v8525_v35 = vrot.slane %v3863_v8, 4  ;;  %v3869_v37 = vshll.u32 %v8486_v33, 16  ;;  %v9840_v34 = vcombine.low %v8122_v54, %v8137_v56  ;;  %v3838_v50 = vsel %vm6918_vm4, %v3833_v14, %v8426_v11  ;;  %v5890_v54 = vld [vmem:[%s6874_s28 + $0x78] sm:$0xf] }
 0x109   : > { %9835 = vst [vmem:[#allocation9_spill] sm:$0xff] %v8489_v10  ;;  %9839 = vst [vmem:[#allocation16_spill] sm:$0xff] %v8521_v28  ;;  %v3848_v7 = vsel %vm6918_vm4, %v3843_v51, %v3847_v17  ;;  %v8545_v43 = vsel %vm7204_vm7, %v5968_v19, %v4484_v59  ;;  %v9842_v56 = vcombine.low %v8129_v29, %v8150_v42  ;;  %v3874_v60 = vshrl.u32 %v5887_v25, 16  ;;  %v8557_v51 = vld [vmem:[%s6874_s28 + $0x7c] sm:$0xf]  ;;  %v6655_v59 = vld [vmem:[%s6874_s28 + $0xc0] sm:$0xff]  }
 0x10a   : > { %6493 = vmatmul.mubr.msk.bf16.gmra.mxu0 %vm774_vm3, %v6652_v2  ;;  %v8519_v2 = vld [vmem:[%s6874_s28 + $0x70] sm:$0xf]  ;;  %v8552_v18 = vpop.f32.mrf.mxu0  ;;  %v3877_v8 = vshll.u32 %v5887_v25, 16  ;;  %v8562_v17 = vsel %vm7204_vm7, %v4486_v46, %v4487_v3  ;;  %v8564_v29 = vrot.slane %v3856_v26, 4  ;;  %v5969_v42 = vrot.slane %v5953_v4, 9 }
 0x10b   : > { %6496 = vmatprep.mubr.msk.bf16.mxu0 %vm774_vm3, %v6653_v41  ;;  %v6654_v41 = vld [vmem:[%s6874_s28 + $0xb4] sm:$0xff]   ;;  %9843 = vst [vmem:[#allocation18_spill] sm:$0xff] %v8552_v18  ;;  %v3883_v11 = vshll.u32 %v8519_v2, 16  ;;  %v3887_v14 = vshrl.u32 %v8519_v2, 16  ;;  %v4491_v19 = vrot.slane %v8457_v36, 5  ;;  %v8567_v49 = vcombine.low %v3838_v50, %v3848_v7 }
 0x10c   : > { %v3866_v45 = vor.u32 %v8525_v35, %v8523_v39  ;;  %v8571_v25 = vrot.slane %v3869_v37, 5  ;;  %v3898_v46 = vshrl.u32 %v5890_v54, 16  ;;  %v3901_v3 = vshll.u32 %v5890_v54, 16  ;;  %v8583_v4 = vld [vmem:[%s6874_s28 + $0x88] sm:$0xf]  ;;  %v8586_v35 = vpop.f32.mrf.mxu0 }
 0x10d   : > { %6459 = vmatmul.mubr.msk.bf16.gmra.mxu1 %vm774_vm3, %v9840_v34  ;;  %v8533_v16 = vpop.f32.mrf.mxu1  ;;  %9844 = vst [vmem:[#allocation19_spill] sm:$0xff] %v8567_v49  ;;  %v4494_v34 = vrot.slane %v8486_v33, 5  ;;  %v3907_v36 = vshll.u32 %v8557_v51, 16  ;;  %v3911_v26 = vshrl.u32 %v8557_v51, 16  ;;  %9846 = vst [vmem:[#allocation21_spill] sm:$0xff] %v8586_v35  ;;  %v3876_v33 = vrot.slane %v3874_v60, 4 }
 0x10e   : > { %9841 = vst [vmem:[#allocation17_spill] sm:$0xff] %v8533_v16  ;;  %6462 = vmatprep.mubr.msk.bf16.mxu1 %vm774_vm3, %v9842_v56  ;;  %v8575_v56 = vld [vmem:[%s6874_s28 + $0x74] sm:$0x1]  ;;  %v3879_v37 = vrot.slane %v3877_v8, 5  ;;  %v8588_v50 = vrot.slane %v3883_v11, 5  ;;  %v3889_v7 = vrot.slane %v3887_v14, 4  ;;  %v9847_v54 = vcombine.low %v8141_v30, %v8157_v55  ;;  %v8616_v49 = vpop.f32.mrf.mxu0 }
 0x10f   : > { %v8578_v58 = vpop.f32.mrf.mxu1  ;;  %v4493_v16 = vrot.slane %v4491_v19, 4  ;;  %v8601_v60 = vld [vmem:[%s6874_s28 + $0x80] sm:$0x1]  ;;  %v8604_v8 = vld [vmem:[%s6874_s28 + $0x6c] sm:$0xe]  ;;  %v3922_v11 = vshrl.u32 %v5893_v44, 16 }
 0x110   : > { %9845 = vst [vmem:[#allocation20_spill] sm:$0xff] %v8578_v58  ;;  %v8597_v58 = vsel %vm7204_vm7, %v5969_v42, %v4491_v19  ;;  %v3925_v14 = vshll.u32 %v5893_v44, 16  ;;  %v3935_v24 = vshrl.u32 %v8583_v4, 16  ;;  %v3900_v19 = vrot.slane %v3898_v46, 4  ;;  %9849 = vst [vmem:[#allocation23_spill] sm:$0xff] %v8616_v49 }
 0x111   : > { %v8612_v42 = vpop.f32.mrf.mxu1  ;;  %v3903_v35 = vrot.slane %v3901_v3, 5  ;;  %v8614_v18 = vrot.slane %v3907_v36, 5  ;;  %v3913_v10 = vrot.slane %v3911_v26, 4  ;;  %v9850_v44 = vcombine.low %v8161_v15, %v8189_v32  ;;  %v8635_v32 = vld [vmem:[%s6874_s28 + $0x8c] sm:$0x1] }
 0x112   : > { %6497 = vmatmul.mubr.msk.bf16.gmra.mxu0 %vm774_vm3, %v6654_v41  ;;  %v3893_v41 = vshll.u32 %v8575_v56, 16  ;;  %9848 = vst [vmem:[#allocation22_spill] sm:$0xff] %v8612_v42  ;;  %v3880_v30 = vor.u32 %v3879_v37, %v3876_v33  ;;  %v3890_v55 = vor.u32 %v3889_v7, %v8588_v50  ;;  %v3917_v46 = vshll.u32 %v8601_v60, 16  ;;  %v5955_v33 = vld [vmem:[%s6874_s28 + $0x78] sm:$0xe] }
 0x113   : > { %6500 = vmatprep.mubr.msk.bf16.mxu0 %vm774_vm3, %v6655_v59  ;;  %v3931_v59 = vshll.u32 %v8583_v4, 16  ;;  %v8626_v3 = vrot.slane %v3866_v45, 4  ;;  %v8630_v36 = vsel %vm7204_vm7, %v4493_v16, %v4494_v34  ;;  %v5970_v26 = vrot.slane %v8604_v8, 9  ;;  %v8640_v42 = vpop.f32.mrf.mxu1  ;;  %v5896_v8 = vld [vmem:[%s6874_s28 + $0x90] sm:$0xf] }
 0x114   : > { %v4505_v15 = vrot.slane %v8557_v51, 5  ;;  %v3924_v37 = vrot.slane %v3922_v11, 4  ;;  %v3927_v7 = vrot.slane %v3925_v14, 5  ;;  %9851 = vst [vmem:[#allocation24_spill] sm:$0xff] %v8640_v42  ;;  %v3895_v45 = vrot.slane %v3893_v41, 5 }
 0x115   : > { %6463 = vmatmul.mubr.msk.bf16.gmra.mxu1 %vm774_vm3, %v9847_v54  ;;  %v4498_v54 = vrot.slane %v8519_v2, 5  ;;  %v8638_v2 = vrot.slane %v3931_v59, 5  ;;  %v4501_v49 = vrot.slane %v8575_v56, 5  ;;  %v3904_v16 = vor.u32 %v3903_v35, %v3900_v19  ;;  %v8649_v59 = vld [vmem:[%s6874_s28 + $0x94] sm:$0xf] }
 0x116   : > { %6466 = vmatprep.mubr.msk.bf16.mxu1 %vm774_vm3, %v9850_v44  ;;  %v3937_v44 = vrot.slane %v3935_v24, 4  ;;  %v3914_v34 = vor.u32 %v3913_v10, %v8614_v18  ;;  %v3881_v51 = vrot.slane %v3880_v30, 4  ;;  %v3891_v11 = vrot.slane %v3890_v55, 4 }
 0x117   : > { %v4500_v62 = vrot.slane %v4498_v54, 4  ;;  %v3919_v14 = vrot.slane %v3917_v46, 5  ;;  %v9852_v24 = vcombine.low %v8282_v61, %v8286_v40  ;;  %v5971_v56 = vrot.slane %v5955_v33, 9 }
 0x118   : > { %v4507_v35 = vrot.slane %v4505_v15, 4  ;;  %v4508_v10 = vrot.slane %v8601_v60, 5  ;;  %v3941_v41 = vshll.u32 %v8635_v32, 16  ;;  %v3938_v30 = vor.u32 %v3937_v44, %v8638_v2 }
 0x119   : > { %v3946_v55 = vshrl.u32 %v5896_v8, 16  ;;  %v3949_v46 = vshll.u32 %v5896_v8, 16  ;;  %v9854_v61 = vcombine.low %v8201_v9, %v8206_v47  ;;  %v3905_v40 = vrot.slane %v3904_v16, 4 }
 0x11a   : > { %v8645_v28 = vpop.f32.mrf.mxu0  ;;  %6501 = vmatmul.mubr.msk.bf16.gmra.mxu0 %vm774_vm3, %v6656_v13  ;;  %v3928_v13 = vor.u32 %v3927_v7, %v3924_v37  ;;  %v3915_v33 = vrot.slane %v3914_v34, 4  ;;  %v3955_v60 = vshll.u32 %v8649_v59, 16  ;;  %v3872_v37 = vsel %vm6918_vm4, %v8626_v3, %v8571_v25 }
 0x11b   : > { %6540 = vmatprep.mubr.msk.bf16.mxu0 %vm774_vm3, %v9852_v24  ;;  %v3959_v24 = vshrl.u32 %v8649_v59, 16  ;;  %v3886_v9 = vsel %vm6918_vm4, %v3881_v51, %v8588_v50  ;;  %v8681_v47 = vsel %vm7204_vm7, %v5970_v26, %v4498_v54  ;;  %v8685_v7 = vsel %vm7204_vm7, %v4500_v62, %v4501_v49  ;;  %v5956_v54 = vld [vmem:[%s6874_s28 + $0x84] sm:$0xe]  ;;  %v9893_v31 = vld [vmem:[#allocation24_spill] sm:$0xff] }
 0x11c   : > { %v8657_v19 = vpop.f32.mrf.mxu0  ;;  %v8693_v25 = vsel %vm7204_vm7, %v5971_v56, %v4505_v15  ;;  %v8697_v50 = vsel %vm7204_vm7, %v4507_v35, %v4508_v10  ;;  %v3943_v3 = vrot.slane %v3941_v41, 5  ;;  %v3929_v62 = vrot.slane %v3928_v13, 4  ;;  %v8721_v13 = vld [vmem:[%s6874_s28 + $0x98] sm:$0x1] }
 0x11d   : > { %9853 = vst [vmem:[#allocation25_spill] sm:$0xff] %v8657_v19  ;;  %v8660_v42 = vpop.f32.mrf.mxu1  ;;  %6467 = vmatmul.mubr.msk.bf16.gmra.mxu1 %vm774_vm3, %v9854_v61  ;;  %v3939_v49 = vrot.slane %v3938_v30, 4  ;;  %v3948_v16 = vrot.slane %v3946_v55, 4  ;;  %v3951_v34 = vrot.slane %v3949_v46, 5  ;;  %v3910_v15 = vsel %vm6918_vm4, %v3905_v40, %v8614_v18  ;;  %v5899_v30 = vld [vmem:[%s6874_s28 + $0x9c] sm:$0xf] }
 0x11e   : > { %v8668_v19 = vpop.f32.mrf.mxu0  ;;  %6506 = vmatprep.mubr.msk.bf16.mxu1 %vm774_vm3, %v8352_v27  ;;  %v3896_v27 = vsel %vm6918_vm4, %v3891_v11, %v3895_v45  ;;  %v3920_v45 = vsel %vm6918_vm4, %v3915_v33, %v3919_v14  ;;  %v8709_v51 = vrot.slane %v3955_v60, 5  ;;  %v3961_v11 = vrot.slane %v3959_v24, 4  ;;  %v8752_v24 = vld [vmem:[%s6874_s28 + $0xa0] sm:$0xf] }
 0x11f   : > { %v8687_v44 = vpop.f32.mrf.mxu1  ;;  %v9855_v35 = vcombine.low %v8322_v48, %v8326_v38  ;;  %v5985_v10 = vcombine.low %v8545_v43, %v8562_v17  ;;  %v5986_v41 = vcombine.low %v8597_v58, %v8630_v36  ;;  %v5972_v18 = vrot.slane %v5956_v54, 9 }
 0x120   : > { %v8700_v26 = vpop.f32.mrf.mxu0  ;;  %v4512_v14 = vrot.slane %v8583_v4, 5  ;;  %v9856_v48 = vcombine.low %v8405_v6, %v8409_v22  ;;  %v9857_v38 = vsel %vm6918_vm4, %v8564_v29, %v8523_v39  ;;  %v8737_v61 = vcombine.low %v3886_v9, %v3896_v27  ;;  %v5957_v29 = vld [vmem:[%s6874_s28 + $0x90] sm:$0xe]  ;;  %v9864_v4 = vld [vmem:[#allocation2_spill] sm:$0xff] }
 0x121   : > { %v8702_v8 = vpop.f32.mrf.mxu1  ;;  %v8735_v46 = vcombine.low %v9857_v38, %v3872_v37  ;;  %v8743_v60 = vcombine.low %v3910_v15, %v3920_v45  ;;  %v3934_v6 = vsel %vm6918_vm4, %v3929_v62, %v8638_v2  ;;  %v3944_v22 = vsel %vm6918_vm4, %v3939_v49, %v3943_v3 }
 0x122   : > { %v6338_v56 = vpop.f32.mrf.mxu0  ;;  %6541 = vmatmul.mubr.msk.bf16.vlgmr.msra.gmra.mxu0 %vm774_vm3, %v9855_v35  ;;  %v3952_v39 = vor.u32 %v3951_v34, %v3948_v16  ;;  %v3962_v9 = vor.u32 %v3961_v11, %v8709_v51  ;;  %v3965_v27 = vshll.u32 %v8721_v13, 16  ;;  %v3970_v54 = vshrl.u32 %v5899_v30, 16 }
 0x123   : > { %v8724_v55 = vpop.f32.mrf.mxu1  ;;  %6544 = vmatprep.mubr.msk.bf16.mxu0 %vm774_vm3, %v9856_v48  ;;  %v3973_v15 = vshll.u32 %v5899_v30, 16  ;;  %v8763_v3 = vsel %vm7204_vm7, %v5972_v18, %v4512_v14  ;;  %v4514_v62 = vrot.slane %v4512_v14, 4  ;;  %v4515_v49 = vrot.slane %v8635_v32, 5 }
 0x124   : > { %v1578_v33 = vpop.f32.mrf.mxu0  ;;  %v5973_v16 = vrot.slane %v5957_v29, 9  ;;  %v4519_v34 = vrot.slane %v8649_v59, 5  ;;  %v3979_v11 = vshll.u32 %v8752_v24, 16  ;;  %v3983_v35 = vshrl.u32 %v8752_v24, 16 }
 0x125   : > { %v6304_v37 = vpop.f32.mrf.mxu1  ;;  %6507 = vmatmul.mubr.msk.bf16.vlgmr.msra.gmra.mxu1 %vm774_vm3, %v8354_v57  ;;  %v8772_v48 = vcombine.low %v3934_v6, %v3944_v22  ;;  %v8774_v18 = vrot.slane %v3952_v39, 4  ;;  %v3963_v32 = vrot.slane %v3962_v9, 4  ;;  %v3967_v38 = vrot.slane %v3965_v27, 5  ;;  %v5902_v22 = vld [vmem:[%s6874_s28 + $0xa8] sm:$0xf] }
 0x126   : > { %v1162_v45 = vadd.f32 %v6304_v37, %v8250_v5  ;;  %v6339_v2 = vpop.f32.mrf.mxu0  ;;  %6510 = vmatprep.mubr.msk.bf16.mxu1 %vm774_vm3, %v8501_v23  ;;  %v3972_v29 = vrot.slane %v3970_v54, 4  ;;  %v3975_v59 = vrot.slane %v3973_v15, 5  ;;  %v4522_v6 = vrot.slane %v8721_v13, 5  ;;  %v8800_v27 = vld [vmem:[%s6874_s28 + $0xac] sm:$0xf] }
 0x127   : > { %v1153_v57 = vpop.f32.mrf.mxu1  ;;  %v3985_v9 = vrot.slane %v3983_v35, 4  ;;  %v9861_v35 = vld [vmem:[#allocation8_spill] sm:$0xff] }
 0x128   : > { %v8769_v5 = vadd.f32 %v6338_v56, %v1162_v45  ;;  %v1154_v23 = vadd.f32 %v1153_v57, %v8274_v20  ;;  %v1581_v30 = vpop.f32.mrf.mxu0  ;;  %v9858_v45 = vcombine.low %v8442_v63, %v8468_v52  ;;  %v8785_v20 = vsel %vm7204_vm7, %v4514_v62, %v4515_v49  ;;  %v5958_v62 = vld [vmem:[%s6874_s28 + $0x9c] sm:$0xe] }
 0x129   : > { %v6305_v14 = vpop.f32.mrf.mxu1  ;;  %v4521_v63 = vrot.slane %v4519_v34, 4  ;;  %v8797_v52 = vrot.slane %v3979_v11, 5  ;;  %v4526_v49 = vrot.slane %v8752_v24, 5  ;;  %v4003_v24 = vshll.u32 %v8800_v27, 16 }
 0x12a   : > { %v8776_v37 = vadd.f32 %v1578_v33, %v1154_v23  ;;  %v1165_v40 = vadd.f32 %v6305_v14, %v8293_v53  ;;  %v6342_v56 = vpop.f32.mrf.mxu0  ;;  %6545 = vmatmul.mubr.msk.bf16.gmra.mxu0 %vm774_vm3, %v9858_v45  ;;  %v9859_v33 = vcombine.low %v8507_v21, %v8511_v1  ;;  %v8795_v53 = vsel %vm7204_vm7, %v5973_v16, %v4519_v34  ;;  %v5901_v1 = vld [vmem:[%s6874_s28 + $0xa4] sm:$0x1]  ;;  %v9860_v16 = vld [vmem:[#allocation11_spill] sm:$0xff] }
 0x12b   : > { %v1156_v39 = vpop.f32.mrf.mxu1  ;;  %v3958_v21 = vsel %vm6918_vm4, %v8774_v18, %v8709_v51  ;;  %v3994_v34 = vshrl.u32 %v5902_v22, 16  ;;  %v9862_v51 = vld [vmem:[#allocation16_spill] sm:$0xff]  ;;  %v4007_v18 = vshrl.u32 %v8800_v27, 16 }
 0x12c   : > { %6548 = vmatprep.mubr.msk.bf16.mxu0 %vm774_vm3, %v9859_v33  ;;  %v8802_v54 = vadd.f32 %v6339_v2, %v1165_v40  ;;  %v1157_v13 = vadd.f32 %v1156_v39, %v8338_v12  ;;  %v1594_v15 = vpop.f32.mrf.mxu0  ;;  %v3968_v40 = vsel %vm6918_vm4, %v3963_v32, %v3967_v38  ;;  %v3976_v2 = vor.u32 %v3975_v59, %v3972_v29  ;;  %v9863_v59 = vld [vmem:[#allocation12_spill] sm:$0xff] }
 0x12d   : > { %v6308_v57 = vpop.f32.mrf.mxu1  ;;  %6511 = vmatmul.mubr.msk.bf16.gmra.mxu1 %vm774_vm3, %v9860_v16  ;;  %v3997_v12 = vshll.u32 %v5902_v22, 16  ;;  %v8825_v39 = vsel %vm7204_vm7, %v4521_v63, %v4522_v6  ;;  %v3986_v32 = vor.u32 %v3985_v9, %v8797_v52  ;;  %v3989_v38 = vshll.u32 %v5901_v1, 16 }
 0x12e   : > { %v8816_v11 = vadd.f32 %v1581_v30, %v1157_v13  ;;  %v1178_v23 = vadd.f32 %v6308_v57, %v9861_v35  ;;  %v6343_v14 = vpop.f32.mrf.mxu0  ;;  %6514 = vmatprep.mubr.msk.bf16.mxu1 %vm774_vm3, %v9862_v51  ;;  %v5974_v30 = vrot.slane %v5958_v62, 9  ;;  %v4528_v13 = vrot.slane %v4526_v49, 4 }
 0x12f   : > { %v1169_v45 = vpop.f32.mrf.mxu1  ;;  %v4529_v57 = vrot.slane %v5901_v1, 5  ;;  %v8833_v51 = vrot.slane %v3976_v2, 4  ;;  %v3996_v6 = vrot.slane %v3994_v34, 4  ;;  %v3999_v63 = vrot.slane %v3997_v12, 5  ;;  %v8843_v1 = vld [vmem:[%s6874_s28 + $0xb0] sm:$0x1] }
 0x130   : > { %v8828_v29 = vadd.f32 %v6342_v56, %v1178_v23  ;;  %v1170_v22 = vadd.f32 %v1169_v45, %v9863_v59  ;;  %v1597_v33 = vpop.f32.mrf.mxu0  ;;  %v8845_v23 = vrot.slane %v4003_v24, 5  ;;  %v4009_v2 = vrot.slane %v4007_v18, 4  ;;  %v9865_v12 = vld [vmem:[#allocation14_spill] sm:$0xff] }
 0x131   : > { %v6309_v16 = vpop.f32.mrf.mxu1  ;;  %v8855_v43 = vrot.slane %v3986_v32, 4  ;;  %v8857_v17 = vrot.slane %v3989_v38, 5  ;;  %v8865_v58 = vsel %vm7204_vm7, %v5974_v30, %v4526_v49  ;;  %v8869_v36 = vsel %vm7204_vm7, %v4528_v13, %v4529_v57  ;;  %v8881_v30 = vld [vmem:[%s6874_s28 + $0xb8] sm:$0xf] }
 0x132   : > { %v8835_v9 = vadd.f32 %v1594_v15, %v1170_v22  ;;  %v1181_v62 = vadd.f32 %v6309_v16, %v9864_v4  ;;  %v6346_v56 = vpop.f32.mrf.mxu0  ;;  %6549 = vmatmul.mubr.msk.bf16.gmra.mxu0 %vm774_vm3, %v5985_v10  ;;  %v8851_v15 = vcombine.low %v3958_v21, %v3968_v40  ;;  %v5959_v10 = vld [vmem:[%s6874_s28 + $0xa8] sm:$0xe]  ;;  %v4000_v32 = vor.u32 %v3999_v63, %v3996_v6  ;;  %v9867_v22 = vld [vmem:[#allocation9_spill] sm:$0xff] }
 0x133   : > { %v1172_v45 = vpop.f32.mrf.mxu1  ;;  %6552 = vmatprep.mubr.msk.bf16.mxu0 %vm774_vm3, %v5986_v41  ;;  %v5905_v41 = vld [vmem:[%s6874_s28 + $0xb4] sm:$0xf]  ;;  %v9866_v40 = vld [vmem:[#allocation19_spill] sm:$0xff]  ;;  %v4013_v38 = vshll.u32 %v8843_v1, 16  ;;  %v4533_v49 = vrot.slane %v8800_v27, 5  ;;  %v4010_v16 = vor.u32 %v4009_v2, %v8845_v23  ;;  %v3992_v27 = vsel %vm6918_vm4, %v8855_v43, %v8857_v17 }
 0x134   : > { %v8860_v34 = vadd.f32 %v6343_v14, %v1181_v62  ;;  %v1173_v24 = vadd.f32 %v1172_v45, %v9865_v12  ;;  %v1610_v18 = vpop.f32.mrf.mxu0  ;;  %v5975_v62 = vrot.slane %v5959_v10, 9  ;;  %v4018_v6 = vshrl.u32 %v5905_v41, 16 }
 0x135   : > { %v6312_v21 = vpop.f32.mrf.mxu1  ;;  %6515 = vmatmul.mubr.msk.bf16.gmra.mxu1 %vm774_vm3, %v9866_v40  ;;  %v4021_v63 = vshll.u32 %v5905_v41, 16  ;;  %v4027_v2 = vshll.u32 %v8881_v30, 16  ;;  %v4031_v10 = vshrl.u32 %v8881_v30, 16  ;;  %v5908_v40 = vld [vmem:[%s6874_s28 + $0xc0] sm:$0xf]  ;;  %v4001_v4 = vrot.slane %v4000_v32, 4 }
 0x136   : > { %v8883_v59 = vadd.f32 %v1597_v33, %v1173_v24  ;;  %v1194_v13 = vadd.f32 %v6312_v21, %v9867_v22  ;;  %v6347_v57 = vpop.f32.mrf.mxu0  ;;  %6518 = vmatprep.mubr.msk.bf16.mxu1 %vm774_vm3, %v8735_v46  ;;  %v9869_v24 = vld [vmem:[#allocation18_spill] sm:$0xff]  ;;  %v4015_v43 = vrot.slane %v4013_v38, 5  ;;  %v4535_v17 = vrot.slane %v4533_v49, 4 }
 0x137   : > { %v1185_v45 = vpop.f32.mrf.mxu1  ;;  %v4536_v33 = vrot.slane %v8843_v1, 5  ;;  %v8911_v14 = vsel %vm7204_vm7, %v5975_v62, %v4533_v49  ;;  %v8914_v32 = vld [vmem:[%s6874_s28 + $0xc4] sm:$0xf]  ;;  %v9873_v1 = vcombine.low %v8693_v25, %v8697_v50  ;;  %v8926_v62 = vrot.slane %v4027_v2, 5 }
 0x138   : > { %v8895_v12 = vadd.f32 %v6346_v56, %v1194_v13  ;;  %v1186_v21 = vadd.f32 %v1185_v45, %v9869_v24  ;;  %v1613_v46 = vpop.f32.mrf.mxu0  ;;  %v9871_v56 = vld [vmem:[#allocation21_spill] sm:$0xff]  ;;  %v9872_v45 = vcombine.low %v8681_v47, %v8685_v7  ;;  %v4011_v24 = vrot.slane %v4010_v16, 4  ;;  %v9874_v16 = vld [vmem:[#allocation23_spill] sm:$0xff] }
 0x139   : > { %v6313_v22 = vpop.f32.mrf.mxu1  ;;  %v4042_v47 = vshrl.u32 %v5908_v40, 16  ;;  %v4045_v7 = vshll.u32 %v5908_v40, 16  ;;  %v4006_v25 = vsel %vm6918_vm4, %v4001_v4, %v8845_v23  ;;  %v8935_v50 = vsel %vm7204_vm7, %v4535_v17, %v4536_v33  ;;  %v5960_v40 = vld [vmem:[%s6874_s28 + $0xb4] sm:$0xe] }
 0x13a   : > { %9868 = vst [vmem:[#allocation11_spill] sm:$0xff] %v8895_v12  ;;  %v8902_v35 = vadd.f32 %v1610_v18, %v1186_v21  ;;  %v1197_v41 = vadd.f32 %v6313_v22, %v9871_v56  ;;  %v6350_v13 = vpop.f32.mrf.mxu0  ;;  %6553 = vmatmul.mubr.msk.bf16.gmra.mxu0 %vm774_vm3, %v9872_v45  ;;  %v8921_v18 = vld [vmem:[%s6874_s28 + $0xbc] sm:$0x1]  ;;  %v4020_v21 = vrot.slane %v4018_v6, 4  ;;  %v4023_v22 = vrot.slane %v4021_v63, 5 }
 0x13b   : > { %v1188_v38 = vpop.f32.mrf.mxu1  ;;  %6556 = vmatprep.mubr.msk.bf16.mxu0 %vm774_vm3, %v9873_v1  ;;  %v4055_v6 = vshrl.u32 %v8914_v32, 16  ;;  %v4037_v23 = vshll.u32 %v8921_v18, 16  ;;  %v4540_v17 = vrot.slane %v8881_v30, 5  ;;  %v9875_v1 = vld [vmem:[#allocation25_spill] sm:$0xff] }
 0x13c   : > { %9870 = vst [vmem:[#allocation8_spill] sm:$0xff] %v8902_v35  ;;  %v8923_v56 = vadd.f32 %v6347_v57, %v1197_v41  ;;  %v1189_v45 = vadd.f32 %v1188_v38, %v9874_v16  ;;  %v1626_v49 = vpop.f32.mrf.mxu0  ;;  %v4033_v35 = vrot.slane %v4031_v10, 4  ;;  %v4051_v57 = vshll.u32 %v8914_v32, 16 }
 0x13d   : > { %v6316_v12 = vpop.f32.mrf.mxu1  ;;  %6519 = vmatmul.mubr.msk.bf16.gmra.mxu1 %vm774_vm3, %v8737_v61  ;;  %v4016_v61 = vsel %vm6918_vm4, %v4011_v24, %v4015_v43  ;;  %v4024_v33 = vor.u32 %v4023_v22, %v4020_v21  ;;  %v4044_v41 = vrot.slane %v4042_v47, 4  ;;  %v4047_v38 = vrot.slane %v4045_v7, 5 }
 0x13e   : > { %v8939_v63 = vadd.f32 %v1613_v46, %v1189_v45  ;;  %v1210_v2 = vadd.f32 %v6316_v12, %v8645_v28  ;;  %v6351_v10 = vpop.f32.mrf.mxu0  ;;  %6522 = vmatprep.mubr.msk.bf16.mxu1 %vm774_vm3, %v8743_v60  ;;  %v9876_v60 = vsel %vm6918_vm4, %v8833_v51, %v8797_v52  ;;  %v4034_v24 = vor.u32 %v4033_v35, %v8926_v62 }
 0x13f   : > { %v1201_v4 = vpop.f32.mrf.mxu1  ;;  %v8957_v43 = vcombine.low %v9876_v60, %v3992_v27  ;;  %v8960_v30 = vcombine.low %v4006_v25, %v4016_v61  ;;  %v8964_v22 = vrot.slane %v4051_v57, 5  ;;  %v4057_v47 = vrot.slane %v4055_v6, 4  ;;  %v5910_v27 = vld [vmem:[%s6874_s28 + $0xc8] sm:$0x1] }
 0x140   : > { %v8949_v46 = vadd.f32 %v6350_v13, %v1210_v2  ;;  %v1202_v28 = vadd.f32 %v1201_v4, %v9875_v1  ;;  %v1629_v12 = vpop.f32.mrf.mxu0  ;;  %v5992_v13 = vcombine.low %v8911_v14, %v8935_v50  ;;  %v9877_v52 = vcombine.low %v8763_v3, %v8785_v20  ;;  %v5911_v14 = vld [vmem:[%s6874_s28 + $0xcc] sm:$0xf]  ;;  %v8985_v20 = vld [vmem:[%s6874_s28 + $0xd0] sm:$0xf]  ;;  %v5961_v4 = vld [vmem:[%s6874_s28 + $0xc0] sm:$0xe] }
 0x141   : > { %v6317_v21 = vpop.f32.mrf.mxu1  ;;  %v8973_v35 = vrot.slane %v4037_v23, 5  ;;  %v5976_v51 = vrot.slane %v5960_v40, 9  ;;  %v9878_v50 = vcombine.low %v8795_v53, %v8825_v39  ;;  %v4543_v57 = vrot.slane %v8921_v18, 5 }
 0x142   : > { %v8966_v7 = vadd.f32 %v1626_v49, %v1202_v28  ;;  %v1213_v16 = vadd.f32 %v6317_v21, %v8668_v19  ;;  %v6354_v45 = vpop.f32.mrf.mxu0  ;;  %6557 = vmatmul.mubr.msk.bf16.gmra.mxu0 %vm774_vm3, %v9877_v52  ;;  %v8981_v49 = vrot.slane %v4024_v33, 4  ;;  %v4542_v19 = vrot.slane %v4540_v17, 4 }
 0x143   : > { %v1204_v25 = vpop.f32.mrf.mxu1  ;;  %6560 = vmatprep.mubr.msk.bf16.mxu0 %vm774_vm3, %v9878_v50  ;;  %v4048_v3 = vor.u32 %v4047_v38, %v4044_v41  ;;  %v8990_v23 = vrot.slane %v4034_v24, 4  ;;  %v4547_v53 = vrot.slane %v8914_v32, 5  ;;  %v4058_v33 = vor.u32 %v4057_v47, %v8964_v22 }
 0x144   : > { %v8987_v6 = vadd.f32 %v6351_v10, %v1213_v16  ;;  %v1205_v2 = vadd.f32 %v1204_v25, %v8700_v26  ;;  %v1642_v61 = vpop.f32.mrf.mxu0  ;;  %v4061_v18 = vshll.u32 %v5910_v27, 16  ;;  %v4066_v40 = vshrl.u32 %v5911_v14, 16  ;;  %v9881_v10 = vld [vmem:[#allocation4_spill] sm:$0xff]  ;;  %v9882_v16 = vld [vmem:[#allocation3_spill] sm:$0xff] }
 0x145   : > { %v6320_v39 = vpop.f32.mrf.mxu1  ;;  %6523 = vmatmul.mubr.msk.bf16.gmra.mxu1 %vm774_vm3, %v8772_v48  ;;  %v4069_v41 = vshll.u32 %v5911_v14, 16  ;;  %v4075_v28 = vshll.u32 %v8985_v20, 16  ;;  %v4079_v32 = vshrl.u32 %v8985_v20, 16  ;;  %v4541_v48 = vsel %vm7204_vm7, %v5976_v51, %v4540_v17  ;;  %v9883_v17 = vld [vmem:[#allocation6_spill] sm:$0xff] }
 0x146   : > { %9879 = vst [vmem:[#allocation16_spill] sm:$0xff] %v8987_v6  ;;  %v8997_v38 = vadd.f32 %v1629_v12, %v1205_v2  ;;  %v1226_v1 = vadd.f32 %v6320_v39, %v9881_v10  ;;  %v6355_v26 = vpop.f32.mrf.mxu0  ;;  %6526 = vmatprep.mubr.msk.bf16.mxu1 %vm774_vm3, %v8851_v15  ;;  %v4544_v24 = vsel %vm7204_vm7, %v4542_v19, %v4543_v57  ;;  %v4049_v21 = vrot.slane %v4048_v3, 4 }
 0x147   : > { %v1217_v60 = vpop.f32.mrf.mxu1  ;;  %v5977_v12 = vrot.slane %v5961_v4, 9  ;;  %v4549_v25 = vrot.slane %v4547_v53, 4  ;;  %v4550_v15 = vrot.slane %v5910_v27, 5  ;;  %v4059_v2 = vrot.slane %v4058_v33, 4  ;;  %v5913_v33 = vld [vmem:[%s6874_s28 + $0xd4] sm:$0x1] }
 0x148   : > { %9880 = vst [vmem:[#allocation12_spill] sm:$0xff] %v8997_v38  ;;  %v9008_v47 = vadd.f32 %v6354_v45, %v1226_v1  ;;  %v1218_v52 = vadd.f32 %v1217_v60, %v9882_v16  ;;  %v1645_v14 = vpop.f32.mrf.mxu0  ;;  %v4063_v39 = vrot.slane %v4061_v18, 5  ;;  %v4068_v10 = vrot.slane %v4066_v40, 4  ;;  %v9885_v18 = vld [vmem:[#allocation5_spill] sm:$0xff] }
 0x149   : > { %v6321_v50 = vpop.f32.mrf.mxu1  ;;  %v4071_v38 = vrot.slane %v4069_v41, 5  ;;  %v9884_v45 = vcombine.low %v8865_v58, %v8869_v36  ;;  %v9018_v57 = vrot.slane %v4075_v28, 5  ;;  %v4081_v27 = vrot.slane %v4079_v32, 4 }
 0x14a   : > { %v9011_v6 = vadd.f32 %v1642_v61, %v1218_v52  ;;  %v1229_v51 = vadd.f32 %v6321_v50, %v9883_v17  ;;  %v6358_v19 = vpop.f32.mrf.mxu0  ;;  %v4030_v61 = vsel %vm6918_vm4, %v8981_v49, %v8926_v62  ;;  %v4040_v4 = vsel %vm6918_vm4, %v8990_v23, %v8973_v35  ;;  %v5962_v62 = vld [vmem:[%s6874_s28 + $0xcc] sm:$0xe] }
 0x14b   : > { %6561 = vmatmul.mubr.msk.bf16.gmra.mxu0 %vm774_vm3, %v9884_v45  ;;  %v1220_v3 = vpop.f32.mrf.mxu1  ;;  %v4554_v58 = vrot.slane %v8985_v20, 5  ;;  %v4551_v1 = vsel %vm7204_vm7, %v4549_v25, %v4550_v15  ;;  %v5993_v35 = vcombine.low %v4541_v48, %v4544_v24  ;;  %v4054_v20 = vsel %vm6918_vm4, %v4049_v21, %v8964_v22  ;;  %v9887_v25 = vld [vmem:[#allocation10_spill] sm:$0xff] }
 0x14c   : > { %6564 = vmatprep.mubr.msk.bf16.mxu0 %vm774_vm3, %v5992_v13  ;;  %v9031_v36 = vadd.f32 %v6355_v26, %v1229_v51  ;;  %v1221_v40 = vadd.f32 %v1220_v3, %v9885_v18  ;;  %v1658_v41 = vpop.f32.mrf.mxu0  ;;  %v4548_v13 = vsel %vm7204_vm7, %v5977_v12, %v4547_v53  ;;  %v4064_v23 = vsel %vm6918_vm4, %v4059_v2, %v4063_v39  ;;  %v9886_v53 = vld [vmem:[#allocation7_spill] sm:$0xff] }
 0x14d   : > { %v6324_v49 = vpop.f32.mrf.mxu1  ;;  %6527 = vmatmul.mubr.msk.bf16.gmra.mxu1 %vm774_vm3, %v8957_v43  ;;  %v4072_v26 = vor.u32 %v4071_v38, %v4068_v10  ;;  %v4082_v12 = vor.u32 %v4081_v27, %v9018_v57  ;;  %v4085_v43 = vshll.u32 %v5913_v33, 16  ;;  %v5994_v24 = vcombine.low %v4548_v13, %v4551_v1 }
 0x14e   : > { %v9046_v28 = vadd.f32 %v1645_v14, %v1221_v40  ;;  %v1242_v32 = vadd.f32 %v6324_v49, %v9886_v53  ;;  %v6359_v60 = vpop.f32.mrf.mxu0  ;;  %6530 = vmatprep.mubr.msk.bf16.mxu1 %vm774_vm3, %v8960_v30  ;;  %v5978_v16 = vrot.slane %v5962_v62, 9  ;;  %v4556_v52 = vrot.slane %v4554_v58, 4  ;;  %v9888_v30 = vld [vmem:[#allocation13_spill] sm:$0xff] }
 0x14f   : > { %v1233_v48 = vpop.f32.mrf.mxu1  ;;  %v4557_v22 = vrot.slane %v5913_v33, 5  ;;  %v5928_v50 = vcombine.low %v4030_v61, %v4040_v4  ;;  %v5929_v2 = vcombine.low %v4054_v20, %v4064_v23  ;;  %v4073_v39 = vrot.slane %v4072_v26, 4  ;;  %v9889_v33 = vld [vmem:[#allocation15_spill] sm:$0xff]  ;;  %v9890_v62 = vld [vmem:[#allocation17_spill] sm:$0xff]  ;;  %v9891_v26 = vld [vmem:[#allocation20_spill] sm:$0xff] }
 0x150   : > { %v9052_v21 = vadd.f32 %v6358_v19, %v1242_v32  ;;  %v1234_v38 = vadd.f32 %v1233_v48, %v9887_v25  ;;  %v1661_v14 = vpop.f32.mrf.mxu0  ;;  %v4083_v45 = vrot.slane %v4082_v12, 4  ;;  %v4087_v27 = vrot.slane %v4085_v43, 5  ;;  %v9892_v43 = vld [vmem:[#allocation22_spill] sm:$0xff] }
 0x151   : > { %v6325_v15 = vpop.f32.mrf.mxu1  ;;  %v4555_v19 = vsel %vm7204_vm7, %v5978_v16, %v4554_v58  ;;  %v4558_v61 = vsel %vm7204_vm7, %v4556_v52, %v4557_v22  ;;  %v4078_v13 = vsel %vm6918_vm4, %v4073_v39, %v9018_v57 }
 0x152   : > { %v9055_v10 = vadd.f32 %v1658_v41, %v1234_v38  ;;  %v1245_v17 = vadd.f32 %v6325_v15, %v9888_v30  ;;  %v6362_v51 = vpop.f32.mrf.mxu0  ;;  %v4088_v0 = vsel %vm6918_vm4, %v4083_v45, %v4087_v27 }
 0x153   : > { %6565 = vmatmul.mubr.msk.bf16.gmra.mxu0 %vm774_vm3, %v5993_v35  ;;  %v1236_v3 = vpop.f32.mrf.mxu1  ;;  %v5995_v35 = vcombine.low %v4555_v19, %v4558_v61  ;;  %v5930_v12 = vcombine.low %v4078_v13, %v4088_v0 }
 0x154   : > { %6568 = vmatprep.mubr.msk.bf16.mxu0 %vm774_vm3, %v5994_v24  ;;  %v9064_v4 = vadd.f32 %v6359_v60, %v1245_v17  ;;  %v1237_v18 = vadd.f32 %v1236_v3, %v9889_v33  ;;  %v1674_v40 = vpop.f32.mrf.mxu0 }
 0x155   : > { %v6328_v41 = vpop.f32.mrf.mxu1  ;;  %6531 = vmatmul.mubr.msk.bf16.gmra.mxu1 %vm774_vm3, %v5928_v50 }
 0x156   : > { %v9071_v1 = vadd.f32 %v1661_v14, %v1237_v18  ;;  %v1258_v49 = vadd.f32 %v6328_v41, %v9890_v62  ;;  %v6363_v58 = vpop.f32.mrf.mxu0  ;;  %6534 = vmatprep.mubr.msk.bf16.mxu1 %vm774_vm3, %v5929_v2 }
 0x157   : > { %v1249_v20 = vpop.f32.mrf.mxu1 }
 0x158   : > { %v9077_v23 = vadd.f32 %v6362_v51, %v1258_v49  ;;  %v1250_v53 = vadd.f32 %v1249_v20, %v9891_v26  ;;  %v1677_v32 = vpop.f32.mrf.mxu0 }
 0x159   : > { %v6329_v60 = vpop.f32.mrf.mxu1 }
 0x15a   : > { %v9080_v57 = vadd.f32 %v1674_v40, %v1250_v53  ;;  %v1261_v48 = vadd.f32 %v6329_v60, %v9892_v43  ;;  %v6366_v24 = vpop.f32.mrf.mxu0 }
 0x15b   : > { %6569 = vmatmul.mubr.msk.bf16.gmra.mxu0 %vm774_vm3, %v5995_v35  ;;  %v1252_v16 = vpop.f32.mrf.mxu1 }
 0x15c   : > { %v9084_v52 = vadd.f32 %v6363_v58, %v1261_v48  ;;  %v1253_v22 = vadd.f32 %v1252_v16, %v9893_v31  ;;  %v1690_v25 = vpop.f32.mrf.mxu0 }
 0x15d   : > { %v6332_v38 = vpop.f32.mrf.mxu1  ;;  %6535 = vmatmul.mubr.msk.bf16.gmra.mxu1 %vm774_vm3, %v5930_v12 }
 0x15e   : > { %v9088_v14 = vadd.f32 %v1677_v32, %v1253_v22  ;;  %v1274_v15 = vadd.f32 %v6332_v38, %v8660_v42  ;;  %v6367_v50 = vpop.f32.mrf.mxu0 }
 0x15f   : > { %v1265_v2 = vpop.f32.mrf.mxu1 }
 0x160   : > { %v9091_v39 = vadd.f32 %v6366_v24, %v1274_v15  ;;  %v1266_v30 = vadd.f32 %v1265_v2, %v8687_v44  ;;  %v1693_v17 = vpop.f32.mrf.mxu0 }
 0x161   : > { %v6333_v51 = vpop.f32.mrf.mxu1 }
 0x162   : > { %v9094_v45 = vadd.f32 %v1690_v25, %v1266_v30  ;;  %v1277_v27 = vadd.f32 %v6333_v51, %v8702_v8  ;;  %v6406_v3 = vpop.f32.mrf.mxu0  ;;  %v9894_v30 = vld [vmem:[#allocation11_spill] sm:$0xff] }
 0x163   : > { %v1268_v19 = vpop.f32.mrf.mxu1 }
 0x164   : > { %v9097_v61 = vadd.f32 %v6367_v50, %v1277_v27  ;;  %v1269_v33 = vadd.f32 %v1268_v19, %v8724_v55  ;;  %v2666_v18 = vpop.f32.mrf.mxu0 }
 0x165   : > { %v6372_v42 = vpop.f32.mrf.mxu1 }
 0x166   : > { %v9100_v40 = vadd.f32 %v1693_v17, %v1269_v33  ;;  %v2069_v41 = vadd.f32 %v6372_v42, %v8769_v5  ;;  %v6407_v13 = vpop.f32.mrf.mxu0 }
 0x167   : > { %v1940_v44 = vpop.f32.mrf.mxu1 }
 0x168   : > { %v9103_v62 = vadd.f32 %v6406_v3, %v2069_v41  ;;  %v2067_v49 = vadd.f32 %v1940_v44, %v8776_v37  ;;  %v2669_v58 = vpop.f32.mrf.mxu0  ;;  %v9895_v3 = vld [vmem:[#allocation8_spill] sm:$0xff] }
 0x169   : > { %v6373_v8 = vpop.f32.mrf.mxu1 }
 0x16a   : > { %v9106_v0 = vadd.f32 %v2666_v18, %v2067_v49  ;;  %v2070_v35 = vadd.f32 %v6373_v8, %v8802_v54  ;;  %v6410_v20 = vpop.f32.mrf.mxu0 }
 0x16b   : > { %v1943_v55 = vpop.f32.mrf.mxu1 }
 0x16c   : > { %v9109_v26 = vadd.f32 %v6407_v13, %v2070_v35  ;;  %v2068_v53 = vadd.f32 %v1943_v55, %v8816_v11  ;;  %v2682_v32 = vpop.f32.mrf.mxu0 }
 0x16d   : > { %v6376_v5 = vpop.f32.mrf.mxu1 }
 0x16e   : > { %v9112_v60 = vadd.f32 %v2669_v58, %v2068_v53  ;;  %v2073_v12 = vadd.f32 %v6376_v5, %v8828_v29  ;;  %v6411_v43 = vpop.f32.mrf.mxu0 }
 0x16f   : > { %v1956_v37 = vpop.f32.mrf.mxu1 }
 0x170   : > { %v9115_v48 = vadd.f32 %v6410_v20, %v2073_v12  ;;  %v2071_v24 = vadd.f32 %v1956_v37, %v8835_v9  ;;  %v2685_v16 = vpop.f32.mrf.mxu0 }
 0x171   : > { %v6377_v54 = vpop.f32.mrf.mxu1 }
 0x172   : > { %v9118_v31 = vadd.f32 %v2682_v32, %v2071_v24  ;;  %v2074_v22 = vadd.f32 %v6377_v54, %v8860_v34  ;;  %v6414_v25 = vpop.f32.mrf.mxu0  ;;  %v9900_v54 = vld [vmem:[#allocation12_spill] sm:$0xff] }
 0x173   : > { %v1959_v11 = vpop.f32.mrf.mxu1 }
 0x174   : > { %v9121_v38 = vadd.f32 %v6411_v43, %v2074_v22  ;;  %v2072_v15 = vadd.f32 %v1959_v11, %v8883_v59  ;;  %v2698_v50 = vpop.f32.mrf.mxu0  ;;  %v9898_v43 = vld [vmem:[#allocation16_spill] sm:$0xff] }
 0x175   : > { %v6380_v29 = vpop.f32.mrf.mxu1 }
 0x176   : > { %v9124_v2 = vadd.f32 %v2685_v16, %v2072_v15  ;;  %v2077_v17 = vadd.f32 %v6380_v29, %v9894_v30  ;;  %v6415_v51 = vpop.f32.mrf.mxu0 }
 0x177   : > { %v1972_v9 = vpop.f32.mrf.mxu1 }
 0x178   : > { %v9127_v27 = vadd.f32 %v6414_v25, %v2077_v17  ;;  %v2075_v19 = vadd.f32 %v1972_v9, %v9895_v3  ;;  %v2701_v33 = vpop.f32.mrf.mxu0 }
 0x179   : > { %v6381_v34 = vpop.f32.mrf.mxu1 }
 0x17a   : > { %v9130_v18 = vadd.f32 %v2698_v50, %v2075_v19  ;;  %v2078_v42 = vadd.f32 %v6381_v34, %v8923_v56  ;;  %v6418_v41 = vpop.f32.mrf.mxu0 }
 0x17b   : > { %v1975_v59 = vpop.f32.mrf.mxu1 }
 0x17c   : > { %v9133_v13 = vadd.f32 %v6415_v51, %v2078_v42  ;;  %v2076_v44 = vadd.f32 %v1975_v59, %v8939_v63  ;;  %v2714_v49 = vpop.f32.mrf.mxu0 }
 0x17d   : > { %v6384_v58 = vpop.f32.mrf.mxu1 }
 0x17e   : > { %v9136_v8 = vadd.f32 %v2701_v33, %v2076_v44  ;;  %v2081_v35 = vadd.f32 %v6384_v58, %v8949_v46  ;;  %v6419_v20 = vpop.f32.mrf.mxu0 }
 0x17f   : > { %v1988_v55 = vpop.f32.mrf.mxu1 }
 0x180   : > { %v9139_v53 = vadd.f32 %v6418_v41, %v2081_v35  ;;  %v2079_v32 = vadd.f32 %v1988_v55, %v8966_v7  ;;  %v2717_v5 = vpop.f32.mrf.mxu0 }
 0x181   : > { %v6385_v56 = vpop.f32.mrf.mxu1 }
 0x182   : > { %9896 = vst [vmem:[#allocation2_spill] sm:$0xff] %v9139_v53  ;;  %v9142_v12 = vadd.f32 %v2714_v49, %v2079_v32  ;;  %v2082_v37 = vadd.f32 %v6385_v56, %v9898_v43  ;;  %v6422_v24 = vpop.f32.mrf.mxu0 }
 0x183   : > { %v1991_v63 = vpop.f32.mrf.mxu1 }
 0x184   : > { %9897 = vst [vmem:[#allocation14_spill] sm:$0xff] %v9142_v12  ;;  %v9145_v16 = vadd.f32 %v6419_v20, %v2082_v37  ;;  %v2080_v22 = vadd.f32 %v1991_v63, %v9900_v54  ;;  %v2730_v25 = vpop.f32.mrf.mxu0 }
 0x185   : > { %v6388_v46 = vpop.f32.mrf.mxu1 }
 0x186   : > { %9899 = vst [vmem:[#allocation19_spill] sm:$0xff] %v9145_v16  ;;  %v9148_v11 = vadd.f32 %v2717_v5, %v2080_v22  ;;  %v2085_v15 = vadd.f32 %v6388_v46, %v9008_v47  ;;  %v6423_v50 = vpop.f32.mrf.mxu0 }
 0x187   : > { %v2004_v7 = vpop.f32.mrf.mxu1 }
 0x188   : > { %9901 = vst [vmem:[#allocation9_spill] sm:$0xff] %v9148_v11  ;;  %v9151_v29 = vadd.f32 %v6422_v24, %v2085_v15  ;;  %v2083_v30 = vadd.f32 %v2004_v7, %v9011_v6  ;;  %v2733_v17 = vpop.f32.mrf.mxu0 }
 0x189   : > { %v6389_v51 = vpop.f32.mrf.mxu1 }
 0x18a   : > { %9902 = vst [vmem:[#allocation18_spill] sm:$0xff] %v9151_v29  ;;  %v9154_v9 = vadd.f32 %v2730_v25, %v2083_v30  ;;  %v2086_v3 = vadd.f32 %v6389_v51, %v9031_v36  ;;  %v6426_v19 = vpop.f32.mrf.mxu0 }
 0x18b   : > { %v2007_v33 = vpop.f32.mrf.mxu1 }
 0x18c   : > { %9903 = vst [vmem:[#allocation21_spill] sm:$0xff] %v9154_v9  ;;  %v9157_v34 = vadd.f32 %v6423_v50, %v2086_v3  ;;  %v2084_v42 = vadd.f32 %v2007_v33, %v9046_v28  ;;  %v2746_v41 = vpop.f32.mrf.mxu0 }
 0x18d   : > { %v6392_v47 = vpop.f32.mrf.mxu1 }
 0x18e   : > { %9904 = vst [vmem:[#allocation23_spill] sm:$0xff] %v9157_v34  ;;  %v9160_v59 = vadd.f32 %v2733_v17, %v2084_v42  ;;  %v2089_v44 = vadd.f32 %v6392_v47, %v9052_v21  ;;  %v6427_v49 = vpop.f32.mrf.mxu0 }
 0x18f   : > { %v2020_v6 = vpop.f32.mrf.mxu1 }
 0x190   : > { %9905 = vst [vmem:[#allocation25_spill] sm:$0xff] %v9160_v59  ;;  %v9163_v58 = vadd.f32 %v6426_v19, %v2089_v44  ;;  %v2087_v35 = vadd.f32 %v2020_v6, %v9055_v10  ;;  %v2749_v20 = vpop.f32.mrf.mxu0 }
 0x191   : > { %v6393_v36 = vpop.f32.mrf.mxu1 }
 0x192   : > { %v9166_v55 = vadd.f32 %v2746_v41, %v2087_v35  ;;  %v2090_v32 = vadd.f32 %v6393_v36, %v9064_v4  ;;  %v6430_v5 = vpop.f32.mrf.mxu0 }
 0x193   : > { %v2023_v28 = vpop.f32.mrf.mxu1 }
 0x194   : > { %v9169_v56 = vadd.f32 %v6427_v49, %v2090_v32  ;;  %v2088_v43 = vadd.f32 %v2023_v28, %v9071_v1  ;;  %v2762_v37 = vpop.f32.mrf.mxu0 }
 0x195   : > { %v6396_v21 = vpop.f32.mrf.mxu1 }
 0x196   : > { %v9172_v24 = vadd.f32 %v2749_v20, %v2088_v43  ;;  %v2093_v63 = vadd.f32 %v6396_v21, %v9077_v23  ;;  %v6431_v54 = vpop.f32.mrf.mxu0 }
 0x197   : > { %v2036_v10 = vpop.f32.mrf.mxu1 }
 0x198   : > { %v9175_v22 = vadd.f32 %v6430_v5, %v2093_v63  ;;  %v2091_v25 = vadd.f32 %v2036_v10, %v9080_v57  ;;  %v2765_v46 = vpop.f32.mrf.mxu0 }
 0x199   : > { %v6397_v4 = vpop.f32.mrf.mxu1 }
 0x19a   : > { %v9178_v15 = vadd.f32 %v2762_v37, %v2091_v25  ;;  %v2094_v50 = vadd.f32 %v6397_v4, %v9084_v52  ;;  %v6434_v7 = vpop.f32.mrf.mxu0 }
 0x19b   : > { %v2039_v1 = vpop.f32.mrf.mxu1 }
 0x19c   : > { %v9181_v30 = vadd.f32 %v6431_v54, %v2094_v50  ;;  %v2092_v17 = vadd.f32 %v2039_v1, %v9088_v14  ;;  %v2778_v51 = vpop.f32.mrf.mxu0 }
 0x19d   : > { %v6400_v23 = vpop.f32.mrf.mxu1 }
 0x19e   : > { %v9184_v3 = vadd.f32 %v2765_v46, %v2092_v17  ;;  %v2097_v19 = vadd.f32 %v6400_v23, %v9091_v39  ;;  %v6435_v33 = vpop.f32.mrf.mxu0 }
 0x19f   : > { %v2052_v57 = vpop.f32.mrf.mxu1 }
 0x1a0   : > { %v9187_v42 = vadd.f32 %v6434_v7, %v2097_v19  ;;  %v2095_v41 = vadd.f32 %v2052_v57, %v9094_v45  ;;  %v2781_v47 = vpop.f32.mrf.mxu0 }
 0x1a1   : > { %v6401_v52 = vpop.f32.mrf.mxu1 }
 0x1a2   : > { %v9190_v44 = vadd.f32 %v2778_v51, %v2095_v41  ;;  %v2098_v49 = vadd.f32 %v6401_v52, %v9097_v61  ;;  %v9193_v6 = vpop.f32.mrf.mxu0 }
 0x1a3   : > { %v2055_v14 = vpop.f32.mrf.mxu1 }
 0x1a4   : > { %v9195_v35 = vadd.f32 %v6435_v33, %v2098_v49  ;;  %v2096_v20 = vadd.f32 %v2055_v14, %v9100_v40  ;;  %v9198_v39 = vpop.f32.mrf.mxu0 }
 0x1a5   : > { %v9200_v36 = vpop.f32.mrf.mxu1 }
 0x1a6   : > { %v9202_v32 = vadd.f32 %v2781_v47, %v2096_v20  ;;  %v9204_v45 = vpop.f32.mrf.mxu0 }
 0x1a7   : > { %v9206_v5 = vpop.f32.mrf.mxu1 }
 0x1a8   : > { %v9208_v28 = vpop.f32.mrf.mxu0 }
 0x1a9   : > { %v9210_v61 = vpop.f32.mrf.mxu1 }
 0x1aa   : > { %v9212_v43 = vpop.f32.mrf.mxu0 }
 0x1ab   : > { %v9214_v37 = vpop.f32.mrf.mxu1 }
 0x1ac   : > { %v9216_v21 = vpop.f32.mrf.mxu0 }
 0x1ad   : > { %v9218_v40 = vpop.f32.mrf.mxu1 }
 0x1ae   : > { %v9220_v63 = vpop.f32.mrf.mxu0 }
 0x1af   : > { %v9222_v54 = vpop.f32.mrf.mxu1 }
 0x1b0   : > { %v9224_v10 = vpop.f32.mrf.mxu0 }
 0x1b1   : > { %v9226_v25 = vpop.f32.mrf.mxu1 }
 0x1b2   : > { %v9228_v46 = vpop.f32.mrf.mxu0 }
 0x1b3   : > { %v9230_v4 = vpop.f32.mrf.mxu1 }
 0x1b4   : > { %v9232_v50 = vpop.f32.mrf.mxu0 }
 0x1b5   : > { %v9234_v7 = vpop.f32.mrf.mxu1 }
 0x1b6   : > { %v9236_v1 = vpop.f32.mrf.mxu0 }
 0x1b7   : > { %v9238_v17 = vpop.f32.mrf.mxu1 }
 0x1b8   : > { %v9240_v51 = vpop.f32.mrf.mxu0 }
 0x1b9   : > { %9906 = vst [vmem:[#allocation4_spill] sm:$0xff] %v9240_v51  ;;  %v9242_v23 = vpop.f32.mrf.mxu1 }
 0x1ba   : > { %v9244_v19 = vpop.f32.mrf.mxu0 }
 0x1bb   : > { %9907 = vst [vmem:[#allocation3_spill] sm:$0xff] %v9244_v19  ;;  %v9246_v33 = vpop.f32.mrf.mxu1 }
 0x1bc   : > { %v9248_v57 = vpop.f32.mrf.mxu0 }
 0x1bd   : > { %9908 = vst [vmem:[#allocation6_spill] sm:$0xff] %v9248_v57  ;;  %v9250_v41 = vpop.f32.mrf.mxu1 }
 0x1be   : > { %9909 = vst [vmem:[#allocation5_spill] sm:$0xff] %v9250_v41  ;;  %v9252_v47 = vpop.f32.mrf.mxu0 }
 0x1bf   : > { %9910 = vst [vmem:[#allocation7_spill] sm:$0xff] %v9252_v47  ;;  %v9254_v52 = vpop.f32.mrf.mxu1 }
 0x1c0   : > { %9911 = vst [vmem:[#allocation10_spill] sm:$0xff] %v9254_v52  ;;  %v9256_v49 = vpop.f32.mrf.mxu0 }
 0x1c1   : > { %9912 = vst [vmem:[#allocation13_spill] sm:$0xff] %v9256_v49  ;;  %v9258_v14 = vpop.f32.mrf.mxu1 }
 0x1c2   : > { %9913 = vst [vmem:[#allocation15_spill] sm:$0xff] %v9258_v14  ;;  %v9260_v20 = vpop.f32.mrf.mxu0 }
 0x1c3   : > { %9914 = vst [vmem:[#allocation17_spill] sm:$0xff] %v9260_v20  ;;  %v9262_v59 = vpop.f32.mrf.mxu1 }
 0x1c4   : > { %9915 = vst [vmem:[#allocation20_spill] sm:$0xff] %v9262_v59  ;;  %v9264_v34 = vpop.f32.mrf.mxu0 }
 0x1c5   : > { %9916 = vst [vmem:[#allocation22_spill] sm:$0xff] %v9264_v34  ;;  %v9266_v9 = vpop.f32.mrf.mxu1 }
 0x1c6   : > { %9917 = vst [vmem:[#allocation24_spill] sm:$0xff] %v9266_v9  ;;  %v9268_v29 = vpop.f32.mrf.mxu0 }
 0x1c7   : > { %9918 = vst [vmem:[#allocation11_spill] sm:$0xff] %v9268_v29  ;;  %v9270_v11 = vpop.f32.mrf.mxu1 }
 0x1c8   : > { %9919 = vst [vmem:[#allocation8_spill] sm:$0xff] %v9270_v11  ;;  %v9272_v57 = vpop.f32.mrf.mxu0 }
 0x1c9   : > { %9920 = vst [vmem:[#allocation16_spill] sm:$0xff] %v9272_v57  ;;  %v9274_v47 = vpop.f32.mrf.mxu1 }
 0x1ca   : > { %9921 = vst [vmem:[#allocation12_spill] sm:$0xff] %v9274_v47  ;;  %v6494_v19 = vpop.f32.mrf.mxu0 }
 0x1cb   : > { %v9276_v49 = vpop.f32.mrf.mxu1 }
 0x1cc   : > { %9922 = vst [vmem:[#allocation26_spill] sm:$0xff] %v9276_v49  ;;  %v3578_v51 = vpop.f32.mrf.mxu0 }
 0x1cd   : > { %v6460_v14 = vpop.f32.mrf.mxu1 }
 0x1ce   : > { %v3285_v20 = vadd.f32 %v6460_v14, %v9163_v58  ;;  %v6495_v59 = vpop.f32.mrf.mxu0 }
 0x1cf   : > { %v3216_v16 = vpop.f32.mrf.mxu1 }
 0x1d0   : > { %v9279_v34 = vadd.f32 %v6494_v19, %v3285_v20  ;;  %v3283_v9 = vadd.f32 %v3216_v16, %v9166_v55  ;;  %v3581_v29 = vpop.f32.mrf.mxu0 }
 0x1d1   : > { %v6461_v52 = vpop.f32.mrf.mxu1 }
 0x1d2   : > { %v9282_v11 = vadd.f32 %v3578_v51, %v3283_v9  ;;  %v3286_v57 = vadd.f32 %v6461_v52, %v9169_v56  ;;  %v6498_v47 = vpop.f32.mrf.mxu0 }
 0x1d3   : > { %v3219_v12 = vpop.f32.mrf.mxu1 }
 0x1d4   : > { %v9285_v41 = vadd.f32 %v6495_v59, %v3286_v57  ;;  %v3284_v49 = vadd.f32 %v3219_v12, %v9172_v24  ;;  %v3594_v53 = vpop.f32.mrf.mxu0 }
 0x1d5   : > { %v6464_v58 = vpop.f32.mrf.mxu1 }
 0x1d6   : > { %v9288_v14 = vadd.f32 %v3581_v29, %v3284_v49  ;;  %v3289_v19 = vadd.f32 %v6464_v58, %v9175_v22  ;;  %v6499_v20 = vpop.f32.mrf.mxu0 }
 0x1d7   : > { %v3232_v16 = vpop.f32.mrf.mxu1 }
 0x1d8   : > { %v9291_v55 = vadd.f32 %v6498_v47, %v3289_v19  ;;  %v3287_v9 = vadd.f32 %v3232_v16, %v9178_v15  ;;  %v3597_v51 = vpop.f32.mrf.mxu0 }
 0x1d9   : > { %v6465_v56 = vpop.f32.mrf.mxu1 }
 0x1da   : > { %v9294_v52 = vadd.f32 %v3594_v53, %v3287_v9  ;;  %v3290_v59 = vadd.f32 %v6465_v56, %v9181_v30  ;;  %v6502_v57 = vpop.f32.mrf.mxu0  ;;  %v3265_v53 = vadd.f32 %v9200_v36, %v9103_v62  ;;  %v3266_v62 = vadd.f32 %v9210_v61, %v9109_v26 }
 0x1db   : > { %v3235_v12 = vpop.f32.mrf.mxu1  ;;  %v3267_v26 = vadd.f32 %v9222_v54, %v9118_v31  ;;  %v3273_v31 = vadd.f32 %v9234_v7, %v9127_v27  ;;  %v9345_v54 = vld [vmem:[%s9706_s3] ss:$0 sm:$0xff] }
 0x1dc   : > { %v9297_v24 = vadd.f32 %v6499_v20, %v3290_v59  ;;  %v3288_v29 = vadd.f32 %v3235_v12, %v9184_v3  ;;  %v3610_v49 = vpop.f32.mrf.mxu0  ;;  %v3263_v3 = vadd.f32 %v9206_v5, %v9106_v0  ;;  %v3627_v12 = vadd.f32 %v9193_v6, %v3265_v53 }
 0x1dd   : > { %v6468_v22 = vpop.f32.mrf.mxu1  ;;  %v3264_v0 = vadd.f32 %v9214_v37, %v9112_v60  ;;  %v3269_v6 = vadd.f32 %v9218_v40, %v9115_v48  ;;  %v3268_v48 = vadd.f32 %v9230_v4, %v9124_v2  ;;  %v3271_v40 = vadd.f32 %v9238_v17, %v9130_v18 }
 0x1de   : > { %v9300_v58 = vadd.f32 %v3597_v51, %v3288_v29  ;;  %v3293_v47 = vadd.f32 %v6468_v22, %v9187_v42  ;;  %v6503_v19 = vpop.f32.mrf.mxu0  ;;  %v3625_v22 = vadd.f32 %v9198_v39, %v3263_v3  ;;  %v3628_v39 = vadd.f32 %v9204_v45, %v3266_v62 }
 0x1df   : > { %v3248_v15 = vpop.f32.mrf.mxu1  ;;  %v3631_v2 = vadd.f32 %v9212_v43, %v3269_v6  ;;  %v3629_v27 = vadd.f32 %v9216_v21, %v3267_v26  ;;  %v3274_v18 = vadd.f32 %v9242_v23, %v9133_v13  ;;  %v3635_v43 = vadd.f32 %v9228_v46, %v3273_v31  ;;  %v9924_v46 = vld [vmem:[#allocation5_spill] sm:$0xff]  ;;  %v9925_v6 = vld [vmem:[#allocation14_spill] sm:$0xff] }
 0x1e0   : > { %v9305_v16 = vadd.f32 %v6502_v57, %v3293_v47  ;;  %v3291_v30 = vadd.f32 %v3248_v15, %v9190_v44  ;;  %v3613_v9 = vpop.f32.mrf.mxu0  ;;  %v3626_v15 = vadd.f32 %v9208_v28, %v3264_v0  ;;  %v3633_v21 = vadd.f32 %v9232_v50, %v3271_v40  ;;  %v9929_v40 = vld [vmem:[#allocation4_spill] sm:$0xff] }
 0x1e1   : > { %v6469_v20 = vpop.f32.mrf.mxu1 }
 0x1e2   : > { %v9310_v56 = vadd.f32 %v3610_v49, %v3291_v30  ;;  %v3294_v51 = vadd.f32 %v6469_v20, %v9195_v35  ;;  %v6542_v59 = vpop.f32.mrf.mxu0 }
 0x1e3   : > { %v3251_v42 = vpop.f32.mrf.mxu1 }
 0x1e4   : > { %v9316_v36 = vadd.f32 %v6503_v19, %v3294_v51  ;;  %v3292_v44 = vadd.f32 %v3251_v42, %v9202_v32  ;;  %v4694_v57 = vpop.f32.mrf.mxu0  ;;  %v9331_v32 = vld [vmem:[%s9705_s2] ss:$0 sm:$0xff]  ;;  %v3270_v19 = vadd.f32 %v9226_v25, %v9121_v38  ;;  %v3630_v51 = vadd.f32 %v9224_v10, %v3268_v48 }
 0x1e5   : > { %v6508_v29 = vpop.f32.mrf.mxu1  ;;  %v9923_v10 = vld [vmem:[#allocation2_spill] sm:$0xff] }
 0x1e6   : > { %v9322_v5 = vadd.f32 %v3613_v9, %v3292_v44  ;;  %v4353_v35 = vadd.f32 %v6508_v29, %v3627_v12  ;;  %v6543_v49 = vpop.f32.mrf.mxu0  ;;  %v3632_v3 = vadd.f32 %v9220_v63, %v3270_v19  ;;  %v9367_v44 = vadd.f32 %v9236_v1, %v3274_v18  ;;  %v9926_v1 = vld [vmem:[#allocation10_spill] sm:$0xff] }
 0x1e7   : > { %v4224_v61 = vpop.f32.mrf.mxu1  ;;  %v3272_v63 = vadd.f32 %v9246_v33, %v9136_v8  ;;  %v3275_v26 = vadd.f32 %v9926_v1, %v9925_v6 }
 0x1e8   : > { %v4823_v47 = vadd.f32 %v6542_v59, %v4353_v35  ;;  %v4351_v60 = vadd.f32 %v4224_v61, %v3625_v22  ;;  %v4697_v37 = vpop.f32.mrf.mxu0  ;;  %v9927_v61 = vld [vmem:[#allocation19_spill] sm:$0xff] }
 0x1e9   : > { %v6509_v45 = vpop.f32.mrf.mxu1 }
 0x1ea   : > { %v4862_v53 = vmul.f32 %v9331_v32, %v4823_v47  ;;  %v4821_v38 = vadd.f32 %v4694_v57, %v4351_v60  ;;  %v4354_v25 = vadd.f32 %v6509_v45, %v3628_v39  ;;  %v6546_v30 = vpop.f32.mrf.mxu0  ;;  %v3277_v57 = vadd.f32 %v9924_v46, %v9923_v10  ;;  %v9928_v39 = vld [vmem:[#allocation15_spill] sm:$0xff] }
 0x1eb   : > { %v4227_v4 = vpop.f32.mrf.mxu1  ;;  %v3278_v8 = vadd.f32 %v9928_v39, %v9927_v61  ;;  %v3634_v45 = vadd.f32 %v9929_v40, %v3272_v63  ;;  %v9937_v39 = vld [vmem:[#allocation21_spill] sm:$0xff] }
 0x1ec   : > { %v9354_v7 = vadd.f32 %v9345_v54, %v4862_v53  ;;  %v4860_v17 = vmul.f32 %v9331_v32, %v4821_v38  ;;  %v4824_v9 = vadd.f32 %v6543_v49, %v4354_v25  ;;  %v4352_v28 = vadd.f32 %v4227_v4, %v3626_v15  ;;  %v4710_v20 = vpop.f32.mrf.mxu0  ;;  %v9930_v15 = vld [vmem:[#allocation3_spill] sm:$0xff] }
 0x1ed   : > { %v6512_v59 = vpop.f32.mrf.mxu1  ;;  %v9388_v53 = vadd.f32 %v9930_v15, %v3277_v57  ;;  %v9935_v57 = vld [vmem:[#allocation18_spill] sm:$0xff] }
 0x1ee   : > { %v6016_v13 = vmul.f32 -1.442695, %v9354_v7  ;;  %v9363_v23 = vadd.f32 %v9345_v54, %v4860_v17  ;;  %v4863_v42 = vmul.f32 %v9331_v32, %v4824_v9  ;;  %v4822_v12 = vadd.f32 %v4697_v37, %v4352_v28  ;;  %v6547_v62 = vpop.f32.mrf.mxu0  ;;  %v9931_v17 = vld [vmem:[#allocation6_spill] sm:$0xff]  ;;  %v9932_v28 = vld [vmem:[#allocation7_spill] sm:$0xff] }
 0x1ef   : > { %v4357_v50 = vadd.f32 %v6512_v59, %v3631_v2  ;;  %v4240_v29 = vpop.f32.mrf.mxu1  ;;  %v3637_v9 = vadd.f32 %v9931_v17, %v3275_v26 }
 0x1f0   : > { %6657 = vpow2.f32 %v6016_v13  ;;  %v6014_v22 = vmul.f32 -1.442695, %v9363_v23  ;;  %v9375_v0 = vadd.f32 %v9345_v54, %v4863_v42  ;;  %v4861_v35 = vmul.f32 %v9331_v32, %v4822_v12  ;;  %v4713_v49 = vpop.f32.mrf.mxu0 }
 0x1f1   : > { %v4827_v33 = vadd.f32 %v6546_v30, %v4357_v50  ;;  %v4355_v47 = vadd.f32 %v4240_v29, %v3629_v27  ;;  %v6513_v60 = vpop.f32.mrf.mxu1  ;;  %v9936_v50 = vld [vmem:[#allocation24_spill] sm:$0xff] }
 0x1f2   : > { %6659 = vpow2.f32 %v6014_v22  ;;  %v6017_v37 = vmul.f32 -1.442695, %v9375_v0  ;;  %v9384_v19 = vadd.f32 %v9345_v54, %v4861_v35  ;;  %v4358_v48 = vadd.f32 %v6513_v60, %v3632_v3  ;;  %v6550_v31 = vpop.f32.mrf.mxu0  ;;  %v9940_v60 = vld [vmem:[#allocation12_spill] sm:$0xff] }
 0x1f3   : > { %v4866_v38 = vmul.f32 %v9331_v32, %v4827_v33  ;;  %v4825_v25 = vadd.f32 %v4710_v20, %v4355_v47  ;;  %v4243_v2 = vpop.f32.mrf.mxu1  ;;  %v9394_v3 = vadd.f32 %v9932_v28, %v3278_v8  ;;  %v3281_v29 = vadd.f32 %v9936_v50, %v9935_v57  ;;  %v9938_v8 = vld [vmem:[#allocation8_spill] sm:$0xff]  ;;  %v9939_v47 = vld [vmem:[#allocation23_spill] sm:$0xff] }
 0x1f4   : > { %6661 = vpow2.f32 %v6017_v37  ;;  %v6015_v30 = vmul.f32 -1.442695, %v9384_v19  ;;  %v4828_v27 = vadd.f32 %v6547_v62, %v4358_v48  ;;  %v4356_v18 = vadd.f32 %v4243_v2, %v3630_v51  ;;  %v4726_v4 = vpop.f32.mrf.mxu0  ;;  %v9933_v62 = vld [vmem:[#allocation9_spill] sm:$0xff]  ;;  %v9934_v51 = vld [vmem:[#allocation20_spill] sm:$0xff] }
 0x1f5   : > { %v9397_v59 = vadd.f32 %v9345_v54, %v4866_v38  ;;  %v4864_v13 = vmul.f32 %v9331_v32, %v4825_v25  ;;  %v6516_v42 = vpop.f32.mrf.mxu1  ;;  %v3276_v46 = vadd.f32 %v9934_v51, %v9933_v62  ;;  %v3279_v33 = vadd.f32 %v9938_v8, %v9937_v39  ;;  %v9941_v2 = vld [vmem:[#allocation13_spill] sm:$0xff]  ;;  %v9944_v51 = vld [vmem:[#allocation11_spill] sm:$0xff]  ;;  %v9946_v39 = vld [vmem:[#allocation26_spill] sm:$0xff] }
 0x1f6   : > { %6663 = vpow2.f32 %v6015_v30  ;;  %v4867_v20 = vmul.f32 %v9331_v32, %v4828_v27  ;;  %v4826_v12 = vadd.f32 %v4713_v49, %v4356_v18  ;;  %v4361_v63 = vadd.f32 %v6516_v42, %v3635_v43  ;;  %v6551_v10 = vpop.f32.mrf.mxu0  ;;  %v9942_v27 = vld [vmem:[#allocation17_spill] sm:$0xff] }
 0x1f7   : > { %v6020_v22 = vmul.f32 -1.442695, %v9397_v59  ;;  %v9407_v35 = vadd.f32 %v9345_v54, %v4864_v13  ;;  %v4256_v6 = vpop.f32.mrf.mxu1  ;;  %v3282_v37 = vadd.f32 %v9940_v60, %v9939_v47  ;;  %v3638_v30 = vadd.f32 %v9941_v2, %v3276_v46 }
 0x1f8   : > { %v9410_v1 = vadd.f32 %v9345_v54, %v4867_v20  ;;  %v4865_v26 = vmul.f32 %v9331_v32, %v4826_v12  ;;  %v4831_v49 = vadd.f32 %v6550_v31, %v4361_v63  ;;  %v4359_v43 = vadd.f32 %v4256_v6, %v3633_v21  ;;  %v4729_v61 = vpop.f32.mrf.mxu0 }
 0x1f9   : > { %6665 = vpow2.f32 %v6020_v22  ;;  %v6018_v48 = vmul.f32 -1.442695, %v9407_v35  ;;  %v6517_v40 = vpop.f32.mrf.mxu1  ;;  %v3643_v18 = vadd.f32 %v9942_v27, %v3281_v29  ;;  %v9435_v46 = vadd.f32 %v9944_v51, %v3282_v37 }
 0x1fa   : > { %v6021_v15 = vmul.f32 -1.442695, %v9410_v1  ;;  %v9420_v38 = vadd.f32 %v9345_v54, %v4865_v26  ;;  %v4870_v25 = vmul.f32 %v9331_v32, %v4831_v49  ;;  %v4829_v31 = vadd.f32 %v4726_v4, %v4359_v43  ;;  %v6554_v21 = vpop.f32.mrf.mxu0  ;;  %v9943_v4 = vld [vmem:[#allocation22_spill] sm:$0xff]  ;;  %v9945_v43 = vld [vmem:[#allocation25_spill] sm:$0xff] }
 0x1fb   : > { %6667 = vpow2.f32 %v6018_v48  ;;  %v4362_v17 = vadd.f32 %v6517_v40, %v9367_v44  ;;  %v4259_v28 = vpop.f32.mrf.mxu1  ;;  %v9432_v62 = vadd.f32 %v9943_v4, %v3279_v33  ;;  %v3280_v8 = vadd.f32 %v9946_v39, %v9945_v43 }
 0x1fc   : > { %6669 = vpow2.f32 %v6021_v15  ;;  %v6019_v13 = vmul.f32 -1.442695, %v9420_v38  ;;  %v9428_v42 = vadd.f32 %v9345_v54, %v4870_v25  ;;  %v4868_v20 = vmul.f32 %v9331_v32, %v4829_v31  ;;  %v4742_v12 = vpop.f32.mrf.mxu0 }
 0x1fd   : > { %v6658_v63 = vpop.eup %6657  ;;  %v4832_v57 = vadd.f32 %v6551_v10, %v4362_v17  ;;  %v4360_v50 = vadd.f32 %v4259_v28, %v3634_v45  ;;  %v6520_v44 = vpop.f32.mrf.mxu1 }
 0x1fe   : > { %v5029_v29 = vadd.f32 1.0, %v6658_v63  ;;  %6671 = vpow2.f32 %v6019_v13  ;;  %v6024_v22 = vmul.f32 -1.442695, %v9428_v42  ;;  %v9439_v6 = vadd.f32 %v9345_v54, %v4868_v20  ;;  %v6555_v26 = vpop.f32.mrf.mxu0 }
 0x1ff   : > { %v6660_v49 = vpop.eup %6659  ;;  %v4871_v33 = vmul.f32 %v9331_v32, %v4832_v57  ;;  %v4830_v47 = vadd.f32 %v4729_v61, %v4360_v50  ;;  %v4365_v60 = vadd.f32 %v6520_v44, %v9388_v53  ;;  %v4272_v10 = vpop.f32.mrf.mxu1 }
 0x200   : > { %6673 = vrcp.f32 %v5029_v29  ;;  %v5027_v45 = vadd.f32 1.0, %v6660_v49  ;;  %v6022_v37 = vmul.f32 -1.442695, %v9439_v6  ;;  %v4363_v48 = vadd.f32 %v4272_v10, %v3637_v9  ;;  %v4745_v40 = vpop.f32.mrf.mxu0 }
 0x201   : > { %v6662_v15 = vpop.eup %6661  ;;  %6675 = vpow2.f32 %v6024_v22  ;;  %v9447_v25 = vadd.f32 %v9345_v54, %v4871_v33  ;;  %v4869_v31 = vmul.f32 %v9331_v32, %v4830_v47  ;;  %v4835_v2 = vadd.f32 %v6554_v21, %v4365_v60  ;;  %v6521_v27 = vpop.f32.mrf.mxu1 }
 0x202   : > { %6677 = vrcp.f32 %v5027_v45  ;;  %v5030_v61 = vadd.f32 1.0, %v6662_v15  ;;  %v4833_v17 = vadd.f32 %v4742_v12, %v4363_v48  ;;  %v4366_v53 = vadd.f32 %v6521_v27, %v9394_v3  ;;  %v6558_v28 = vpop.f32.mrf.mxu0 }
 0x203   : > { %v6664_v13 = vpop.eup %6663  ;;  %6679 = vpow2.f32 %v6022_v37  ;;  %v6025_v9 = vmul.f32 -1.442695, %v9447_v25  ;;  %v9453_v20 = vadd.f32 %v9345_v54, %v4869_v31  ;;  %v4874_v63 = vmul.f32 %v9331_v32, %v4835_v2  ;;  %v4275_v4 = vpop.f32.mrf.mxu1  ;;  %v9947_v37 = vld [vmem:[#allocation16_spill] sm:$0xff] }
 0x204   : > { %6681 = vrcp.f32 %v5030_v61  ;;  %v5028_v51 = vadd.f32 1.0, %v6664_v13  ;;  %v4872_v21 = vmul.f32 %v9331_v32, %v4833_v17  ;;  %v4836_v57 = vadd.f32 %v6555_v26, %v4366_v53  ;;  %v4758_v50 = vpop.f32.mrf.mxu0 }
 0x205   : > { %6683 = vpow2.f32 %v6025_v9  ;;  %v6023_v3 = vmul.f32 -1.442695, %v9453_v20  ;;  %v9459_v12 = vadd.f32 %v9345_v54, %v4874_v63  ;;  %v4364_v44 = vadd.f32 %v4275_v4, %v3638_v30  ;;  %v6524_v29 = vpop.f32.mrf.mxu1 }
 0x206   : > { %v6666_v22 = vpop.eup %6665  ;;  %6685 = vrcp.f32 %v5028_v51  ;;  %v9462_v49 = vadd.f32 %v9345_v54, %v4872_v21  ;;  %v4875_v43 = vmul.f32 %v9331_v32, %v4836_v57  ;;  %v4369_v39 = vadd.f32 %v6524_v29, %v3643_v18  ;;  %v6559_v33 = vpop.f32.mrf.mxu0 }
 0x207   : > { %v5033_v26 = vadd.f32 1.0, %v6666_v22  ;;  %6687 = vpow2.f32 %v6023_v3  ;;  %v6028_v47 = vmul.f32 -1.442695, %v9459_v12  ;;  %v4834_v60 = vadd.f32 %v4745_v40, %v4364_v44  ;;  %v4288_v10 = vpop.f32.mrf.mxu1 }
 0x208   : > { %v6668_v45 = vpop.eup %6667  ;;  %v3642_v30 = vadd.f32 %v9947_v37, %v3280_v8  ;;  %v9468_v48 = vadd.f32 %v9345_v54, %v4875_v43  ;;  %v4839_v15 = vadd.f32 %v6558_v28, %v4369_v39  ;;  %v4367_v31 = vadd.f32 %v4288_v10, %v9432_v62  ;;  %v4761_v2 = vpop.f32.mrf.mxu0 }
 0x209   : > { %v6670_v27 = vpop.eup %6669  ;;  %6689 = vrcp.f32 %v5033_v26  ;;  %v5031_v18 = vadd.f32 1.0, %v6668_v45  ;;  %v6026_v61 = vmul.f32 -1.442695, %v9462_v49  ;;  %v4873_v17 = vmul.f32 %v9331_v32, %v4834_v60  ;;  %v6525_v40 = vpop.f32.mrf.mxu1 }
 0x20a   : > { %v5034_v53 = vadd.f32 1.0, %v6670_v27  ;;  %6691 = vpow2.f32 %v6028_v47  ;;  %v6029_v8 = vmul.f32 -1.442695, %v9468_v48  ;;  %v4878_v13 = vmul.f32 %v9331_v32, %v4839_v15 }
 0x20b   : > { %v9475_v9 = vpop.f32.mrf.mxu0  ;;  %v6672_v28 = vpop.eup %6671  ;;  %6693 = vrcp.f32 %v5031_v18  ;;  %v9478_v62 = vadd.f32 %v9345_v54, %v4873_v17  ;;  %v4837_v63 = vadd.f32 %v4758_v50, %v4367_v31  ;;  %v4370_v4 = vadd.f32 %v6525_v40, %v9435_v46 }
 0x20c   : > { %v4291_v51 = vpop.f32.mrf.mxu1  ;;  %6695 = vrcp.f32 %v5034_v53  ;;  %v5032_v21 = vadd.f32 1.0, %v6672_v28  ;;  %v9483_v57 = vadd.f32 %v9345_v54, %v4878_v13 }
 0x20d   : > { %v4368_v3 = vadd.f32 %v4291_v51, %v3642_v30  ;;  %v9485_v44 = vpop.f32.mrf.mxu0  ;;  %v6674_v29 = vpop.eup %6673  ;;  %6697 = vpow2.f32 %v6026_v61  ;;  %v6027_v22 = vmul.f32 -1.442695, %v9478_v62  ;;  %v4876_v43 = vmul.f32 %v9331_v32, %v4837_v63 }
 0x20e   : > { %v4840_v39 = vadd.f32 %v6559_v33, %v4370_v4  ;;  %v6528_v50 = vpop.f32.mrf.mxu1  ;;  %v6676_v26 = vpop.eup %6675  ;;  %v5125_v46 = vmul.f32 %v6674_v29, %v9354_v7  ;;  %6699 = vrcp.f32 %v5032_v21  ;;  %v6032_v47 = vmul.f32 -1.442695, %v9483_v57 }
 0x20f   : > { %v4838_v60 = vadd.f32 %v4761_v2, %v4368_v3  ;;  %v6563_v10 = vpop.f32.mrf.mxu0  ;;  %v6678_v45 = vpop.eup %6677  ;;  %v5037_v37 = vadd.f32 1.0, %v6676_v26  ;;  %6701 = vpow2.f32 %v6029_v8  ;;  %v9497_v30 = vadd.f32 %v9345_v54, %v4876_v43 }
 0x210   : > { %v4879_v33 = vmul.f32 %v9331_v32, %v4840_v39  ;;  %v4304_v7 = vpop.f32.mrf.mxu1  ;;  %v6680_v15 = vpop.eup %6679  ;;  %v6083_v31 = vpack.c.bf16 %v5125_v46, %v5125_v46  ;;  %v5123_v2 = vmul.f32 %v6678_v45, %v9363_v23  ;;  %6703 = vpow2.f32 %v6027_v22 }
 0x211   : > { %v4877_v27 = vmul.f32 %v9331_v32, %v4838_v60  ;;  %v4777_v18 = vpop.f32.mrf.mxu0  ;;  %v6682_v61 = vpop.eup %6681  ;;  %6705 = vrcp.f32 %v5037_v37  ;;  %v5035_v17 = vadd.f32 1.0, %v6680_v15  ;;  %v6030_v40 = vmul.f32 -1.442695, %v9497_v30 }
 0x212   : > { %v9504_v53 = vadd.f32 %v9345_v54, %v4879_v33  ;;  %v6529_v8 = vpop.f32.mrf.mxu1  ;;  %v6684_v13 = vpop.eup %6683  ;;  %5286 = vst.msk [vmem:[%s9494_s25 + $0x8] sm:$0xf] %vm5283_vm8, %v6083_v31  ;;  %v6081_v28 = vpack.c.bf16 %v5123_v2, %v5123_v2  ;;  %v5126_v23 = vmul.f32 %v6682_v61, %v9375_v0  ;;  %6707 = vpow2.f32 %v6032_v47 }
 0x213   : > { %v9510_v63 = vadd.f32 %v9345_v54, %v4877_v27  ;;  %v9512_v4 = vpop.f32.mrf.mxu0  ;;  %v6686_v51 = vpop.eup %6685  ;;  %6709 = vrcp.f32 %v5035_v17  ;;  %v5038_v21 = vadd.f32 1.0, %v6684_v13  ;;  %v4373_v29 = vadd.f32 %v6528_v50, %v9279_v34 }
 0x214   : > { %v6033_v3 = vmul.f32 -1.442695, %v9504_v53  ;;  %v4307_v22 = vpop.f32.mrf.mxu1  ;;  %v6688_v43 = vpop.eup %6687  ;;  %5284 = vst.msk [vmem:[%s9494_s25] sm:$0xf] %vm5283_vm8, %v6081_v28  ;;  %v6084_v39 = vpack.c.bf16 %v5126_v23, %v5126_v23  ;;  %v5124_v0 = vmul.f32 %v6686_v51, %v9384_v19  ;;  %6711 = vpow2.f32 %v6030_v40 }
 0x215   : > { %v6031_v26 = vmul.f32 -1.442695, %v9510_v63  ;;  %v9520_v46 = vpop.f32.mrf.mxu0  ;;  %6713 = vrcp.f32 %v5038_v21  ;;  %v5036_v47 = vadd.f32 1.0, %v6688_v43  ;;  %v4843_v60 = vadd.f32 %v9475_v9, %v4373_v29 }
 0x216   : > { %v4371_v45 = vadd.f32 %v4304_v7, %v9282_v11  ;;  %v6532_v34 = vpop.f32.mrf.mxu1  ;;  %v6690_v50 = vpop.eup %6689  ;;  %5287 = vst.msk [vmem:[%s9494_s25 + $0xc] sm:$0xf] %vm5283_vm8, %v6084_v39  ;;  %v6082_v37 = vpack.c.bf16 %v5124_v0, %v5124_v0  ;;  %6715 = vpow2.f32 %v6033_v3  ;;  %v4374_v19 = vadd.f32 %v6529_v8, %v9285_v41 }
 0x217   : > { %v4372_v33 = vadd.f32 %v4307_v22, %v9288_v14  ;;  %v6692_v15 = vpop.eup %6691  ;;  %v5129_v31 = vmul.f32 %v6690_v50, %v9397_v59  ;;  %6717 = vrcp.f32 %v5036_v47  ;;  %v4882_v2 = vmul.f32 %v9331_v32, %v4843_v60  ;;  %v9531_v7 = vpop.f32.mrf.mxu0 }
 0x218   : > { %v4841_v9 = vadd.f32 %v9485_v44, %v4371_v45  ;;  %v4320_v11 = vpop.f32.mrf.mxu1  ;;  %v6694_v27 = vpop.eup %6693  ;;  %5285 = vst.msk [vmem:[%s9494_s25 + $0x4] sm:$0xf] %vm5283_vm8, %v6082_v37  ;;  %v5041_v61 = vadd.f32 1.0, %v6692_v15  ;;  %6719 = vpow2.f32 %v6031_v26  ;;  %v4844_v41 = vadd.f32 %v6563_v10, %v4374_v19 }
 0x219   : > { %v4842_v17 = vadd.f32 %v4777_v18, %v4372_v33  ;;  %v6696_v14 = vpop.eup %6695  ;;  %v6087_v40 = vpack.c.bf16 %v5129_v31, %v5129_v31  ;;  %v5127_v59 = vmul.f32 %v6694_v27, %v9407_v35  ;;  %v9537_v8 = vadd.f32 %v9345_v54, %v4882_v2 }
 0x21a   : > { %v4880_v44 = vmul.f32 %v9331_v32, %v4841_v9  ;;  %v6533_v13 = vpop.f32.mrf.mxu1  ;;  %v6698_v28 = vpop.eup %6697  ;;  %v5130_v23 = vmul.f32 %v6696_v14, %v9410_v1  ;;  %6721 = vrcp.f32 %v5041_v61  ;;  %v4883_v51 = vmul.f32 %v9331_v32, %v4844_v41 }
 0x21b   : > { %v4881_v10 = vmul.f32 %v9331_v32, %v4842_v17  ;;  %v6700_v18 = vpop.eup %6699  ;;  %5290 = vst.msk [vmem:[%s9494_s25 + $0x18] sm:$0xf] %vm5283_vm8, %v6087_v40  ;;  %v6085_v21 = vpack.c.bf16 %v5127_v59, %v5127_v59  ;;  %v5039_v35 = vadd.f32 1.0, %v6698_v28  ;;  %v6036_v3 = vmul.f32 -1.442695, %v9537_v8  ;;  %v9551_v1 = vpop.f32.mrf.mxu0 }
 0x21c   : > { %v9547_v29 = vadd.f32 %v9345_v54, %v4880_v44  ;;  %v9549_v22 = vpop.f32.mrf.mxu1  ;;  %v6702_v43 = vpop.eup %6701  ;;  %v6088_v39 = vpack.c.bf16 %v5130_v23, %v5130_v23  ;;  %v5128_v0 = vmul.f32 %v6700_v18, %v9420_v38  ;;  %v9555_v26 = vadd.f32 %v9345_v54, %v4883_v51 }
 0x21d   : > { %v9558_v47 = vadd.f32 %v9345_v54, %v4881_v10  ;;  %v6704_v60 = vpop.eup %6703  ;;  %5288 = vst.msk [vmem:[%s9494_s25 + $0x10] sm:$0xf] %vm5283_vm8, %v6085_v21  ;;  %6723 = vrcp.f32 %v5039_v35  ;;  %v5042_v45 = vadd.f32 1.0, %v6702_v43  ;;  %v4377_v37 = vadd.f32 %v6532_v34, %v9291_v55  ;;  %v6570_v41 = vpop.f32.mrf.mxu0 }
 0x21e   : > { %v6034_v50 = vmul.f32 -1.442695, %v9547_v29  ;;  %v6536_v19 = vpop.f32.mrf.mxu1  ;;  %v6706_v33 = vpop.eup %6705  ;;  %5291 = vst.msk [vmem:[%s9494_s25 + $0x1c] sm:$0xf] %vm5283_vm8, %v6088_v39  ;;  %v6086_v38 = vpack.c.bf16 %v5128_v0, %v5128_v0  ;;  %v5040_v15 = vadd.f32 1.0, %v6704_v60  ;;  %6725 = vpow2.f32 %v6036_v3 }
 0x21f   : > { %v6037_v31 = vmul.f32 -1.442695, %v9555_v26  ;;  %v6708_v2 = vpop.eup %6707  ;;  %v5133_v9 = vmul.f32 %v6706_v33, %v9428_v42  ;;  %6727 = vrcp.f32 %v5042_v45  ;;  %v6035_v27 = vmul.f32 -1.442695, %v9558_v47 }
 0x220   : > { %v4847_v61 = vadd.f32 %v9512_v4, %v4377_v37  ;;  %v4336_v55 = vpop.f32.mrf.mxu1  ;;  %v6710_v34 = vpop.eup %6709  ;;  %5289 = vst.msk [vmem:[%s9494_s25 + $0x14] sm:$0xf] %vm5283_vm8, %v6086_v38  ;;  %6729 = vrcp.f32 %v5040_v15  ;;  %v5045_v17 = vadd.f32 1.0, %v6708_v2  ;;  %v4375_v14 = vadd.f32 %v4320_v11, %v9294_v52 }
 0x221   : > { %v4378_v40 = vadd.f32 %v6533_v13, %v9297_v24  ;;  %v6712_v59 = vpop.eup %6711  ;;  %v6091_v44 = vpack.c.bf16 %v5133_v9, %v5133_v9  ;;  %v5131_v42 = vmul.f32 %v6710_v34, %v9439_v6  ;;  %6731 = vpow2.f32 %v6034_v50  ;;  %v4806_v11 = vpop.f32.mrf.mxu0 }
 0x222   : > { %v4886_v28 = vmul.f32 %v9331_v32, %v4847_v61  ;;  %v6714_v4 = vpop.eup %6713  ;;  %6733 = vrcp.f32 %v5045_v17  ;;  %v5043_v23 = vadd.f32 1.0, %v6712_v59  ;;  %v4845_v51 = vadd.f32 %v9520_v46, %v4375_v14  ;;  %v6537_v13 = vpop.f32.mrf.mxu1 }
 0x223   : > { %v4848_v10 = vadd.f32 %v9531_v7, %v4378_v40  ;;  %v6716_v18 = vpop.eup %6715  ;;  %5294 = vst.msk [vmem:[%s9494_s25 + $0x28] sm:$0xf] %vm5283_vm8, %v6091_v44  ;;  %v6089_v52 = vpack.c.bf16 %v5131_v42, %v5131_v42  ;;  %v5134_v24 = vmul.f32 %v6714_v4, %v9447_v25  ;;  %6735 = vpow2.f32 %v6037_v31  ;;  %v6571_v38 = vpop.f32.mrf.mxu0 }
 0x224   : > { %v9582_v6 = vadd.f32 %v9345_v54, %v4886_v28  ;;  %v6718_v21 = vpop.eup %6717  ;;  %6737 = vrcp.f32 %v5043_v23  ;;  %v5046_v35 = vadd.f32 1.0, %v6716_v18  ;;  %v4884_v46 = vmul.f32 %v9331_v32, %v4845_v51  ;;  %v4339_v15 = vpop.f32.mrf.mxu1 }
 0x225   : > { %v4887_v7 = vmul.f32 %v9331_v32, %v4848_v10  ;;  %v6720_v3 = vpop.eup %6719  ;;  %5292 = vst.msk [vmem:[%s9494_s25 + $0x20] sm:$0xf] %vm5283_vm8, %v6089_v52  ;;  %v6092_v43 = vpack.c.bf16 %v5134_v24, %v5134_v24  ;;  %v5132_v25 = vmul.f32 %v6718_v21, %v9453_v20  ;;  %6739 = vpow2.f32 %v6035_v27  ;;  %v4809_v59 = vpop.f32.mrf.mxu0 }
 0x226   : > { %v6040_v39 = vmul.f32 -1.442695, %v9582_v6  ;;  %6741 = vrcp.f32 %v5046_v35  ;;  %v5044_v0 = vadd.f32 1.0, %v6720_v3  ;;  %v9591_v60 = vadd.f32 %v9345_v54, %v4884_v46 }
 0x227   : > { %v9594_v45 = vadd.f32 %v9345_v54, %v4887_v7  ;;  %v6722_v50 = vpop.eup %6721  ;;  %5295 = vst.msk [vmem:[%s9494_s25 + $0x2c] sm:$0xf] %vm5283_vm8, %v6092_v43  ;;  %v6090_v37 = vpack.c.bf16 %v5132_v25, %v5132_v25  ;;  %v4376_v20 = vadd.f32 %v9549_v22, %v9300_v58  ;;  %v4381_v33 = vadd.f32 %v6536_v19, %v9305_v16 }
 0x228   : > { %6743 = vpow2.f32 %v6040_v39  ;;  %v5137_v31 = vmul.f32 %v6722_v50, %v9459_v12  ;;  %v6038_v2 = vmul.f32 -1.442695, %v9591_v60  ;;  %v4379_v34 = vadd.f32 %v4336_v55, %v9310_v56 }
 0x229   : > { %6745 = vrcp.f32 %v5044_v0  ;;  %v6041_v9 = vmul.f32 -1.442695, %v9594_v45  ;;  %5293 = vst.msk [vmem:[%s9494_s25 + $0x24] sm:$0xf] %vm5283_vm8, %v6090_v37  ;;  %v4846_v27 = vadd.f32 %v9551_v1, %v4376_v20  ;;  %v4851_v61 = vadd.f32 %v6570_v41, %v4381_v33 }
 0x22a   : > { %v4382_v58 = vadd.f32 %v6537_v13, %v9316_v36  ;;  %v6724_v16 = vpop.eup %6723  ;;  %v6095_v22 = vpack.c.bf16 %v5137_v31, %v5137_v31  ;;  %6747 = vpow2.f32 %v6038_v2  ;;  %v4380_v12 = vadd.f32 %v4339_v15, %v9322_v5 }
 0x22b   : > { %v6726_v19 = vpop.eup %6725  ;;  %v5135_v17 = vmul.f32 %v6724_v16, %v9462_v49  ;;  %6749 = vpow2.f32 %v6041_v9  ;;  %v4885_v14 = vmul.f32 %v9331_v32, %v4846_v27  ;;  %v4890_v40 = vmul.f32 %v9331_v32, %v4851_v61 }
 0x22c   : > { %v6728_v1 = vpop.eup %6727  ;;  %5298 = vst.msk [vmem:[%s9494_s25 + $0x38] sm:$0xf] %vm5283_vm8, %v6095_v22  ;;  %v5049_v56 = vadd.f32 1.0, %v6726_v19  ;;  %v4849_v36 = vadd.f32 %v4806_v11, %v4379_v34  ;;  %v4852_v41 = vadd.f32 %v6571_v38, %v4382_v58  ;;  %v4850_v55 = vadd.f32 %v4809_v59, %v4380_v12 }
 0x22d   : > { %v6730_v44 = vpop.eup %6729  ;;  %v6093_v42 = vpack.c.bf16 %v5135_v17, %v5135_v17  ;;  %v5138_v5 = vmul.f32 %v6728_v1, %v9468_v48  ;;  %v9617_v49 = vadd.f32 %v9345_v54, %v4885_v14  ;;  %v9620_v28 = vadd.f32 %v9345_v54, %v4890_v40 }
 0x22e   : > { %v6732_v4 = vpop.eup %6731  ;;  %v5136_v23 = vmul.f32 %v6730_v44, %v9478_v62  ;;  %6751 = vrcp.f32 %v5049_v56  ;;  %v4888_v51 = vmul.f32 %v9331_v32, %v4849_v36  ;;  %v4891_v10 = vmul.f32 %v9331_v32, %v4852_v41 }
 0x22f   : > { %v6734_v18 = vpop.eup %6733  ;;  %5296 = vst.msk [vmem:[%s9494_s25 + $0x30] sm:$0xf] %vm5283_vm8, %v6093_v42  ;;  %v6096_v48 = vpack.c.bf16 %v5138_v5, %v5138_v5  ;;  %v5047_v52 = vadd.f32 1.0, %v6732_v4  ;;  %v6039_v24 = vmul.f32 -1.442695, %v9617_v49  ;;  %v4889_v43 = vmul.f32 %v9331_v32, %v4850_v55 }
 0x230   : > { %v6044_v11 = vmul.f32 -1.442695, %v9620_v28  ;;  %v6736_v13 = vpop.eup %6735  ;;  %v6094_v21 = vpack.c.bf16 %v5136_v23, %v5136_v23  ;;  %v5141_v62 = vmul.f32 %v6734_v18, %v9483_v57  ;;  %v9631_v35 = vadd.f32 %v9345_v54, %v4888_v51 }
 0x231   : > { %v9634_v46 = vadd.f32 %v9345_v54, %v4891_v10  ;;  %v6738_v7 = vpop.eup %6737  ;;  %5299 = vst.msk [vmem:[%s9494_s25 + $0x3c] sm:$0xf] %vm5283_vm8, %v6096_v48  ;;  %6753 = vrcp.f32 %v5047_v52  ;;  %v5050_v3 = vadd.f32 1.0, %v6736_v13  ;;  %v9644_v20 = vadd.f32 %v9345_v54, %v4889_v43 }
 0x232   : > { %v6740_v25 = vpop.eup %6739  ;;  %5297 = vst.msk [vmem:[%s9494_s25 + $0x34] sm:$0xf] %vm5283_vm8, %v6094_v21  ;;  %v6099_v39 = vpack.c.bf16 %v5141_v62, %v5141_v62  ;;  %v5139_v57 = vmul.f32 %v6738_v7, %v9497_v30  ;;  %6755 = vpow2.f32 %v6039_v24  ;;  %v6042_v0 = vmul.f32 -1.442695, %v9631_v35 }
 0x233   : > { %v6742_v50 = vpop.eup %6741  ;;  %6757 = vrcp.f32 %v5050_v3  ;;  %v5048_v37 = vadd.f32 1.0, %v6740_v25  ;;  %v6045_v30 = vmul.f32 -1.442695, %v9634_v46  ;;  %v6043_v2 = vmul.f32 -1.442695, %v9644_v20 }
 0x234   : > { %5302 = vst.msk [vmem:[%s9494_s25 + $0x48] sm:$0xf] %vm5283_vm8, %v6099_v39  ;;  %v6097_v32 = vpack.c.bf16 %v5139_v57, %v5139_v57  ;;  %v5142_v38 = vmul.f32 %v6742_v50, %v9504_v53  ;;  %6759 = vpow2.f32 %v6044_v11 }
 0x235   : > { %v6744_v33 = vpop.eup %6743  ;;  %6761 = vrcp.f32 %v5048_v37 }
 0x236   : > { %v6746_v15 = vpop.eup %6745  ;;  %v5053_v31 = vadd.f32 1.0, %v6744_v33  ;;  %5300 = vst.msk [vmem:[%s9494_s25 + $0x40] sm:$0xf] %vm5283_vm8, %v6097_v32  ;;  %v6100_v54 = vpack.c.bf16 %v5142_v38, %v5142_v38  ;;  %6763 = vpow2.f32 %v6042_v0 }
 0x237   : > { %v5140_v9 = vmul.f32 %v6746_v15, %v9510_v63  ;;  %v6748_v27 = vpop.eup %6747 }
 0x238   : > { %6765 = vrcp.f32 %v5053_v31  ;;  %v6750_v61 = vpop.eup %6749  ;;  %5303 = vst.msk [vmem:[%s9494_s25 + $0x4c] sm:$0xf] %vm5283_vm8, %v6100_v54  ;;  %v5051_v34 = vadd.f32 1.0, %v6748_v27 }
 0x239   : > { %v6098_v53 = vpack.c.bf16 %v5140_v9, %v5140_v9  ;;  %6767 = vpow2.f32 %v6045_v30  ;;  %v5054_v58 = vadd.f32 1.0, %v6750_v61 }
 0x23a   : > { %6769 = vpow2.f32 %v6043_v2 }
 0x23b   : > { %5301 = vst.msk [vmem:[%s9494_s25 + $0x44] sm:$0xf] %vm5283_vm8, %v6098_v53  ;;  %6771 = vrcp.f32 %v5051_v34  ;;  %v6752_v16 = vpop.eup %6751 }
 0x23c   : > { %6773 = vrcp.f32 %v5054_v58  ;;  %v5145_v63 = vmul.f32 %v6752_v16, %v9537_v8 }
 0x23e   : > { %v6754_v22 = vpop.eup %6753  ;;  %v6103_v12 = vpack.c.bf16 %v5145_v63, %v5145_v63 }
 0x23f   : > { %v6756_v19 = vpop.eup %6755  ;;  %v5143_v17 = vmul.f32 %v6754_v22, %v9547_v29 }
 0x240   : > { %v6758_v14 = vpop.eup %6757  ;;  %5306 = vst.msk [vmem:[%s9494_s25 + $0x58] sm:$0xf] %vm5283_vm8, %v6103_v12  ;;  %v5052_v40 = vadd.f32 1.0, %v6756_v19 }
 0x241   : > { %v6760_v59 = vpop.eup %6759  ;;  %v6101_v1 = vpack.c.bf16 %v5143_v17, %v5143_v17  ;;  %v5146_v56 = vmul.f32 %v6758_v14, %v9555_v26 }
 0x242   : > { %v6762_v36 = vpop.eup %6761  ;;  %6775 = vrcp.f32 %v5052_v40  ;;  %v5057_v41 = vadd.f32 1.0, %v6760_v59 }
 0x243   : > { %v6764_v55 = vpop.eup %6763  ;;  %5304 = vst.msk [vmem:[%s9494_s25 + $0x50] sm:$0xf] %vm5283_vm8, %v6101_v1  ;;  %v6104_v8 = vpack.c.bf16 %v5146_v56, %v5146_v56  ;;  %v5144_v44 = vmul.f32 %v6762_v36, %v9558_v47 }
 0x244   : > { %6777 = vrcp.f32 %v5057_v41  ;;  %v5055_v42 = vadd.f32 1.0, %v6764_v55 }
 0x245   : > { %v6766_v29 = vpop.eup %6765  ;;  %5307 = vst.msk [vmem:[%s9494_s25 + $0x5c] sm:$0xf] %vm5283_vm8, %v6104_v8  ;;  %v6102_v4 = vpack.c.bf16 %v5144_v44, %v5144_v44 }
 0x246   : > { %v6768_v5 = vpop.eup %6767  ;;  %v5149_v26 = vmul.f32 %v6766_v29, %v9582_v6  ;;  %6779 = vrcp.f32 %v5055_v42 }
 0x247   : > { %v6770_v23 = vpop.eup %6769  ;;  %v5058_v51 = vadd.f32 1.0, %v6768_v5  ;;  %5305 = vst.msk [vmem:[%s9494_s25 + $0x54] sm:$0xf] %vm5283_vm8, %v6102_v4 }
 0x248   : > { %v6772_v10 = vpop.eup %6771  ;;  %v6107_v18 = vpack.c.bf16 %v5149_v26, %v5149_v26  ;;  %v5056_v47 = vadd.f32 1.0, %v6770_v23 }
 0x249   : > { %v6774_v48 = vpop.eup %6773  ;;  %v5147_v52 = vmul.f32 %v6772_v10, %v9591_v60  ;;  %6781 = vrcp.f32 %v5058_v51 }
 0x24a   : > { %5310 = vst.msk [vmem:[%s9494_s25 + $0x68] sm:$0xf] %vm5283_vm8, %v6107_v18  ;;  %v5150_v24 = vmul.f32 %v6774_v48, %v9594_v45  ;;  %6783 = vrcp.f32 %v5056_v47 }
 0x24b   : > { %v6105_v6 = vpack.c.bf16 %v5147_v52, %v5147_v52 }
 0x24c   : > { %v6108_v11 = vpack.c.bf16 %v5150_v24, %v5150_v24 }
 0x24d   : > { %5308 = vst.msk [vmem:[%s9494_s25 + $0x60] sm:$0xf] %vm5283_vm8, %v6105_v6 }
 0x24e   : > { %5311 = vst.msk [vmem:[%s9494_s25 + $0x6c] sm:$0xf] %vm5283_vm8, %v6108_v11 }
 0x24f   : > { %v6776_v13 = vpop.eup %6775 }
 0x250   : > { %v5148_v21 = vmul.f32 %v6776_v13, %v9617_v49 }
 0x251   : > { %v6778_v62 = vpop.eup %6777 }
 0x252   : > { %v6106_v60 = vpack.c.bf16 %v5148_v21, %v5148_v21  ;;  %v5153_v7 = vmul.f32 %v6778_v62, %v9620_v28 }
 0x253   : > { %v6780_v3 = vpop.eup %6779 }
 0x254   : > { %5309 = vst.msk [vmem:[%s9494_s25 + $0x64] sm:$0xf] %vm5283_vm8, %v6106_v60  ;;  %v6111_v45 = vpack.c.bf16 %v5153_v7, %v5153_v7  ;;  %v5151_v43 = vmul.f32 %v6780_v3, %v9631_v35 }
 0x256   : > { %v6782_v25 = vpop.eup %6781  ;;  %5314 = vst.msk [vmem:[%s9494_s25 + $0x78] sm:$0xf] %vm5283_vm8, %v6111_v45  ;;  %v6109_v57 = vpack.c.bf16 %v5151_v43, %v5151_v43 }
 0x257   : > { %v6784_v39 = vpop.eup %6783  ;;  %v5154_v0 = vmul.f32 %v6782_v25, %v9634_v46 }
 0x258   : > { %v5152_v49 = vmul.f32 %v6784_v39, %v9644_v20  ;;  %5312 = vst.msk [vmem:[%s9494_s25 + $0x70] sm:$0xf] %vm5283_vm8, %v6109_v57 }
 0x259   : > { %v6112_v50 = vpack.c.bf16 %v5154_v0, %v5154_v0 }
 0x25a   : > { %v6110_v37 = vpack.c.bf16 %v5152_v49, %v5152_v49 }
 0x25b   : > { %5315 = vst.msk [vmem:[%s9494_s25 + $0x7c] sm:$0xf] %vm5283_vm8, %v6112_v50 }
 0x25c   : > { %5313 = vst.msk [vmem:[%s9494_s25 + $0x74] sm:$0xf] %vm5283_vm8, %v6110_v37 }
 0x25d PF: > { %s14_s17 = sadd.s32 1, %s6809_s17   ;;  %s9948_s15 = smov %s6805_s16 }
 0x25e   : > { %p11_p5 = scmp.ge.s32.totalorder %s14_s17, 4   ;;  %s9949_s16 = smov %s9951_s18 }
 0x260   :  { %13 = sbr.rel (!%p11_p5) target bundleno = 2 (0x2), region = 86 }

</bundles_post_ra>
